<compile_context>
chip_gen: v6e
topology: v6e:2x2x1
jax: 0.10.0
libtpu: 0.0.40
codegen_flags: <defaults>
</compile_context>

<pallas_src>
import functools

import numpy as np
import jax
import jax.numpy as jnp
from jax import lax
from jax.experimental import pallas as pl
from jax.experimental.pallas import tpu as pltpu

_BN_EPS = 1e-5  # eval BatchNorm folded with running_mean=0, running_var=1, gamma=1, beta=0
_VMEM_LIMIT = 48 * 1024 * 1024  # > 32 MiB default scoped limit, < v7x's 64 MiB physical VMEM


def _round_up(x, m):
    return ((x + m - 1) // m) * m


# ---------------------------------------------------------------------------
# im2col helper (kernel-position-major columns: col = (kh*k + kw)*C + c)
# Matches F.unfold(x, [k, k], stride=s, padding=p) up to column permutation.
# ---------------------------------------------------------------------------
def extract_patches_jm(x, k, stride, pad):
    B, C, H, W = x.shape
    Ho = (H + 2 * pad - k) // stride + 1
    Wo = (W + 2 * pad - k) // stride + 1
    xp = jnp.pad(x, ((0, 0), (0, 0), (pad, pad), (pad, pad)))
    slabs = []
    for kh in range(k):
        for kw in range(k):
            slabs.append(
                xp[:, :,
                   kh:kh + stride * (Ho - 1) + 1:stride,
                   kw:kw + stride * (Wo - 1) + 1:stride])          # (B, C, Ho, Wo)
    pat = jnp.stack(slabs, axis=0)                                  # (k2, B, C, Ho, Wo)
    pat = pat.transpose(1, 3, 4, 0, 2)                              # (B, Ho, Wo, k2, C)
    return pat.reshape(B * Ho * Wo, k * k * C), Ho, Wo


# ---------------------------------------------------------------------------
# Pallas kernel 1: Adaptive_downsample hot path
#   conv (im2col matmul, bf16 on MXU) -> LeakyReLU -> 1x1 conv -> per-group
#   softmax over the k*k kernel positions -> mask-weighted sum of the patches.
#   Softmax expansion / reduction done with constant 0/1 matmuls (no unaligned
#   lane slices).
# ---------------------------------------------------------------------------
def _adaptive_downsample_kernel(p_ref, w1_ref, w2_ref, exp_ref, red_ref, den_ref,
                                out_ref):
    p16 = p_ref[...]                                                 # (TN, k2*C) bf16
    h = jnp.dot(p16, w1_ref[...], preferred_element_type=jnp.float32)  # convbn (BN folded)
    h = jnp.where(h > 0, h, 0.1 * h)                                 # LeakyReLU(0.1)
    logits = jnp.dot(h.astype(jnp.bfloat16), w2_ref[...],
                     preferred_element_type=jnp.float32)             # (TN, k2*G), col = j*G + g

    # Per-row global max is a valid shift for the per-group softmax (softmax is
    # invariant to any per-(pixel, group) shift; global max >= group max keeps
    # exp() <= 1).  Single lane reduction instead of k2 unaligned slices.
    m = jnp.max(logits, axis=-1, keepdims=True)
    e = jnp.exp(logits - m)                                          # (TN, k2*G)

    # Constant 0/1 matmuls on the MXU replace unaligned lane slicing/concats:
    #   w_full[n, j*C+c] = e[n, j*G + (c % G)]
    w_full = jnp.dot(e, exp_ref[...], preferred_element_type=jnp.float32)   # (TN, k2*C)
    #   numer[n, c]     = sum_j w_full[n, j*C+c] * p[n, j*C+c]
    numer = jnp.dot(w_full * p16.astype(jnp.float32), red_ref[...],
                    preferred_element_type=jnp.float32)                      # (TN, C)
    #   den_c[n, c]     = sum_j e[n, j*G + (c % G)]
    den_c = jnp.dot(e, den_ref[...], preferred_element_type=jnp.float32)     # (TN, C)

    out_ref[...] = numer * pl.reciprocal(den_c, approx=True)


def adaptive_downsample(x, w_conv1, w_conv2, *, kernel, scale, padding, groups):
    B, C, H, W = x.shape
    k2 = kernel * kernel
    G = groups
    Cs = C * scale

    # im2col in bf16 (halves the dominant HBM read stream of the kernel)
    patches, Ho, Wo = extract_patches_jm(x.astype(jnp.bfloat16), kernel, scale, padding)
    N = B * Ho * Wo

    bn_scale = 1.0 / np.sqrt(1.0 + _BN_EPS)
    # conv1 weight (Cs, C, k, k) -> im2col matmul form (k2*C, Cs), position-major rows
    w1m = (jnp.transpose(w_conv1, (2, 3, 1, 0)).reshape(k2 * C, Cs)
           * bn_scale).astype(jnp.bfloat16)
    # conv2 (1x1) weight (G*k2, Cs, 1, 1) -> (Cs, k2*G) with column = j*G + g
    w2m = (w_conv2.reshape(G * k2, Cs).T
           .reshape(Cs, G, k2).transpose(0, 2, 1).reshape(Cs, k2 * G)
           ).astype(jnp.bfloat16)

    # Constant 0/1 matrices (channel c -> mask group c % G, position-major cols)
    eg = (np.arange(C)[None, :] % G == np.arange(G)[:, None]).astype(np.float32)  # (G, C)
    exp_mat = np.kron(np.eye(k2, dtype=np.float32), eg)       # (k2*G, k2*C)
    den_mat = np.tile(eg, (k2, 1))                            # (k2*G, C)
    red_mat = np.tile(np.eye(C, dtype=np.float32), (k2, 1))   # (k2*C, C)

    # Large row tiles + cdiv grid (pad rows with zeros instead of a TN=N fallback)
    TN = min(2048, _round_up(N, 128))
    Npad = _round_up(N, TN)
    if Npad != N:
        patches = jnp.pad(patches, ((0, Npad - N), (0, 0)))

    out = pl.pallas_call(
        _adaptive_downsample_kernel,
        out_shape=jax.ShapeDtypeStruct((Npad, C), jnp.float32),
        grid=(Npad // TN,),
        in_specs=[
            pl.BlockSpec((TN, k2 * C), lambda i: (i, 0)),
            pl.BlockSpec((k2 * C, Cs), lambda i: (0, 0)),
            pl.BlockSpec((Cs, k2 * G), lambda i: (0, 0)),
            pl.BlockSpec((k2 * G, k2 * C), lambda i: (0, 0)),
            pl.BlockSpec((k2 * C, C), lambda i: (0, 0)),
            pl.BlockSpec((k2 * G, C), lambda i: (0, 0)),
        ],
        out_specs=pl.BlockSpec((TN, C), lambda i: (i, 0)),
        compiler_params=pltpu.CompilerParams(
            dimension_semantics=("parallel",),
            vmem_limit_bytes=_VMEM_LIMIT),
    )(patches, w1m, w2m, jnp.asarray(exp_mat), jnp.asarray(red_mat),
      jnp.asarray(den_mat))

    out = out[:N]
    return out.reshape(B, Ho, Wo, C).transpose(0, 3, 1, 2)           # back to NCHW


# ---------------------------------------------------------------------------
# Pallas kernel 2: group-wise correlation volume (build_gwc_volume)
#   right feature padded once by D along W; shifted in-kernel with static lane
#   slices; all D disparities per grid step; group mean via leading-dim sum.
# ---------------------------------------------------------------------------
def _gwc_kernel(l_ref, rp_ref, out_ref, *, disp, num_groups, cpg):
    TH = l_ref.shape[2]
    W = l_ref.shape[3]
    l = l_ref[0]                                                     # (C, TH, W)
    inv = 1.0 / cpg
    for d in range(disp):                                            # static unroll
        r_sh = rp_ref[0, :, :, disp - d: disp - d + W]               # zeros where w < d
        prod = l * r_sh                                              # (C, TH, W)
        gm = prod.reshape(num_groups, cpg, TH, W).sum(axis=1) * inv  # (ng, TH, W)
        out_ref[0, :, d, :, :] = gm


def build_gwc_volume_pallas(l, r, maxdisp, num_groups):
    B2, C, H, W = l.shape
    cpg = C // num_groups
    D = maxdisp

    l32 = l.astype(jnp.float32)
    rp = jnp.pad(r.astype(jnp.float32), ((0, 0), (0, 0), (0, 0), (D, 0)))  # (B2,C,H,W+D)

    TH = min(H, 32)
    Hpad = _round_up(H, TH)
    if Hpad != H:
        l32 = jnp.pad(l32, ((0, 0), (0, 0), (0, Hpad - H), (0, 0)))
        rp = jnp.pad(rp, ((0, 0), (0, 0), (0, Hpad - H), (0, 0)))
    nH = Hpad // TH

    out = pl.pallas_call(
        functools.partial(_gwc_kernel, disp=D, num_groups=num_groups, cpg=cpg),
        out_shape=jax.ShapeDtypeStruct((B2, num_groups, D, Hpad, W), jnp.float32),
        grid=(B2, nH),
        in_specs=[
            pl.BlockSpec((1, C, TH, W), lambda b, ih: (b, 0, ih, 0)),
            pl.BlockSpec((1, C, TH, W + D), lambda b, ih: (b, 0, ih, 0)),
        ],
        out_specs=pl.BlockSpec((1, num_groups, D, TH, W),
                               lambda b, ih: (b, 0, 0, ih, 0)),
        compiler_params=pltpu.CompilerParams(
            dimension_semantics=("parallel", "parallel"),
            vmem_limit_bytes=_VMEM_LIMIT),
    )(l32, rp)

    return out[:, :, :, :H, :]                                       # (B2, ng, D, H, W)


# ---------------------------------------------------------------------------
# build_concat_volume: pure data movement (shift + zero-mask + concat) -> glue.
# ---------------------------------------------------------------------------
def build_concat_volume(l, r, maxdisp):
    B2, C, H, W = l.shape
    w_idx = jnp.arange(W)
    vols = []
    for d in range(maxdisp):
        mask = (w_idx >= d).astype(l.dtype)
        ls = l * mask
        rs = r if d == 0 else jnp.pad(r, ((0, 0), (0, 0), (0, 0), (d, 0)))[..., :W]
        vols.append(jnp.concatenate([ls, rs * mask], axis=1))
    return jnp.stack(vols, axis=2)                                   # (B2, 2C, D, H, W)


# ---------------------------------------------------------------------------
# Pre_processing (eval / use_structure=False)
# ---------------------------------------------------------------------------
class PreProcessingPallas:
    def __init__(self, gw_channels, cat_channels, maxdisp, num_groups,
                 kernel, scale, padding, key):
        self.gw_channels = gw_channels
        self.cat_channels = cat_channels
        self.maxdisp = maxdisp
        self.num_groups = num_groups
        self.kernel = kernel
        self.scale = scale
        self.padding = padding
        self.gwc_groups = gw_channels // 6          # use_group=True path
        self.cat_groups = cat_channels              # use_group=False path

        k1, k2_, k3, k4 = jax.random.split(key, 4)
        k = kernel
        # gwc_ds conv_mask weights
        self.gwc_w1 = 0.05 * jax.random.normal(
            k1, (gw_channels * scale, gw_channels, k, k), jnp.float32)
        self.gwc_w2 = 0.05 * jax.random.normal(
            k2_, (self.gwc_groups * k * k, gw_channels * scale, 1, 1), jnp.float32)
        # cat_ds conv_mask weights
        self.cat_w1 = 0.05 * jax.random.normal(
            k3, (cat_channels * scale, cat_channels, k, k), jnp.float32)
        self.cat_w2 = 0.05 * jax.random.normal(
            k4, (self.cat_groups * k * k, cat_channels * scale, 1, 1), jnp.float32)

    def __call__(self, gwc_feature, concat_feature):
        g_8x = adaptive_downsample(gwc_feature, self.gwc_w1, self.gwc_w2,
                                   kernel=self.kernel, scale=self.scale,
                                   padding=self.padding, groups=self.gwc_groups)
        c_8x = adaptive_downsample(concat_feature, self.cat_w1, self.cat_w2,
                                   kernel=self.kernel, scale=self.scale,
                                   padding=self.padding, groups=self.cat_groups)
        b = gwc_feature.shape[0]
        l_g, r_g = g_8x[:b // 2], g_8x[b // 2:]
        l_c, r_c = c_8x[:b // 2], c_8x[b // 2:]
        D = self.maxdisp // (4 * self.scale)
        g = build_gwc_volume_pallas(l_g, r_g, D, self.num_groups)
        c = build_concat_volume(l_c, r_c, D)
        return jnp.concatenate([g, c], axis=1)


# ---------------------------------------------------------------------------
# Pure-JAX reference (for correctness check only)
# ---------------------------------------------------------------------------
def ref_adaptive_downsample(x, w1, w2, kernel, scale, padding, groups):
    B, C, H, W = x.shape
    k2 = kernel * kernel
    Ho = (H + 2 * padding - kernel) // scale + 1
    Wo = (W + 2 * padding - kernel) // scale + 1
    bn_scale = 1.0 / np.sqrt(1.0 + _BN_EPS)
    y = lax.conv_general_dilated(x, w1, (scale, scale),
                                 [(padding, padding)] * 2,
                                 dimension_numbers=('NCHW', 'OIHW', 'NCHW')) * bn_scale
    y = jnp.where(y > 0, y, 0.1 * y)
    logits = lax.conv_general_dilated(y, w2.reshape(w2.shape[0], w2.shape[1], 1, 1),
                                      (1, 1), [(0, 0), (0, 0)],
                                      dimension_numbers=('NCHW', 'OIHW', 'NCHW'))
    mask = jax.nn.softmax(logits.reshape(B, 1, groups, k2, Ho, Wo), axis=3)
    patches, _, _ = extract_patches_jm(x, kernel, scale, padding)
    rem = patches.reshape(B, Ho, Wo, k2, C).transpose(0, 4, 3, 1, 2)  # (B, C, k2, Ho, Wo)
    rem = rem.reshape(B, C // groups, groups, k2, Ho, Wo)
    out = jnp.sum(mask * rem, axis=3)
    return out.reshape(B, C, Ho, Wo)


def ref_gwc_volume(l, r, maxdisp, num_groups):
    B2, C, H, W = l.shape
    cpg = C // num_groups
    vol = jnp.zeros((B2, num_groups, maxdisp, H, W), jnp.float32)
    for d in range(maxdisp):
        if d == 0:
            corr = (l * r).reshape(B2, num_groups, cpg, H, W).mean(axis=2)
            vol = vol.at[:, :, d].set(corr)
        else:
            corr = (l[..., d:] * r[..., :-d]).reshape(
                B2, num_groups, cpg, H, W - d).mean(axis=2)
            vol = vol.at[:, :, d, :, d:].set(corr)
    return vol


def ref_concat_volume(l, r, maxdisp):
    B2, C, H, W = l.shape
    vol = jnp.zeros((B2, 2 * C, maxdisp, H, W), jnp.float32)
    for d in range(maxdisp):
        if d == 0:
            vol = vol.at[:, :C, d].set(l)
            vol = vol.at[:, C:, d].set(r)
        else:
            vol = vol.at[:, :C, d, :, d:].set(l[..., d:])
            vol = vol.at[:, C:, d, :, d:].set(r[..., :-d])
    return vol


def ref_forward(model, gwc_feature, concat_feature):
    g_8x = ref_adaptive_downsample(gwc_feature, model.gwc_w1, model.gwc_w2,
                                   model.kernel, model.scale, model.padding,
                                   model.gwc_groups)
    c_8x = ref_adaptive_downsample(concat_feature, model.cat_w1, model.cat_w2,
                                   model.kernel, model.scale, model.padding,
                                   model.cat_groups)
    b = gwc_feature.shape[0]
    l_g, r_g = g_8x[:b // 2], g_8x[b // 2:]
    l_c, r_c = c_8x[:b // 2], c_8x[b // 2:]
    D = model.maxdisp // (4 * model.scale)
    g = ref_gwc_volume(l_g, r_g, D, model.num_groups)
    c = ref_concat_volume(l_c, r_c, D)
    return jnp.concatenate([g, c], axis=1)


if __name__ == "__main__":
    # Small config consistent with the module:
    #   gw_channels divisible by 6 (use_group), maxdisp // (4*scale) disparities,
    #   batch even (split into left/right halves).
    gw_channels, cat_channels = 24, 8
    maxdisp, num_groups = 32, 4
    kernel, scale, padding = 3, 2, 1
    B, H, W = 4, 16, 16

    key = jax.random.PRNGKey(0)
    k_g, k_c, k_w = jax.random.split(key, 3)
    gwc_feature = jax.random.normal(k_g, (B, gw_channels, H, W), jnp.float32)
    concat_feature = jax.random.normal(k_c, (B, cat_channels, H, W), jnp.float32)

    model = PreProcessingPallas(gw_channels, cat_channels, maxdisp, num_groups,
                                kernel, scale, padding, k_w)

    fwd = jax.jit(lambda g, c: model(g, c))
    volume = jax.block_until_ready(fwd(gwc_feature, concat_feature))

    # sanity check against a pure-JAX f32 reference of the same math
    expected = jax.block_until_ready(ref_forward(model, gwc_feature, concat_feature))
    assert volume.shape == (B // 2, num_groups + 2 * cat_channels,
                            maxdisp // (4 * scale), H // scale, W // scale), volume.shape
    # bf16 MXU inputs in the Pallas path -> slightly looser tolerance than pure f32
    np.testing.assert_allclose(np.asarray(volume), np.asarray(expected),
                               rtol=3e-2, atol=3e-2)

    print("KERNEL_OK")
</pallas_src>

<mosaic_0001>
module attributes {stable_mosaic.version = 11 : i64} {
  func.func @_adaptive_downsample_kernel(%arg0: i32, %arg1: memref<256x216xbf16, #tpu.memory_space<vmem>>, %arg2: memref<216x48xbf16, #tpu.memory_space<vmem>>, %arg3: memref<48x36xbf16, #tpu.memory_space<vmem>>, %arg4: memref<36x216xf32, #tpu.memory_space<vmem>>, %arg5: memref<216x24xf32, #tpu.memory_space<vmem>>, %arg6: memref<36x24xf32, #tpu.memory_space<vmem>>, %arg7: memref<256x24xf32, #tpu.memory_space<vmem>>) attributes {dimension_semantics = [#tpu.dimension_semantics<parallel>], iteration_bounds = array<i64: 1>, scalar_prefetch = 0 : i64, scratch_operands = 0 : i64, tpu.core_type = #tpu.core_type<tc>, window_params = [{transform_indices = @transform_0, window_bounds = array<i64: 256, 216>}, {pipeline_mode = #tpu.pipeline_mode<synchronous>, transform_indices = @transform_1, window_bounds = array<i64: 216, 48>}, {pipeline_mode = #tpu.pipeline_mode<synchronous>, transform_indices = @transform_2, window_bounds = array<i64: 48, 36>}, {pipeline_mode = #tpu.pipeline_mode<synchronous>, transform_indices = @transform_3, window_bounds = array<i64: 36, 216>}, {pipeline_mode = #tpu.pipeline_mode<synchronous>, transform_indices = @transform_4, window_bounds = array<i64: 216, 24>}, {pipeline_mode = #tpu.pipeline_mode<synchronous>, transform_indices = @transform_5, window_bounds = array<i64: 36, 24>}, {transform_indices = @transform_6, window_bounds = array<i64: 256, 24>}]} {
    %c0 = arith.constant 0 : index
    %c0_0 = arith.constant 0 : index
    %0 = vector.load %arg1[%c0, %c0_0] : memref<256x216xbf16, #tpu.memory_space<vmem>>, vector<256x216xbf16>
    %c0_1 = arith.constant 0 : index
    %c0_2 = arith.constant 0 : index
    %1 = vector.load %arg2[%c0_1, %c0_2] : memref<216x48xbf16, #tpu.memory_space<vmem>>, vector<216x48xbf16>
    %cst = arith.constant dense<0.000000e+00> : vector<256x48xf32>
    %2 = tpu.matmul %0, %1, %cst {dimension_numbers = #tpu.dot_dimension_numbers<[1], [0], [0], [1], [0, 0, 1, 1], [], []>} : vector<256x216xbf16>, vector<216x48xbf16>, vector<256x48xf32> -> vector<256x48xf32>
    %cst_3 = arith.constant 0.000000e+00 : f32
    %3 = vector.broadcast %cst_3 : f32 to vector<256x48xf32>
    %4 = arith.cmpf ogt, %2, %3 : vector<256x48xf32>
    %cst_4 = arith.constant 1.000000e-01 : f32
    %5 = vector.broadcast %cst_4 : f32 to vector<256x48xf32>
    %6 = arith.mulf %5, %2 : vector<256x48xf32>
    %7 = arith.select %4, %2, %6 : vector<256x48xi1>, vector<256x48xf32>
    %8 = arith.truncf %7 : vector<256x48xf32> to vector<256x48xbf16>
    %c0_5 = arith.constant 0 : index
    %c0_6 = arith.constant 0 : index
    %9 = vector.load %arg3[%c0_5, %c0_6] : memref<48x36xbf16, #tpu.memory_space<vmem>>, vector<48x36xbf16>
    %cst_7 = arith.constant dense<0.000000e+00> : vector<256x36xf32>
    %10 = tpu.matmul %8, %9, %cst_7 {dimension_numbers = #tpu.dot_dimension_numbers<[1], [0], [0], [1], [0, 0, 1, 1], [], []>} : vector<256x48xbf16>, vector<48x36xbf16>, vector<256x36xf32> -> vector<256x36xf32>
    %cst_8 = arith.constant dense<0xFF800000> : vector<256xf32>
    %11 = vector.multi_reduction <maximumf>, %10, %cst_8 [1] : vector<256x36xf32> to vector<256xf32>
    %12 = vector.shape_cast %11 : vector<256xf32> to vector<256x1xf32>
    %13 = vector.broadcast %12 : vector<256x1xf32> to vector<256x36xf32>
    %14 = arith.subf %10, %13 : vector<256x36xf32>
    %15 = math.exp %14 : vector<256x36xf32>
    %c0_9 = arith.constant 0 : index
    %c0_10 = arith.constant 0 : index
    %16 = vector.load %arg4[%c0_9, %c0_10] : memref<36x216xf32, #tpu.memory_space<vmem>>, vector<36x216xf32>
    %cst_11 = arith.constant dense<0.000000e+00> : vector<256x216xf32>
    %17 = tpu.matmul %15, %16, %cst_11 {dimension_numbers = #tpu.dot_dimension_numbers<[1], [0], [0], [1], [0, 0, 1, 1], [], []>} : vector<256x36xf32>, vector<36x216xf32>, vector<256x216xf32> -> vector<256x216xf32>
    %18 = arith.extf %0 : vector<256x216xbf16> to vector<256x216xf32>
    %19 = arith.mulf %17, %18 : vector<256x216xf32>
    %c0_12 = arith.constant 0 : index
    %c0_13 = arith.constant 0 : index
    %20 = vector.load %arg5[%c0_12, %c0_13] : memref<216x24xf32, #tpu.memory_space<vmem>>, vector<216x24xf32>
    %cst_14 = arith.constant dense<0.000000e+00> : vector<256x24xf32>
    %21 = tpu.matmul %19, %20, %cst_14 {dimension_numbers = #tpu.dot_dimension_numbers<[1], [0], [0], [1], [0, 0, 1, 1], [], []>} : vector<256x216xf32>, vector<216x24xf32>, vector<256x24xf32> -> vector<256x24xf32>
    %c0_15 = arith.constant 0 : index
    %c0_16 = arith.constant 0 : index
    %22 = vector.load %arg6[%c0_15, %c0_16] : memref<36x24xf32, #tpu.memory_space<vmem>>, vector<36x24xf32>
    %cst_17 = arith.constant dense<0.000000e+00> : vector<256x24xf32>
    %23 = tpu.matmul %15, %22, %cst_17 {dimension_numbers = #tpu.dot_dimension_numbers<[1], [0], [0], [1], [0, 0, 1, 1], [], []>} : vector<256x36xf32>, vector<36x24xf32>, vector<256x24xf32> -> vector<256x24xf32>
    %24 = tpu.reciprocal %23 {approx = true} : vector<256x24xf32> -> vector<256x24xf32>
    %25 = arith.mulf %21, %24 : vector<256x24xf32>
    %c0_18 = arith.constant 0 : index
    %c0_19 = arith.constant 0 : index
    %26 = vector.load %arg7[%c0_18, %c0_19] : memref<256x24xf32, #tpu.memory_space<vmem>>, vector<256x24xf32>
    tpu.vector_store %arg7[%c0_18, %c0_19], %25 {strides = array<i32>} : memref<256x24xf32, #tpu.memory_space<vmem>>, vector<256x24xf32>,
    return
  }
  func.func @transform_0(%arg0: i32) -> (i32, i32) {
    %c0_i32 = arith.constant 0 : i32
    %c0_i32_0 = arith.constant 0 : i32
    return %arg0, %c0_i32 : i32, i32
  }
  func.func @transform_1(%arg0: i32) -> (i32, i32) {
    %c0_i32 = arith.constant 0 : i32
    %c0_i32_0 = arith.constant 0 : i32
    %c0_i32_1 = arith.constant 0 : i32
    return %c0_i32, %c0_i32_0 : i32, i32
  }
  func.func @transform_2(%arg0: i32) -> (i32, i32) {
    %c0_i32 = arith.constant 0 : i32
    %c0_i32_0 = arith.constant 0 : i32
    %c0_i32_1 = arith.constant 0 : i32
    return %c0_i32, %c0_i32_0 : i32, i32
  }
  func.func @transform_3(%arg0: i32) -> (i32, i32) {
    %c0_i32 = arith.constant 0 : i32
    %c0_i32_0 = arith.constant 0 : i32
    %c0_i32_1 = arith.constant 0 : i32
    return %c0_i32, %c0_i32_0 : i32, i32
  }
  func.func @transform_4(%arg0: i32) -> (i32, i32) {
    %c0_i32 = arith.constant 0 : i32
    %c0_i32_0 = arith.constant 0 : i32
    %c0_i32_1 = arith.constant 0 : i32
    return %c0_i32, %c0_i32_0 : i32, i32
  }
  func.func @transform_5(%arg0: i32) -> (i32, i32) {
    %c0_i32 = arith.constant 0 : i32
    %c0_i32_0 = arith.constant 0 : i32
    %c0_i32_1 = arith.constant 0 : i32
    return %c0_i32, %c0_i32_0 : i32, i32
  }
  func.func @transform_6(%arg0: i32) -> (i32, i32) {
    %c0_i32 = arith.constant 0 : i32
    %c0_i32_0 = arith.constant 0 : i32
    return %arg0, %c0_i32 : i32, i32
  }
}

module attributes {stable_mosaic.version = 11 : i64} {
  func.func @_gwc_kernel(%arg0: i32, %arg1: i32, %arg2: memref<1x24x8x8xf32, #tpu.memory_space<vmem>>, %arg3: memref<1x24x8x12xf32, #tpu.memory_space<vmem>>, %arg4: memref<1x4x4x8x8xf32, #tpu.memory_space<vmem>>) attributes {dimension_semantics = [#tpu.dimension_semantics<parallel>, #tpu.dimension_semantics<parallel>], iteration_bounds = array<i64: 2, 1>, scalar_prefetch = 0 : i64, scratch_operands = 0 : i64, tpu.core_type = #tpu.core_type<tc>, window_params = [{transform_indices = @transform_0, window_bounds = array<i64: 1, 24, 8, 8>}, {transform_indices = @transform_1, window_bounds = array<i64: 1, 24, 8, 12>}, {transform_indices = @transform_2, window_bounds = array<i64: 1, 4, 4, 8, 8>}]} {
    %c0 = arith.constant 0 : index
    %c0_0 = arith.constant 0 : index
    %c0_1 = arith.constant 0 : index
    %c0_2 = arith.constant 0 : index
    %0 = vector.load %arg2[%c0, %c0_0, %c0_1, %c0_2] : memref<1x24x8x8xf32, #tpu.memory_space<vmem>>, vector<1x24x8x8xf32>
    %1 = vector.shape_cast %0 : vector<1x24x8x8xf32> to vector<24x8x8xf32>
    %c0_3 = arith.constant 0 : index
    %c0_4 = arith.constant 0 : index
    %c0_5 = arith.constant 0 : index
    %c4 = arith.constant 4 : index
    %2 = vector.load %arg3[%c0_3, %c0_4, %c0_5, %c4] : memref<1x24x8x12xf32, #tpu.memory_space<vmem>>, vector<1x24x8x8xf32>
    %3 = vector.shape_cast %2 : vector<1x24x8x8xf32> to vector<24x8x8xf32>
    %4 = arith.mulf %1, %3 : vector<24x8x8xf32>
    %5 = vector.shape_cast %4 : vector<24x8x8xf32> to vector<4x6x8x8xf32>
    %cst = arith.constant dense<0.000000e+00> : vector<4x8x8xf32>
    %6 = vector.multi_reduction <add>, %5, %cst [1] : vector<4x6x8x8xf32> to vector<4x8x8xf32>
    %cst_6 = arith.constant 0.166666672 : f32
    %7 = vector.broadcast %cst_6 : f32 to vector<4x8x8xf32>
    %8 = arith.mulf %6, %7 : vector<4x8x8xf32>
    %c0_7 = arith.constant 0 : index
    %c0_8 = arith.constant 0 : index
    %c0_9 = arith.constant 0 : index
    %c0_10 = arith.constant 0 : index
    %c0_11 = arith.constant 0 : index
    %9 = vector.load %arg4[%c0_7, %c0_8, %c0_9, %c0_10, %c0_11] : memref<1x4x4x8x8xf32, #tpu.memory_space<vmem>>, vector<1x4x1x8x8xf32>
    %10 = vector.shape_cast %9 : vector<1x4x1x8x8xf32> to vector<4x8x8xf32>
    %11 = vector.shape_cast %8 : vector<4x8x8xf32> to vector<1x4x1x8x8xf32>
    tpu.vector_store %arg4[%c0_7, %c0_8, %c0_9, %c0_10, %c0_11], %11 {strides = array<i32>} : memref<1x4x4x8x8xf32, #tpu.memory_space<vmem>>, vector<1x4x1x8x8xf32>,
    %c0_12 = arith.constant 0 : index
    %c0_13 = arith.constant 0 : index
    %c0_14 = arith.constant 0 : index
    %c3 = arith.constant 3 : index
    %12 = vector.load %arg3[%c0_12, %c0_13, %c0_14, %c3] : memref<1x24x8x12xf32, #tpu.memory_space<vmem>>, vector<1x24x8x8xf32>
    %13 = vector.shape_cast %12 : vector<1x24x8x8xf32> to vector<24x8x8xf32>
    %14 = arith.mulf %1, %13 : vector<24x8x8xf32>
    %15 = vector.shape_cast %14 : vector<24x8x8xf32> to vector<4x6x8x8xf32>
    %cst_15 = arith.constant dense<0.000000e+00> : vector<4x8x8xf32>
    %16 = vector.multi_reduction <add>, %15, %cst_15 [1] : vector<4x6x8x8xf32> to vector<4x8x8xf32>
    %cst_16 = arith.constant 0.166666672 : f32
    %17 = vector.broadcast %cst_16 : f32 to vector<4x8x8xf32>
    %18 = arith.mulf %16, %17 : vector<4x8x8xf32>
    %c0_17 = arith.constant 0 : index
    %c0_18 = arith.constant 0 : index
    %c1 = arith.constant 1 : index
    %c0_19 = arith.constant 0 : index
    %c0_20 = arith.constant 0 : index
    %19 = vector.load %arg4[%c0_17, %c0_18, %c1, %c0_19, %c0_20] : memref<1x4x4x8x8xf32, #tpu.memory_space<vmem>>, vector<1x4x1x8x8xf32>
    %20 = vector.shape_cast %19 : vector<1x4x1x8x8xf32> to vector<4x8x8xf32>
    %21 = vector.shape_cast %18 : vector<4x8x8xf32> to vector<1x4x1x8x8xf32>
    tpu.vector_store %arg4[%c0_17, %c0_18, %c1, %c0_19, %c0_20], %21 {strides = array<i32>} : memref<1x4x4x8x8xf32, #tpu.memory_space<vmem>>, vector<1x4x1x8x8xf32>,
    %c0_21 = arith.constant 0 : index
    %c0_22 = arith.constant 0 : index
    %c0_23 = arith.constant 0 : index
    %c2 = arith.constant 2 : index
    %22 = vector.load %arg3[%c0_21, %c0_22, %c0_23, %c2] : memref<1x24x8x12xf32, #tpu.memory_space<vmem>>, vector<1x24x8x8xf32>
    %23 = vector.shape_cast %22 : vector<1x24x8x8xf32> to vector<24x8x8xf32>
    %24 = arith.mulf %1, %23 : vector<24x8x8xf32>
    %25 = vector.shape_cast %24 : vector<24x8x8xf32> to vector<4x6x8x8xf32>
    %cst_24 = arith.constant dense<0.000000e+00> : vector<4x8x8xf32>
    %26 = vector.multi_reduction <add>, %25, %cst_24 [1] : vector<4x6x8x8xf32> to vector<4x8x8xf32>
    %cst_25 = arith.constant 0.166666672 : f32
    %27 = vector.broadcast %cst_25 : f32 to vector<4x8x8xf32>
    %28 = arith.mulf %26, %27 : vector<4x8x8xf32>
    %c0_26 = arith.constant 0 : index
    %c0_27 = arith.constant 0 : index
    %c2_28 = arith.constant 2 : index
    %c0_29 = arith.constant 0 : index
    %c0_30 = arith.constant 0 : index
    %29 = vector.load %arg4[%c0_26, %c0_27, %c2_28, %c0_29, %c0_30] : memref<1x4x4x8x8xf32, #tpu.memory_space<vmem>>, vector<1x4x1x8x8xf32>
    %30 = vector.shape_cast %29 : vector<1x4x1x8x8xf32> to vector<4x8x8xf32>
    %31 = vector.shape_cast %28 : vector<4x8x8xf32> to vector<1x4x1x8x8xf32>
    tpu.vector_store %arg4[%c0_26, %c0_27, %c2_28, %c0_29, %c0_30], %31 {strides = array<i32>} : memref<1x4x4x8x8xf32, #tpu.memory_space<vmem>>, vector<1x4x1x8x8xf32>,
    %c0_31 = arith.constant 0 : index
    %c0_32 = arith.constant 0 : index
    %c0_33 = arith.constant 0 : index
    %c1_34 = arith.constant 1 : index
    %32 = vector.load %arg3[%c0_31, %c0_32, %c0_33, %c1_34] : memref<1x24x8x12xf32, #tpu.memory_space<vmem>>, vector<1x24x8x8xf32>
    %33 = vector.shape_cast %32 : vector<1x24x8x8xf32> to vector<24x8x8xf32>
    %34 = arith.mulf %1, %33 : vector<24x8x8xf32>
    %35 = vector.shape_cast %34 : vector<24x8x8xf32> to vector<4x6x8x8xf32>
    %cst_35 = arith.constant dense<0.000000e+00> : vector<4x8x8xf32>
    %36 = vector.multi_reduction <add>, %35, %cst_35 [1] : vector<4x6x8x8xf32> to vector<4x8x8xf32>
    %cst_36 = arith.constant 0.166666672 : f32
    %37 = vector.broadcast %cst_36 : f32 to vector<4x8x8xf32>
    %38 = arith.mulf %36, %37 : vector<4x8x8xf32>
    %c0_37 = arith.constant 0 : index
    %c0_38 = arith.constant 0 : index
    %c3_39 = arith.constant 3 : index
    %c0_40 = arith.constant 0 : index
    %c0_41 = arith.constant 0 : index
    %39 = vector.load %arg4[%c0_37, %c0_38, %c3_39, %c0_40, %c0_41] : memref<1x4x4x8x8xf32, #tpu.memory_space<vmem>>, vector<1x4x1x8x8xf32>
    %40 = vector.shape_cast %39 : vector<1x4x1x8x8xf32> to vector<4x8x8xf32>
    %41 = vector.shape_cast %38 : vector<4x8x8xf32> to vector<1x4x1x8x8xf32>
    tpu.vector_store %arg4[%c0_37, %c0_38, %c3_39, %c0_40, %c0_41], %41 {strides = array<i32>} : memref<1x4x4x8x8xf32, #tpu.memory_space<vmem>>, vector<1x4x1x8x8xf32>,
    return
  }
  func.func @transform_0(%arg0: i32, %arg1: i32) -> (i32, i32, i32, i32) {
    %c0_i32 = arith.constant 0 : i32
    %c0_i32_0 = arith.constant 0 : i32
    %c0_i32_1 = arith.constant 0 : i32
    return %arg0, %c0_i32, %arg1, %c0_i32_0 : i32, i32, i32, i32
  }
  func.func @transform_1(%arg0: i32, %arg1: i32) -> (i32, i32, i32, i32) {
    %c0_i32 = arith.constant 0 : i32
    %c0_i32_0 = arith.constant 0 : i32
    %c0_i32_1 = arith.constant 0 : i32
    return %arg0, %c0_i32, %arg1, %c0_i32_0 : i32, i32, i32, i32
  }
  func.func @transform_2(%arg0: i32, %arg1: i32) -> (i32, i32, i32, i32, i32) {
    %c0_i32 = arith.constant 0 : i32
    %c0_i32_0 = arith.constant 0 : i32
    %c0_i32_1 = arith.constant 0 : i32
    %c0_i32_2 = arith.constant 0 : i32
    return %arg0, %c0_i32, %c0_i32_0, %arg1, %c0_i32_1 : i32, i32, i32, i32, i32
  }
}

module attributes {stable_mosaic.version = 11 : i64} {
  func.func @_adaptive_downsample_kernel(%arg0: i32, %arg1: memref<256x72xbf16, #tpu.memory_space<vmem>>, %arg2: memref<72x16xbf16, #tpu.memory_space<vmem>>, %arg3: memref<16x72xbf16, #tpu.memory_space<vmem>>, %arg4: memref<72x72xf32, #tpu.memory_space<vmem>>, %arg5: memref<72x8xf32, #tpu.memory_space<vmem>>, %arg6: memref<72x8xf32, #tpu.memory_space<vmem>>, %arg7: memref<256x8xf32, #tpu.memory_space<vmem>>) attributes {dimension_semantics = [#tpu.dimension_semantics<parallel>], iteration_bounds = array<i64: 1>, scalar_prefetch = 0 : i64, scratch_operands = 0 : i64, tpu.core_type = #tpu.core_type<tc>, window_params = [{transform_indices = @transform_0, window_bounds = array<i64: 256, 72>}, {pipeline_mode = #tpu.pipeline_mode<synchronous>, transform_indices = @transform_1, window_bounds = array<i64: 72, 16>}, {pipeline_mode = #tpu.pipeline_mode<synchronous>, transform_indices = @transform_2, window_bounds = array<i64: 16, 72>}, {pipeline_mode = #tpu.pipeline_mode<synchronous>, transform_indices = @transform_3, window_bounds = array<i64: 72, 72>}, {pipeline_mode = #tpu.pipeline_mode<synchronous>, transform_indices = @transform_4, window_bounds = array<i64: 72, 8>}, {pipeline_mode = #tpu.pipeline_mode<synchronous>, transform_indices = @transform_5, window_bounds = array<i64: 72, 8>}, {transform_indices = @transform_6, window_bounds = array<i64: 256, 8>}]} {
    %c0 = arith.constant 0 : index
    %c0_0 = arith.constant 0 : index
    %0 = vector.load %arg1[%c0, %c0_0] : memref<256x72xbf16, #tpu.memory_space<vmem>>, vector<256x72xbf16>
    %c0_1 = arith.constant 0 : index
    %c0_2 = arith.constant 0 : index
    %1 = vector.load %arg2[%c0_1, %c0_2] : memref<72x16xbf16, #tpu.memory_space<vmem>>, vector<72x16xbf16>
    %cst = arith.constant dense<0.000000e+00> : vector<256x16xf32>
    %2 = tpu.matmul %0, %1, %cst {dimension_numbers = #tpu.dot_dimension_numbers<[1], [0], [0], [1], [0, 0, 1, 1], [], []>} : vector<256x72xbf16>, vector<72x16xbf16>, vector<256x16xf32> -> vector<256x16xf32>
    %cst_3 = arith.constant 0.000000e+00 : f32
    %3 = vector.broadcast %cst_3 : f32 to vector<256x16xf32>
    %4 = arith.cmpf ogt, %2, %3 : vector<256x16xf32>
    %cst_4 = arith.constant 1.000000e-01 : f32
    %5 = vector.broadcast %cst_4 : f32 to vector<256x16xf32>
    %6 = arith.mulf %5, %2 : vector<256x16xf32>
    %7 = arith.select %4, %2, %6 : vector<256x16xi1>, vector<256x16xf32>
    %8 = arith.truncf %7 : vector<256x16xf32> to vector<256x16xbf16>
    %c0_5 = arith.constant 0 : index
    %c0_6 = arith.constant 0 : index
    %9 = vector.load %arg3[%c0_5, %c0_6] : memref<16x72xbf16, #tpu.memory_space<vmem>>, vector<16x72xbf16>
    %cst_7 = arith.constant dense<0.000000e+00> : vector<256x72xf32>
    %10 = tpu.matmul %8, %9, %cst_7 {dimension_numbers = #tpu.dot_dimension_numbers<[1], [0], [0], [1], [0, 0, 1, 1], [], []>} : vector<256x16xbf16>, vector<16x72xbf16>, vector<256x72xf32> -> vector<256x72xf32>
    %cst_8 = arith.constant dense<0xFF800000> : vector<256xf32>
    %11 = vector.multi_reduction <maximumf>, %10, %cst_8 [1] : vector<256x72xf32> to vector<256xf32>
    %12 = vector.shape_cast %11 : vector<256xf32> to vector<256x1xf32>
    %13 = vector.broadcast %12 : vector<256x1xf32> to vector<256x72xf32>
    %14 = arith.subf %10, %13 : vector<256x72xf32>
    %15 = math.exp %14 : vector<256x72xf32>
    %c0_9 = arith.constant 0 : index
    %c0_10 = arith.constant 0 : index
    %16 = vector.load %arg4[%c0_9, %c0_10] : memref<72x72xf32, #tpu.memory_space<vmem>>, vector<72x72xf32>
    %cst_11 = arith.constant dense<0.000000e+00> : vector<256x72xf32>
    %17 = tpu.matmul %15, %16, %cst_11 {dimension_numbers = #tpu.dot_dimension_numbers<[1], [0], [0], [1], [0, 0, 1, 1], [], []>} : vector<256x72xf32>, vector<72x72xf32>, vector<256x72xf32> -> vector<256x72xf32>
    %18 = arith.extf %0 : vector<256x72xbf16> to vector<256x72xf32>
    %19 = arith.mulf %17, %18 : vector<256x72xf32>
    %c0_12 = arith.constant 0 : index
    %c0_13 = arith.constant 0 : index
    %20 = vector.load %arg5[%c0_12, %c0_13] : memref<72x8xf32, #tpu.memory_space<vmem>>, vector<72x8xf32>
    %cst_14 = arith.constant dense<0.000000e+00> : vector<256x8xf32>
    %21 = tpu.matmul %19, %20, %cst_14 {dimension_numbers = #tpu.dot_dimension_numbers<[1], [0], [0], [1], [0, 0, 1, 1], [], []>} : vector<256x72xf32>, vector<72x8xf32>, vector<256x8xf32> -> vector<256x8xf32>
    %c0_15 = arith.constant 0 : index
    %c0_16 = arith.constant 0 : index
    %22 = vector.load %arg6[%c0_15, %c0_16] : memref<72x8xf32, #tpu.memory_space<vmem>>, vector<72x8xf32>
    %cst_17 = arith.constant dense<0.000000e+00> : vector<256x8xf32>
    %23 = tpu.matmul %15, %22, %cst_17 {dimension_numbers = #tpu.dot_dimension_numbers<[1], [0], [0], [1], [0, 0, 1, 1], [], []>} : vector<256x72xf32>, vector<72x8xf32>, vector<256x8xf32> -> vector<256x8xf32>
    %24 = tpu.reciprocal %23 {approx = true} : vector<256x8xf32> -> vector<256x8xf32>
    %25 = arith.mulf %21, %24 : vector<256x8xf32>
    %c0_18 = arith.constant 0 : index
    %c0_19 = arith.constant 0 : index
    %26 = vector.load %arg7[%c0_18, %c0_19] : memref<256x8xf32, #tpu.memory_space<vmem>>, vector<256x8xf32>
    tpu.vector_store %arg7[%c0_18, %c0_19], %25 {strides = array<i32>} : memref<256x8xf32, #tpu.memory_space<vmem>>, vector<256x8xf32>,
    return
  }
  func.func @transform_0(%arg0: i32) -> (i32, i32) {
    %c0_i32 = arith.constant 0 : i32
    %c0_i32_0 = arith.constant 0 : i32
    return %arg0, %c0_i32 : i32, i32
  }
  func.func @transform_1(%arg0: i32) -> (i32, i32) {
    %c0_i32 = arith.constant 0 : i32
    %c0_i32_0 = arith.constant 0 : i32
    %c0_i32_1 = arith.constant 0 : i32
    return %c0_i32, %c0_i32_0 : i32, i32
  }
  func.func @transform_2(%arg0: i32) -> (i32, i32) {
    %c0_i32 = arith.constant 0 : i32
    %c0_i32_0 = arith.constant 0 : i32
    %c0_i32_1 = arith.constant 0 : i32
    return %c0_i32, %c0_i32_0 : i32, i32
  }
  func.func @transform_3(%arg0: i32) -> (i32, i32) {
    %c0_i32 = arith.constant 0 : i32
    %c0_i32_0 = arith.constant 0 : i32
    %c0_i32_1 = arith.constant 0 : i32
    return %c0_i32, %c0_i32_0 : i32, i32
  }
  func.func @transform_4(%arg0: i32) -> (i32, i32) {
    %c0_i32 = arith.constant 0 : i32
    %c0_i32_0 = arith.constant 0 : i32
    %c0_i32_1 = arith.constant 0 : i32
    return %c0_i32, %c0_i32_0 : i32, i32
  }
  func.func @transform_5(%arg0: i32) -> (i32, i32) {
    %c0_i32 = arith.constant 0 : i32
    %c0_i32_0 = arith.constant 0 : i32
    %c0_i32_1 = arith.constant 0 : i32
    return %c0_i32, %c0_i32_0 : i32, i32
  }
  func.func @transform_6(%arg0: i32) -> (i32, i32) {
    %c0_i32 = arith.constant 0 : i32
    %c0_i32_0 = arith.constant 0 : i32
    return %arg0, %c0_i32 : i32, i32
  }
}

</mosaic_0001>

<bundles_post_ra>
// kernel: _lambda_.3
= control target key start
LH: loop header
LB: loop body
LE: loop exit
PB: predicated region body
PF: predicated region fallthrough
CT: control target
= control target key end

     0   :  { %v2837_v0 = vmov 0   ;;  %vm308_vm0 = vcmask 719872   ;;  %vm357_vm1 = vcmask 1043456   ;;  %vm658_vm4 = vcmask 392192   ;;  %s4046_s1 = inlined_call_operand.vmem [shape: bf16[216,48], index: 1, kind: input, shape index: {}]   ;;  %s4047_s0 = inlined_call_operand.vmem [shape: bf16[256,216], index: 0, kind: input, shape index: {}]   ;;  %s4048_s2 = inlined_call_operand.vmem [shape: bf16[48,36], index: 2, kind: input, shape index: {}]   ;;  %s4049_s3 = inlined_call_operand.vmem [shape: f32[36,216], index: 3, kind: input, shape index: {}]   ;;  %s4050_s4 = inlined_call_operand.vmem [shape: f32[216,24], index: 4, kind: input, shape index: {}]   ;;  %s4051_s5 = inlined_call_operand.vmem [shape: f32[36,24], index: 5, kind: input, shape index: {}]   ;;  %s4052_s6 = inlined_call_operand.vmem [shape: f32[256,24], index: 6, kind: output, shape index: {}]  }
   0x1   :  { %361 = vmatprep.subr.bf16.mxu0 %v2837_v0  ;;  %v2628_v1 = vld [vmem:[%s4046_s1 + $0x38] sm:$0xff]   ;;  %v2629_v2 = vld [vmem:[%s4046_s1 + $0x30] sm:$0xff]   ;;  %v2630_v3 = vld [vmem:[%s4046_s1 + $0x28] sm:$0xff]  }
   0x2   :  { %362 = vmatpush1.bf16.msra.mxu0 %v2628_v1  ;;  %v2631_v4 = vld [vmem:[%s4046_s1 + $0x20] sm:$0xff]   ;;  %v2632_v6 = vld [vmem:[%s4046_s1 + $0x18] sm:$0xff]   ;;  %v25_v7 = vld [vmem:[%s4047_s0 + $0x8] sm:$0xff] }
   0x3   :  { %363 = vmatprep.subr.bf16.mxu0 %v2837_v0  ;;  %v24_v5 = vld [vmem:[%s4047_s0] sm:$0xff]  ;;  %v2633_v9 = vld [vmem:[%s4046_s1 + $0x10] sm:$0xff]   ;;  %v2634_v10 = vld [vmem:[%s4046_s1 + $0x8] sm:$0xff]  }
   0x4   :  { %v2241_v8 = vcombine.high %v24_v5, %v25_v7  ;;  %v2635_v11 = vld [vmem:[%s4046_s1] sm:$0xff]   ;;  %v2636_v12 = vld [vmem:[%s4046_s1 + $0x68] ss:$0 sps:$4 sm:$0xff]   ;;  %v2638_v15 = vld [vmem:[%s4046_s1 + $0x58] sm:$0xff]   ;;  %v2240_v21 = vcombine.low %v24_v5, %v25_v7 }
   0x5   :  { %v359_v13 = vsel %vm357_vm1, %v2636_v12, 0  ;;  %v2637_v14 = vld [vmem:[%s4046_s1 + $0x60] sm:$0xff]   ;;  %v2639_v16 = vld [vmem:[%s4046_s1 + $0x50] sm:$0xff]   ;;  %v2640_v17 = vld [vmem:[%s4046_s1 + $0x48] sm:$0xff]  }
   0x6   :  { %364 = vmatpush1.bf16.msra.mxu0 %v2629_v2  ;;  %2286 = vmatprep.mubr.msk.bf16.mxu0 %vm308_vm0, %v2241_v8  ;;  %v2641_v18 = vld [vmem:[%s4046_s1 + $0x40] sm:$0xff]   ;;  %v26_v19 = vld [vmem:[%s4047_s0 + $0x10] sm:$0xff]  ;;  %v27_v20 = vld [vmem:[%s4047_s0 + $0x18] sm:$0xff] }
   0x7   :  { %365 = vmatprep.subr.bf16.mxu0 %v2837_v0  ;;  %v2243_v22 = vcombine.high %v26_v19, %v27_v20  ;;  %v28_v23 = vld [vmem:[%s4047_s0 + $0x20] sm:$0xff]  ;;  %v29_v24 = vld [vmem:[%s4047_s0 + $0x28] sm:$0xff]  ;;  %v2242_v25 = vcombine.low %v26_v19, %v27_v20  ;;  %v30_v27 = vld [vmem:[%s4047_s0 + $0x30] sm:$0xff] }
   0x8   :  { %v2245_v26 = vcombine.high %v28_v23, %v29_v24  ;;  %v31_v28 = vld [vmem:[%s4047_s0 + $0x38] sm:$0xff]  ;;  %v2244_v29 = vcombine.low %v28_v23, %v29_v24  ;;  %v32_v31 = vld [vmem:[%s4047_s0 + $0x40] sm:$0xff]  ;;  %v33_v32 = vld [vmem:[%s4047_s0 + $0x48] sm:$0xff] }
   0x9   :  { %v2247_v30 = vcombine.high %v30_v27, %v31_v28  ;;  %v2246_v33 = vcombine.low %v30_v27, %v31_v28  ;;  %v2249_v34 = vcombine.high %v32_v31, %v33_v32  ;;  %v34_v35 = vld [vmem:[%s4047_s0 + $0x50] sm:$0xff]  ;;  %v35_v36 = vld [vmem:[%s4047_s0 + $0x58] sm:$0xff]  ;;  %v2248_v37 = vcombine.low %v32_v31, %v33_v32  ;;  %v36_v39 = vld [vmem:[%s4047_s0 + $0x60] sm:$0xff] }
   0xa   :  { %366 = vmatpush1.bf16.msra.mxu0 %v2630_v3  ;;  %v2251_v38 = vcombine.high %v34_v35, %v35_v36  ;;  %v37_v40 = vld [vmem:[%s4047_s0 + $0x68] sm:$0xff]  ;;  %v2250_v41 = vcombine.low %v34_v35, %v35_v36  ;;  %v38_v43 = vld [vmem:[%s4047_s0 + $0x70] sm:$0xff]  ;;  %v39_v44 = vld [vmem:[%s4047_s0 + $0x78] sm:$0xff] }
   0xb   :  { %367 = vmatprep.subr.bf16.mxu0 %v2837_v0  ;;  %v2253_v42 = vcombine.high %v36_v39, %v37_v40  ;;  %v2252_v45 = vcombine.low %v36_v39, %v37_v40  ;;  %v2255_v46 = vcombine.high %v38_v43, %v39_v44  ;;  %v40_v47 = vld [vmem:[%s4047_s0 + $0x80] sm:$0xff]  ;;  %v41_v48 = vld [vmem:[%s4047_s0 + $0x88] sm:$0xff]  ;;  %v2254_v49 = vcombine.low %v38_v43, %v39_v44  ;;  %v42_v51 = vld [vmem:[%s4047_s0 + $0x90] sm:$0xff] }
   0xc   :  { %v2257_v50 = vcombine.high %v40_v47, %v41_v48  ;;  %v43_v52 = vld [vmem:[%s4047_s0 + $0x98] sm:$0xff]  ;;  %v2256_v53 = vcombine.low %v40_v47, %v41_v48  ;;  %v44_v55 = vld [vmem:[%s4047_s0 + $0xa0] sm:$0xff]  ;;  %v45_v56 = vld [vmem:[%s4047_s0 + $0xa8] sm:$0xff] }
   0xd   :  { %v2259_v54 = vcombine.high %v42_v51, %v43_v52  ;;  %v2258_v57 = vcombine.low %v42_v51, %v43_v52  ;;  %v2674_v58 = vld [vmem:[%s4048_s2 + $0x10] sm:$0xff]   ;;  %v2261_v59 = vcombine.high %v44_v55, %v45_v56  ;;  %v2675_v60 = vld [vmem:[%s4048_s2 + $0x8] sm:$0xff]   ;;  %v47_v62 = vld [vmem:[%s4047_s0 + $0xb8] sm:$0xff]  ;;  %v2260_v63 = vcombine.low %v44_v55, %v45_v56 }
   0xe   :  { %368 = vmatpush1.bf16.msra.mxu0 %v2631_v4  ;;  %2476 = vmatprep.subr.bf16.mxu1 %v2674_v58  ;;  %v46_v61 = vld [vmem:[%s4047_s0 + $0xb0] sm:$0xff]  ;;  %v48_v2 = vld [vmem:[%s4047_s0 + $0xc0] sm:$0xff]  ;;  %v49_v3 = vld [vmem:[%s4047_s0 + $0xc8] sm:$0xff] }
   0xf   :  { %369 = vmatprep.subr.bf16.mxu0 %v2837_v0  ;;  %2477 = vmatpush3.bf16.msra.mxu1 %v2674_v58  ;;  %v2263_v1 = vcombine.high %v46_v61, %v47_v62  ;;  %v2262_v4 = vcombine.low %v46_v61, %v47_v62  ;;  %v2265_v5 = vcombine.high %v48_v2, %v49_v3  ;;  %v51_v7 = vld [vmem:[%s4047_s0 + $0xd8] sm:$0xff] }
  0x10   :  { %2478 = vmatprep.subr.bf16.mxu1 %v2675_v60  ;;  %v2264_v8 = vcombine.low %v48_v2, %v49_v3 }
  0x12   :  { %370 = vmatpush1.bf16.msra.mxu0 %v2632_v6  ;;  %v50_v6 = vld [vmem:[%s4047_s0 + $0xd0] sm:$0xff] }
  0x13   :  { %371 = vmatprep.subr.bf16.mxu0 %v2837_v0  ;;  %2479 = vmatpush3.bf16.msra.mxu1 %v2675_v60  ;;  %v2266_v12 = vcombine.low %v50_v6, %v51_v7 }
  0x16   :  { %372 = vmatpush1.bf16.msra.mxu0 %v2633_v9  ;;  %v2267_v9 = vcombine.high %v50_v6, %v51_v7 }
  0x17   :  { %373 = vmatprep.subr.bf16.mxu0 %v2837_v0 }
  0x1a   :  { %374 = vmatpush1.bf16.msra.mxu0 %v2634_v10  ;;  %v52_v10 = vld [vmem:[%s4047_s0 + $0xe0] sm:$0xff] }
  0x1b   :  { %375 = vmatprep.subr.bf16.mxu0 %v2837_v0 }
  0x1e   :  { %376 = vmatpush1.bf16.msra.mxu0 %v2635_v11  ;;  %v53_v11 = vld [vmem:[%s4047_s0 + $0xe8] sm:$0xff] }
  0x1f   :  { %381 = vmatprep.subr.bf16.mxu0 %v2837_v0 }
  0x22   :  { %382 = vmatpush2.bf16.msra.mxu0 %v359_v13  ;;  %v2269_v13 = vcombine.high %v52_v10, %v53_v11 }
  0x23   :  { %383 = vmatprep.subr.bf16.mxu0 %v2837_v0 }
  0x26   :  { %384 = vmatpush2.bf16.msra.mxu0 %v2637_v14  ;;  %v54_v14 = vld [vmem:[%s4047_s0 + $0xf0] sm:$0xff] }
  0x27   :  { %385 = vmatprep.subr.bf16.mxu0 %v2837_v0 }
  0x2a   :  { %386 = vmatpush2.bf16.msra.mxu0 %v2638_v15  ;;  %v55_v15 = vld [vmem:[%s4047_s0 + $0xf8] sm:$0xff] }
  0x2b   :  { %387 = vmatprep.subr.bf16.mxu0 %v2837_v0 }
  0x2e   :  { %388 = vmatpush2.bf16.msra.mxu0 %v2639_v16  ;;  %v2268_v16 = vcombine.low %v52_v10, %v53_v11 }
  0x2f   :  { %389 = vmatprep.subr.bf16.mxu0 %v2837_v0 }
  0x32   :  { %390 = vmatpush2.bf16.msra.mxu0 %v2640_v17  ;;  %v2271_v17 = vcombine.high %v54_v14, %v55_v15 }
  0x33   :  { %391 = vmatprep.subr.bf16.mxu0 %v2837_v0  ;;  %v2676_v0 = vld [vmem:[%s4048_s2] sm:$0xff]  }
  0x34   :  { %2480 = vmatprep.subr.bf16.mxu1 %v2676_v0 }
  0x35   :  { %2481 = vmatpush3.bf16.msra.mxu1 %v2676_v0 }
  0x36   :  { %392 = vmatpush2.bf16.msra.mxu0 %v2641_v18  ;;  %v2270_v18 = vcombine.low %v54_v14, %v55_v15 }
  0x39   :  { %394 = vmatmul.mubr.bf16.vlgmr.msra.gmra.mxu0 %v2240_v21 }
  0x3a   :  { %2287 = vmatprep.mubr.msk.bf16.mxu0 %vm308_vm0, %v2243_v22 }
  0x41   :  { %402 = vmatmul.mubr.bf16.gmra.mxu0 %v2242_v25 }
  0x42   :  { %2288 = vmatprep.mubr.msk.bf16.mxu0 %vm308_vm0, %v2245_v26 }
  0x49   :  { %410 = vmatmul.mubr.bf16.gmra.mxu0 %v2244_v29 }
  0x4a   :  { %2289 = vmatprep.mubr.msk.bf16.mxu0 %vm308_vm0, %v2247_v30 }
  0x51   :  { %418 = vmatmul.mubr.bf16.gmra.mxu0 %v2246_v33 }
  0x52   :  { %2290 = vmatprep.mubr.msk.bf16.mxu0 %vm308_vm0, %v2249_v34 }
  0x59   :  { %426 = vmatmul.mubr.bf16.gmra.mxu0 %v2248_v37 }
  0x5a   :  { %2291 = vmatprep.mubr.msk.bf16.mxu0 %vm308_vm0, %v2251_v38 }
  0x61   :  { %434 = vmatmul.mubr.bf16.gmra.mxu0 %v2250_v41 }
  0x62   :  { %2292 = vmatprep.mubr.msk.bf16.mxu0 %vm308_vm0, %v2253_v42 }
  0x69   :  { %442 = vmatmul.mubr.bf16.gmra.mxu0 %v2252_v45 }
  0x6a   :  { %2293 = vmatprep.mubr.msk.bf16.mxu0 %vm308_vm0, %v2255_v46 }
  0x71   :  { %450 = vmatmul.mubr.bf16.gmra.mxu0 %v2254_v49 }
  0x72   :  { %2294 = vmatprep.mubr.msk.bf16.mxu0 %vm308_vm0, %v2257_v50 }
  0x79   :  { %458 = vmatmul.mubr.bf16.gmra.mxu0 %v2256_v53 }
  0x7a   :  { %2295 = vmatprep.mubr.msk.bf16.mxu0 %vm308_vm0, %v2259_v54 }
  0x81   :  { %466 = vmatmul.mubr.bf16.gmra.mxu0 %v2258_v57 }
  0x82   :  { %2296 = vmatprep.mubr.msk.bf16.mxu0 %vm308_vm0, %v2261_v59 }
  0x89   :  { %474 = vmatmul.mubr.bf16.gmra.mxu0 %v2260_v63 }
  0x8a   :  { %2297 = vmatprep.mubr.msk.bf16.mxu0 %vm308_vm0, %v2263_v1 }
  0x91   :  { %482 = vmatmul.mubr.bf16.gmra.mxu0 %v2262_v4 }
  0x92   :  { %2298 = vmatprep.mubr.msk.bf16.mxu0 %vm308_vm0, %v2265_v5 }
  0x99   :  { %490 = vmatmul.mubr.bf16.gmra.mxu0 %v2264_v8 }
  0x9a   :  { %2299 = vmatprep.mubr.msk.bf16.mxu0 %vm308_vm0, %v2267_v9 }
  0xa1   :  { %498 = vmatmul.mubr.bf16.gmra.mxu0 %v2266_v12 }
  0xa2   :  { %2300 = vmatprep.mubr.msk.bf16.mxu0 %vm308_vm0, %v2269_v13 }
  0xa9   :  { %506 = vmatmul.mubr.bf16.gmra.mxu0 %v2268_v16 }
  0xaa   :  { %2301 = vmatprep.mubr.msk.bf16.mxu0 %vm308_vm0, %v2271_v17 }
  0xb1   :  { %514 = vmatmul.mubr.bf16.gmra.mxu0 %v2270_v18 }
  0xf9   :  { %v395_v19 = vpop.f32.mrf.mxu0 }
  0xfa   :  { %v554_v21 = vmul.f32 0.1, %v395_v19  ;;  %vm522_vm2 = vcmp.gt.f32.partialorder %v395_v19, 0.0 }
  0xfb   :  { %v397_v20 = vpop.f32.mrf.mxu0 }
  0xfc   :  { %v586_v25 = vsel %vm522_vm2, %v395_v19, %v554_v21 }
  0xfd   :  { %v398_v22 = vpop.f32.mrf.mxu0 }
  0xfe   :  { %vm523_vm3 = vcmp.gt.f32.partialorder %v398_v22, 0.0  ;;  %v555_v23 = vmul.f32 0.1, %v398_v22 }
  0xff   :  { %v400_v24 = vpop.f32.mrf.mxu0 }
 0x100   :  { %v587_v26 = vsel %vm523_vm3, %v398_v22, %v555_v23 }
 0x101   :  { %v403_v27 = vpop.f32.mrf.mxu0  ;;  %v618_v28 = vpack.c.bf16 %v587_v26, %v586_v25 }
 0x102   :  { %v556_v30 = vmul.f32 0.1, %v403_v27  ;;  %vm524_vm5 = vcmp.gt.f32.partialorder %v403_v27, 0.0 }
 0x103   :  { %v405_v29 = vpop.f32.mrf.mxu0  ;;  %2482 = vmatprep.mubr.msk.bf16.mxu1 %vm658_vm4, %v618_v28 }
 0x104   :  { %v588_v34 = vsel %vm524_vm5, %v403_v27, %v556_v30 }
 0x105   :  { %v406_v31 = vpop.f32.mrf.mxu0 }
 0x106   :  { %vm525_vm6 = vcmp.gt.f32.partialorder %v406_v31, 0.0  ;;  %v557_v32 = vmul.f32 0.1, %v406_v31 }
 0x107   :  { %v408_v33 = vpop.f32.mrf.mxu0 }
 0x108   :  { %v589_v35 = vsel %vm525_vm6, %v406_v31, %v557_v32 }
 0x109   :  { %v619_v36 = vpack.c.bf16 %v589_v35, %v588_v34  ;;  %v411_v37 = vpop.f32.mrf.mxu0 }
 0x10a   :  { %v558_v39 = vmul.f32 0.1, %v411_v37  ;;  %vm526_vm7 = vcmp.gt.f32.partialorder %v411_v37, 0.0 }
 0x10b   :  { %v413_v38 = vpop.f32.mrf.mxu0  ;;  %2483 = vmatmul.mubr.msk.bf16.vlgmr.msra.gmra.mxu1 %vm658_vm4, %v619_v36 }
 0x10c   :  { %v590_v43 = vsel %vm526_vm7, %v411_v37, %v558_v39 }
 0x10d   :  { %v414_v40 = vpop.f32.mrf.mxu0 }
 0x10e   :  { %vm527_vm8 = vcmp.gt.f32.partialorder %v414_v40, 0.0  ;;  %v559_v41 = vmul.f32 0.1, %v414_v40 }
 0x10f   :  { %v416_v42 = vpop.f32.mrf.mxu0 }
 0x110   :  { %v591_v44 = vsel %vm527_vm8, %v414_v40, %v559_v41 }
 0x111   :  { %v620_v45 = vpack.c.bf16 %v591_v44, %v590_v43  ;;  %v419_v46 = vpop.f32.mrf.mxu0 }
 0x112   :  { %v560_v48 = vmul.f32 0.1, %v419_v46  ;;  %vm528_vm9 = vcmp.gt.f32.partialorder %v419_v46, 0.0 }
 0x113   :  { %v421_v47 = vpop.f32.mrf.mxu0  ;;  %2486 = vmatprep.mubr.msk.bf16.mxu1 %vm658_vm4, %v620_v45 }
 0x114   :  { %v592_v52 = vsel %vm528_vm9, %v419_v46, %v560_v48 }
 0x115   :  { %v422_v49 = vpop.f32.mrf.mxu0 }
 0x116   :  { %vm529_vm10 = vcmp.gt.f32.partialorder %v422_v49, 0.0  ;;  %v561_v50 = vmul.f32 0.1, %v422_v49 }
 0x117   :  { %v424_v51 = vpop.f32.mrf.mxu0 }
 0x118   :  { %v593_v53 = vsel %vm529_vm10, %v422_v49, %v561_v50 }
 0x119   :  { %v621_v54 = vpack.c.bf16 %v593_v53, %v592_v52  ;;  %v427_v55 = vpop.f32.mrf.mxu0 }
 0x11a   :  { %v562_v57 = vmul.f32 0.1, %v427_v55  ;;  %vm530_vm11 = vcmp.gt.f32.partialorder %v427_v55, 0.0 }
 0x11b   :  { %v429_v56 = vpop.f32.mrf.mxu0  ;;  %2487 = vmatmul.mubr.msk.bf16.gmra.mxu1 %vm658_vm4, %v621_v54 }
 0x11c   :  { %v594_v61 = vsel %vm530_vm11, %v427_v55, %v562_v57 }
 0x11d   :  { %v430_v58 = vpop.f32.mrf.mxu0 }
 0x11e   :  { %vm531_vm12 = vcmp.gt.f32.partialorder %v430_v58, 0.0  ;;  %v563_v59 = vmul.f32 0.1, %v430_v58 }
 0x11f   :  { %v432_v60 = vpop.f32.mrf.mxu0 }
 0x120   :  { %v595_v62 = vsel %vm531_vm12, %v430_v58, %v563_v59 }
 0x121   :  { %v622_v63 = vpack.c.bf16 %v595_v62, %v594_v61  ;;  %v435_v0 = vpop.f32.mrf.mxu0 }
 0x122   :  { %v564_v2 = vmul.f32 0.1, %v435_v0  ;;  %vm532_vm13 = vcmp.gt.f32.partialorder %v435_v0, 0.0 }
 0x123   :  { %v437_v1 = vpop.f32.mrf.mxu0  ;;  %2490 = vmatprep.mubr.msk.bf16.mxu1 %vm658_vm4, %v622_v63 }
 0x124   :  { %v596_v6 = vsel %vm532_vm13, %v435_v0, %v564_v2 }
 0x125   :  { %v438_v3 = vpop.f32.mrf.mxu0 }
 0x126   :  { %vm533_vm14 = vcmp.gt.f32.partialorder %v438_v3, 0.0  ;;  %v565_v4 = vmul.f32 0.1, %v438_v3 }
 0x127   :  { %v440_v5 = vpop.f32.mrf.mxu0 }
 0x128   :  { %v597_v7 = vsel %vm533_vm14, %v438_v3, %v565_v4 }
 0x129   :  { %v623_v8 = vpack.c.bf16 %v597_v7, %v596_v6  ;;  %v443_v9 = vpop.f32.mrf.mxu0 }
 0x12a   :  { %v566_v11 = vmul.f32 0.1, %v443_v9  ;;  %vm534_vm15 = vcmp.gt.f32.partialorder %v443_v9, 0.0 }
 0x12b   :  { %v445_v10 = vpop.f32.mrf.mxu0  ;;  %2491 = vmatmul.mubr.msk.bf16.gmra.mxu1 %vm658_vm4, %v623_v8 }
 0x12c   :  { %v598_v15 = vsel %vm534_vm15, %v443_v9, %v566_v11 }
 0x12d   :  { %v446_v12 = vpop.f32.mrf.mxu0 }
 0x12e   :  { %vm535_vm2 = vcmp.gt.f32.partialorder %v446_v12, 0.0  ;;  %v567_v13 = vmul.f32 0.1, %v446_v12 }
 0x12f   :  { %v448_v14 = vpop.f32.mrf.mxu0 }
 0x130   :  { %v599_v16 = vsel %vm535_vm2, %v446_v12, %v567_v13 }
 0x131   :  { %v624_v17 = vpack.c.bf16 %v599_v16, %v598_v15  ;;  %v451_v18 = vpop.f32.mrf.mxu0 }
 0x132   :  { %v568_v20 = vmul.f32 0.1, %v451_v18  ;;  %vm536_vm3 = vcmp.gt.f32.partialorder %v451_v18, 0.0 }
 0x133   :  { %v453_v19 = vpop.f32.mrf.mxu0  ;;  %2494 = vmatprep.mubr.msk.bf16.mxu1 %vm658_vm4, %v624_v17 }
 0x134   :  { %v600_v24 = vsel %vm536_vm3, %v451_v18, %v568_v20 }
 0x135   :  { %v454_v21 = vpop.f32.mrf.mxu0 }
 0x136   :  { %vm537_vm5 = vcmp.gt.f32.partialorder %v454_v21, 0.0  ;;  %v569_v22 = vmul.f32 0.1, %v454_v21 }
 0x137   :  { %v456_v23 = vpop.f32.mrf.mxu0 }
 0x138   :  { %v601_v25 = vsel %vm537_vm5, %v454_v21, %v569_v22 }
 0x139   :  { %v625_v26 = vpack.c.bf16 %v601_v25, %v600_v24  ;;  %v459_v27 = vpop.f32.mrf.mxu0 }
 0x13a   :  { %v570_v29 = vmul.f32 0.1, %v459_v27  ;;  %vm538_vm6 = vcmp.gt.f32.partialorder %v459_v27, 0.0 }
 0x13b   :  { %v461_v28 = vpop.f32.mrf.mxu0  ;;  %2495 = vmatmul.mubr.msk.bf16.gmra.mxu1 %vm658_vm4, %v625_v26 }
 0x13c   :  { %v602_v33 = vsel %vm538_vm6, %v459_v27, %v570_v29 }
 0x13d   :  { %v462_v30 = vpop.f32.mrf.mxu0 }
 0x13e   :  { %vm539_vm7 = vcmp.gt.f32.partialorder %v462_v30, 0.0  ;;  %v571_v31 = vmul.f32 0.1, %v462_v30 }
 0x13f   :  { %v464_v32 = vpop.f32.mrf.mxu0 }
 0x140   :  { %v603_v34 = vsel %vm539_vm7, %v462_v30, %v571_v31 }
 0x141   :  { %v626_v35 = vpack.c.bf16 %v603_v34, %v602_v33  ;;  %v467_v36 = vpop.f32.mrf.mxu0 }
 0x142   :  { %v572_v38 = vmul.f32 0.1, %v467_v36  ;;  %vm540_vm8 = vcmp.gt.f32.partialorder %v467_v36, 0.0 }
 0x143   :  { %v469_v37 = vpop.f32.mrf.mxu0  ;;  %2498 = vmatprep.mubr.msk.bf16.mxu1 %vm658_vm4, %v626_v35  ;;  %v1070_v35 = vld [vmem:[%s4049_s3 + $0x48] sm:$0xf] }
 0x144   :  { %v604_v42 = vsel %vm540_vm8, %v467_v36, %v572_v38  ;;  %2321 = vmatprep.subr.msk.mxu1 %vm357_vm1, %v1070_v35  ;;  %v1069_v36 = vld [vmem:[%s4049_s3 + $0x40] sm:$0xf]  ;;  %v1068_v37 = vld [vmem:[%s4049_s3 + $0x38] sm:$0xff]  ;;  %v1067_v38 = vld [vmem:[%s4049_s3 + $0x30] sm:$0xff] }
 0x145   :  { %v470_v39 = vpop.f32.mrf.mxu0  ;;  %2322 = vmatpush1.msk.msra.mxu1 %vm357_vm1, %v1069_v36 }
 0x146   :  { %vm541_vm9 = vcmp.gt.f32.partialorder %v470_v39, 0.0  ;;  %v573_v40 = vmul.f32 0.1, %v470_v39  ;;  %1197 = vmatprep.subr.mxu1 %v1068_v37 }
 0x147   :  { %v472_v41 = vpop.f32.mrf.mxu0  ;;  %1198 = vmatpush1.msra.mxu1 %v1067_v38 }
 0x148   :  { %v605_v43 = vsel %vm541_vm9, %v470_v39, %v573_v40  ;;  %v1066_v39 = vld [vmem:[%s4049_s3 + $0x28] sm:$0xff]  ;;  %v1065_v40 = vld [vmem:[%s4049_s3 + $0x20] sm:$0xff]  ;;  %v1064_v41 = vld [vmem:[%s4049_s3 + $0x18] sm:$0xff] }
 0x149   :  { %v627_v44 = vpack.c.bf16 %v605_v43, %v604_v42  ;;  %v475_v45 = vpop.f32.mrf.mxu0  ;;  %1199 = vmatprep.subr.mxu1 %v1066_v39  ;;  %v1063_v42 = vld [vmem:[%s4049_s3 + $0x10] sm:$0xff] }
 0x14a   :  { %v574_v47 = vmul.f32 0.1, %v475_v45  ;;  %vm542_vm10 = vcmp.gt.f32.partialorder %v475_v45, 0.0  ;;  %1200 = vmatpush1.msra.mxu1 %v1065_v40 }
 0x14b   :  { %v477_v46 = vpop.f32.mrf.mxu0  ;;  %2499 = vmatmul.mubr.msk.bf16.gmra.mxu1 %vm658_vm4, %v627_v44  ;;  %1201 = vmatprep.subr.mxu1 %v1064_v41 }
 0x14c   :  { %v606_v51 = vsel %vm542_vm10, %v475_v45, %v574_v47  ;;  %1202 = vmatpush1.msra.mxu1 %v1063_v42 }
 0x14d   :  { %v478_v48 = vpop.f32.mrf.mxu0 }
 0x14e   :  { %vm543_vm11 = vcmp.gt.f32.partialorder %v478_v48, 0.0  ;;  %v575_v49 = vmul.f32 0.1, %v478_v48 }
 0x14f   :  { %v480_v50 = vpop.f32.mrf.mxu0 }
 0x150   :  { %v607_v52 = vsel %vm543_vm11, %v478_v48, %v575_v49 }
 0x151   :  { %v628_v53 = vpack.c.bf16 %v607_v52, %v606_v51  ;;  %v483_v54 = vpop.f32.mrf.mxu0 }
 0x152   :  { %v576_v56 = vmul.f32 0.1, %v483_v54  ;;  %vm544_vm12 = vcmp.gt.f32.partialorder %v483_v54, 0.0 }
 0x153   :  { %v485_v55 = vpop.f32.mrf.mxu0  ;;  %2502 = vmatprep.mubr.msk.bf16.mxu1 %vm658_vm4, %v628_v53 }
 0x154   :  { %v608_v60 = vsel %vm544_vm12, %v483_v54, %v576_v56  ;;  %v1062_v56 = vld [vmem:[%s4049_s3 + $0x8] sm:$0xff] }
 0x155   :  { %v486_v57 = vpop.f32.mrf.mxu0  ;;  %1203 = vmatprep.subr.mxu1 %v1062_v56 }
 0x156   :  { %vm545_vm13 = vcmp.gt.f32.partialorder %v486_v57, 0.0  ;;  %v577_v58 = vmul.f32 0.1, %v486_v57 }
 0x157   :  { %v488_v59 = vpop.f32.mrf.mxu0 }
 0x158   :  { %v609_v61 = vsel %vm545_vm13, %v486_v57, %v577_v58  ;;  %v1061_v57 = vld [vmem:[%s4049_s3] sm:$0xff] }
 0x159   :  { %v629_v62 = vpack.c.bf16 %v609_v61, %v608_v60  ;;  %v491_v63 = vpop.f32.mrf.mxu0  ;;  %1204 = vmatpush1.msra.mxu1 %v1061_v57  ;;  %v2838_v61 = vmov 0.0  }
 0x15a   :  { %v578_v1 = vmul.f32 0.1, %v491_v63  ;;  %vm546_vm14 = vcmp.gt.f32.partialorder %v491_v63, 0.0  ;;  %1681 = vmatprep.subr.mxu0 %v2838_v61  ;;  %2572 = vmatprep.subr.mxu1 %v2838_v61 }
 0x15b   :  { %v493_v0 = vpop.f32.mrf.mxu0  ;;  %2503 = vmatmul.mubr.msk.bf16.gmra.mxu1 %vm658_vm4, %v629_v62 }
 0x15c   :  { %v610_v5 = vsel %vm546_vm14, %v491_v63, %v578_v1 }
 0x15d   :  { %v494_v2 = vpop.f32.mrf.mxu0 }
 0x15e   :  { %vm547_vm15 = vcmp.gt.f32.partialorder %v494_v2, 0.0  ;;  %v579_v3 = vmul.f32 0.1, %v494_v2 }
 0x15f   :  { %v496_v4 = vpop.f32.mrf.mxu0 }
 0x160   :  { %v611_v6 = vsel %vm547_vm15, %v494_v2, %v579_v3 }
 0x161   :  { %v630_v7 = vpack.c.bf16 %v611_v6, %v610_v5  ;;  %v499_v8 = vpop.f32.mrf.mxu0 }
 0x162   :  { %v580_v10 = vmul.f32 0.1, %v499_v8  ;;  %vm548_vm2 = vcmp.gt.f32.partialorder %v499_v8, 0.0 }
 0x163   :  { %v501_v9 = vpop.f32.mrf.mxu0  ;;  %2506 = vmatprep.mubr.msk.bf16.mxu1 %vm658_vm4, %v630_v7 }
 0x164   :  { %v612_v14 = vsel %vm548_vm2, %v499_v8, %v580_v10 }
 0x165   :  { %v502_v11 = vpop.f32.mrf.mxu0 }
 0x166   :  { %vm549_vm3 = vcmp.gt.f32.partialorder %v502_v11, 0.0  ;;  %v581_v12 = vmul.f32 0.1, %v502_v11 }
 0x167   :  { %v504_v13 = vpop.f32.mrf.mxu0 }
 0x168   :  { %v613_v15 = vsel %vm549_vm3, %v502_v11, %v581_v12 }
 0x169   :  { %v631_v16 = vpack.c.bf16 %v613_v15, %v612_v14  ;;  %v507_v17 = vpop.f32.mrf.mxu0 }
 0x16a   :  { %v582_v19 = vmul.f32 0.1, %v507_v17  ;;  %vm550_vm5 = vcmp.gt.f32.partialorder %v507_v17, 0.0 }
 0x16b   :  { %v509_v18 = vpop.f32.mrf.mxu0  ;;  %2507 = vmatmul.mubr.msk.bf16.gmra.mxu1 %vm658_vm4, %v631_v16 }
 0x16c   :  { %v614_v23 = vsel %vm550_vm5, %v507_v17, %v582_v19 }
 0x16d   :  { %v510_v20 = vpop.f32.mrf.mxu0 }
 0x16e   :  { %vm551_vm6 = vcmp.gt.f32.partialorder %v510_v20, 0.0  ;;  %v583_v21 = vmul.f32 0.1, %v510_v20 }
 0x16f   :  { %v512_v22 = vpop.f32.mrf.mxu0 }
 0x170   :  { %v615_v24 = vsel %vm551_vm6, %v510_v20, %v583_v21 }
 0x171   :  { %v632_v25 = vpack.c.bf16 %v615_v24, %v614_v23  ;;  %v515_v26 = vpop.f32.mrf.mxu0 }
 0x172   :  { %v584_v28 = vmul.f32 0.1, %v515_v26  ;;  %vm552_vm7 = vcmp.gt.f32.partialorder %v515_v26, 0.0 }
 0x173   :  { %v517_v27 = vpop.f32.mrf.mxu0  ;;  %2510 = vmatprep.mubr.msk.bf16.mxu1 %vm658_vm4, %v632_v25 }
 0x174   :  { %v616_v32 = vsel %vm552_vm7, %v515_v26, %v584_v28 }
 0x175   :  { %v518_v29 = vpop.f32.mrf.mxu0 }
 0x176   :  { %vm553_vm8 = vcmp.gt.f32.partialorder %v518_v29, 0.0  ;;  %v585_v30 = vmul.f32 0.1, %v518_v29 }
 0x177   :  { %v520_v31 = vpop.f32.mrf.mxu0 }
 0x178   :  { %v617_v33 = vsel %vm553_vm8, %v518_v29, %v585_v30 }
 0x179   :  { %v633_v34 = vpack.c.bf16 %v617_v33, %v616_v32 }
 0x17b   :  { %2511 = vmatmul.mubr.msk.bf16.gmra.mxu1 %vm658_vm4, %v633_v34  ;;  %vm868_vm4 = vcmask 293888  }
 0x17c   :  { %1237 = vmatprep.mubr.f32.mxu1 %v2838_v61 }
 0x1cb   :  { %v3080_v43 = vpop.f32.mrf.mxu1 }
 0x1cc   :  { %v875_v44 = vsel %vm868_vm4, %v3080_v43, -inf }
 0x1cd   :  { %876 = vmax.xlane.f32.xlu1 %v875_v44  ;;  %v3084_v45 = vpop.f32.mrf.mxu1 }
 0x1ce   :  { %v869_v46 = vsel %vm868_vm4, %v3084_v45, -inf }
 0x1cf   :  { %870 = vmax.xlane.f32.xlu0 %v869_v46  ;;  %v3088_v47 = vpop.f32.mrf.mxu1 }
 0x1d0   :  { %v878_v48 = vsel %vm868_vm4, %v3088_v47, -inf }
 0x1d1   :  { %879 = vmax.xlane.f32.xlu1 %v878_v48  ;;  %v3092_v49 = vpop.f32.mrf.mxu1 }
 0x1d2   :  { %v872_v50 = vsel %vm868_vm4, %v3092_v49, -inf }
 0x1d3   :  { %873 = vmax.xlane.f32.xlu0 %v872_v50 }
 0x1db   :  { %v3096_v51 = vpop.f32.mrf.mxu1 }
 0x1dc   :  { %v887_v58 = vsel %vm868_vm4, %v3096_v51, -inf }
 0x1dd   :  { %v3098_v52 = vpop.f32.mrf.mxu1 }
 0x1de   :  { %v881_v53 = vsel %vm868_vm4, %v3098_v52, -inf }
 0x1df   :  { %882 = vmax.xlane.f32.xlu0 %v881_v53  ;;  %v3102_v54 = vpop.f32.mrf.mxu1 }
 0x1e0   :  { %v890_v60 = vsel %vm868_vm4, %v3102_v54, -inf }
 0x1e1   :  { %v3104_v55 = vpop.f32.mrf.mxu1 }
 0x1e2   :  { %v884_v59 = vsel %vm868_vm4, %v3104_v55, -inf }
 0x1e3   :  { %888 = vmax.xlane.f32.xlu0 %v887_v58  ;;  %885 = vmax.xlane.f32.xlu1 %v884_v59 }
 0x1e7   :  { %891 = vmax.xlane.f32.xlu1 %v890_v60 }
 0x1eb   :  { %v3120_v62 = vpop.f32.mrf.mxu1 }
 0x1ec   :  { %v899_v3 = vsel %vm868_vm4, %v3120_v62, -inf }
 0x1ed   :  { %v3123_v63 = vpop.f32.mrf.mxu1 }
 0x1ee   :  { %v893_v0 = vsel %vm868_vm4, %v3123_v63, -inf }
 0x1ef   :  { %894 = vmax.xlane.f32.xlu0 %v893_v0  ;;  %v3127_v1 = vpop.f32.mrf.mxu1 }
 0x1f0   :  { %v902_v5 = vsel %vm868_vm4, %v3127_v1, -inf }
 0x1f1   :  { %v3129_v2 = vpop.f32.mrf.mxu1 }
 0x1f2   :  { %v896_v4 = vsel %vm868_vm4, %v3129_v2, -inf }
 0x1f3   :  { %900 = vmax.xlane.f32.xlu0 %v899_v3  ;;  %897 = vmax.xlane.f32.xlu1 %v896_v4 }
 0x1f7   :  { %903 = vmax.xlane.f32.xlu1 %v902_v5 }
 0x1fb   :  { %v3137_v6 = vpop.f32.mrf.mxu1 }
 0x1fc   :  { %v911_v11 = vsel %vm868_vm4, %v3137_v6, -inf }
 0x1fd   :  { %v3139_v7 = vpop.f32.mrf.mxu1 }
 0x1fe   :  { %v905_v8 = vsel %vm868_vm4, %v3139_v7, -inf }
 0x1ff   :  { %906 = vmax.xlane.f32.xlu0 %v905_v8  ;;  %v3143_v9 = vpop.f32.mrf.mxu1 }
 0x200   :  { %v914_v13 = vsel %vm868_vm4, %v3143_v9, -inf }
 0x201   :  { %v3145_v10 = vpop.f32.mrf.mxu1 }
 0x202   :  { %v908_v12 = vsel %vm868_vm4, %v3145_v10, -inf }
 0x203   :  { %912 = vmax.xlane.f32.xlu0 %v911_v11  ;;  %909 = vmax.xlane.f32.xlu1 %v908_v12 }
 0x207   :  { %915 = vmax.xlane.f32.xlu1 %v914_v13 }
 0x20b   :  { %v3153_v14 = vpop.f32.mrf.mxu1 }
 0x20c   :  { %v923_v19 = vsel %vm868_vm4, %v3153_v14, -inf }
 0x20d   :  { %v3155_v15 = vpop.f32.mrf.mxu1 }
 0x20e   :  { %v917_v16 = vsel %vm868_vm4, %v3155_v15, -inf }
 0x20f   :  { %918 = vmax.xlane.f32.xlu0 %v917_v16  ;;  %v3159_v17 = vpop.f32.mrf.mxu1 }
 0x210   :  { %v926_v21 = vsel %vm868_vm4, %v3159_v17, -inf }
 0x211   :  { %v3161_v18 = vpop.f32.mrf.mxu1 }
 0x212   :  { %v920_v20 = vsel %vm868_vm4, %v3161_v18, -inf }
 0x213   :  { %924 = vmax.xlane.f32.xlu0 %v923_v19  ;;  %921 = vmax.xlane.f32.xlu1 %v920_v20  ;;  %v1570_v20 = vld [vmem:[%s4050_s4 + $0x60] sm:$0xff] }
 0x217   :  { %927 = vmax.xlane.f32.xlu1 %v926_v21 }
 0x21b   :  { %v3169_v22 = vpop.f32.mrf.mxu1 }
 0x21c   :  { %v935_v27 = vsel %vm868_vm4, %v3169_v22, -inf }
 0x21d   :  { %v3171_v23 = vpop.f32.mrf.mxu1 }
 0x21e   :  { %v929_v24 = vsel %vm868_vm4, %v3171_v23, -inf }
 0x21f   :  { %930 = vmax.xlane.f32.xlu0 %v929_v24  ;;  %v3175_v25 = vpop.f32.mrf.mxu1 }
 0x220   :  { %v938_v29 = vsel %vm868_vm4, %v3175_v25, -inf }
 0x221   :  { %v3177_v26 = vpop.f32.mrf.mxu1 }
 0x222   :  { %v932_v28 = vsel %vm868_vm4, %v3177_v26, -inf }
 0x223   :  { %936 = vmax.xlane.f32.xlu0 %v935_v27  ;;  %933 = vmax.xlane.f32.xlu1 %v932_v28 }
 0x227   :  { %939 = vmax.xlane.f32.xlu1 %v938_v29 }
 0x22b   :  { %v3185_v30 = vpop.f32.mrf.mxu1 }
 0x22c   :  { %v947_v35 = vsel %vm868_vm4, %v3185_v30, -inf }
 0x22d   :  { %v3187_v31 = vpop.f32.mrf.mxu1 }
 0x22e   :  { %v941_v32 = vsel %vm868_vm4, %v3187_v31, -inf }
 0x22f   :  { %942 = vmax.xlane.f32.xlu0 %v941_v32  ;;  %v3191_v33 = vpop.f32.mrf.mxu1 }
 0x230   :  { %v950_v37 = vsel %vm868_vm4, %v3191_v33, -inf }
 0x231   :  { %v3193_v34 = vpop.f32.mrf.mxu1 }
 0x232   :  { %v944_v36 = vsel %vm868_vm4, %v3193_v34, -inf }
 0x233   :  { %948 = vmax.xlane.f32.xlu0 %v947_v35  ;;  %945 = vmax.xlane.f32.xlu1 %v944_v36  ;;  %v1567_v36 = vld [vmem:[%s4050_s4 + $0x48] sm:$0xff] }
 0x237   :  { %951 = vmax.xlane.f32.xlu1 %v950_v37 }
 0x23b   :  { %v3201_v38 = vpop.f32.mrf.mxu1 }
 0x23c   :  { %v959_v44 = vsel %vm868_vm4, %v3201_v38, -inf }
 0x23d   :  { %v3203_v39 = vpop.f32.mrf.mxu1 }
 0x23e   :  { %v953_v40 = vsel %vm868_vm4, %v3203_v39, -inf }
 0x23f   :  { %954 = vmax.xlane.f32.xlu0 %v953_v40  ;;  %v3207_v41 = vpop.f32.mrf.mxu1 }
 0x240   :  { %v962_v48 = vsel %vm868_vm4, %v3207_v41, -inf }
 0x241   :  { %v3209_v42 = vpop.f32.mrf.mxu1 }
 0x242   :  { %v956_v46 = vsel %vm868_vm4, %v3209_v42, -inf }
 0x243   :  { %960 = vmax.xlane.f32.xlu0 %v959_v44  ;;  %957 = vmax.xlane.f32.xlu1 %v956_v46  ;;  %v3283_v44 = vld [vmem:[%s4050_s4 + $0x38] sm:$0xff] }
 0x247   :  { %963 = vmax.xlane.f32.xlu1 %v962_v48 }
 0x256   :  { %v877_v50 = vpop.xlane.xlu1 %876 }
 0x257   :  { %v967_v59 = vsub.f32 %v3080_v43, %v877_v50  ;;  %v1572_v43 = vld [vmem:[%s4050_s4 + $0x70] sm:$0xff] }
 0x258   :  { %v871_v53 = vpop.xlane.xlu0 %870  ;;  %v3292_v50 = vld [vmem:[%s4050_s4 + $0x30] sm:$0xff] }
 0x259   :  { %v965_v56 = vsub.f32 %v3084_v45, %v871_v53  ;;  %v1001_v4 = vmul.f32 1.442695, %v967_v59  ;;  %v1573_v45 = vld [vmem:[%s4050_s4 + $0x78] sm:$0xff] }
 0x25a   :  { %v880_v0 = vpop.xlane.xlu1 %879  ;;  %1682 = vmatpush1.msra.mxu0 %v1573_v45 }
 0x25b   :  { %v997_v57 = vmul.f32 1.442695, %v965_v56  ;;  %v968_v5 = vsub.f32 %v3088_v47, %v880_v0  ;;  %1683 = vmatprep.subr.mxu0 %v2838_v61  ;;  %v1571_v47 = vld [vmem:[%s4050_s4 + $0x68] sm:$0xff] }
 0x25c   :  { %v874_v58 = vpop.xlane.xlu0 %873  ;;  %1684 = vmatpush1.msra.mxu0 %v1572_v43 }
 0x25d   :  { %2677 = vpow2.f32 %v997_v57  ;;  %v966_v60 = vsub.f32 %v3092_v49, %v874_v58  ;;  %v1003_v8 = vmul.f32 1.442695, %v968_v5  ;;  %1685 = vmatprep.subr.mxu0 %v2838_v61 }
 0x25e   :  { %1686 = vmatpush1.msra.mxu0 %v1571_v47 }
 0x25f   :  { %v999_v3 = vmul.f32 1.442695, %v966_v60  ;;  %1687 = vmatprep.subr.mxu0 %v2838_v61  ;;  %v3313_v60 = vld [vmem:[%s4050_s4 + $0x20] sm:$0xff] }
 0x260   :  { %1688 = vmatpush1.msra.mxu0 %v1570_v20 }
 0x261   :  { %2679 = vpow2.f32 %v999_v3  ;;  %1689 = vmatprep.subr.mxu0 %v2838_v61 }
 0x262   :  { %2681 = vpow2.f32 %v1001_v4 }
 0x263   :  { %2683 = vpow2.f32 %v1003_v8 }
 0x268   :  { %v883_v11 = vpop.xlane.xlu0 %882 }
 0x269   :  { %v969_v12 = vsub.f32 %v3098_v52, %v883_v11 }
 0x26a   :  { %v3228_v49 = vpop.eup %2677 }
 0x26b   :  { %v1005_v13 = vmul.f32 1.442695, %v969_v12  ;;  %2323 = vmatmul.mubr.msk.f32.vlgmr.msra.gmra.mxu1 %vm868_vm4, %v3228_v49 }
 0x26c   :  { %v889_v52 = vpop.xlane.xlu0 %888  ;;  %v886_v16 = vpop.xlane.xlu1 %885  ;;  %1243 = vmatprep.mubr.f32.mxu1 %v2838_v61  ;;  %2599 = vmatpush1.msra.mxu1 %v1573_v45  ;;  %v3345_v45 = vld [vmem:[%s4050_s4 + $0x8] sm:$0xff] }
 0x26d   :  { %2685 = vpow2.f32 %v1005_v13  ;;  %v970_v19 = vsub.f32 %v3104_v55, %v886_v16  ;;  %v971_v24 = vsub.f32 %v3096_v51, %v889_v52  ;;  %2573 = vmatprep.subr.mxu1 %v2838_v61  ;;  %v1569_v55 = vld [vmem:[%s4050_s4 + $0x58] sm:$0xff]  ;;  %v1568_v51 = vld [vmem:[%s4050_s4 + $0x50] sm:$0xff] }
 0x26e   :  { %v3242_v21 = vpop.eup %2679  ;;  %2600 = vmatpush1.msra.mxu1 %v1572_v43  ;;  %1690 = vmatpush1.msra.mxu0 %v1569_v55 }
 0x26f   :  { %v1007_v27 = vmul.f32 1.442695, %v970_v19  ;;  %2324 = vmatmul.mubr.msk.f32.gmra.mxu1 %vm868_vm4, %v3242_v21  ;;  %v3257_v29 = vpop.eup %2681  ;;  %v1009_v32 = vmul.f32 1.442695, %v971_v24  ;;  %2574 = vmatprep.subr.mxu1 %v2838_v61  ;;  %v3377_v19 = vld [vmem:[%s4050_s4 + $0xc8] sm:$0xff] }
 0x270   :  { %v892_v28 = vpop.xlane.xlu1 %891  ;;  %1249 = vmatprep.mubr.f32.mxu1 %v2838_v61  ;;  %1691 = vmatprep.subr.mxu0 %v2838_v61  ;;  %v3274_v37 = vpop.eup %2683 }
 0x271   :  { %2687 = vpow2.f32 %v1007_v27  ;;  %v972_v35 = vsub.f32 %v3102_v54, %v892_v28  ;;  %1692 = vmatpush1.msra.mxu0 %v1568_v51  ;;  %v3272_v54 = vld [vmem:[%s4050_s4 + $0x40] sm:$0xff]  ;;  %2601 = vmatpush1.msra.mxu1 %v1571_v47  ;;  %v3365_v47 = vld [vmem:[%s4050_s4 + $0xd0] sm:$0xff] }
 0x272   :  { %1693 = vmatprep.subr.mxu0 %v2838_v61  ;;  %2689 = vpow2.f32 %v1009_v32  ;;  %2575 = vmatprep.subr.mxu1 %v2838_v61 }
 0x273   :  { %2325 = vmatmul.mubr.msk.f32.gmra.mxu1 %vm868_vm4, %v3257_v29  ;;  %v1011_v40 = vmul.f32 1.442695, %v972_v35  ;;  %1694 = vmatpush1.msra.mxu0 %v1567_v36 }
 0x274   :  { %1255 = vmatprep.mubr.f32.mxu1 %v2838_v61  ;;  %1695 = vmatprep.subr.mxu0 %v2838_v61 }
 0x275   :  { %1696 = vmatpush1.msra.mxu0 %v3272_v54  ;;  %2602 = vmatpush1.msra.mxu1 %v1570_v20  ;;  %2691 = vpow2.f32 %v1011_v40 }
 0x276   :  { %1697 = vmatprep.subr.mxu0 %v2838_v61  ;;  %2576 = vmatprep.subr.mxu1 %v2838_v61 }
 0x277   :  { %2326 = vmatmul.mubr.msk.f32.gmra.mxu1 %vm868_vm4, %v3274_v37  ;;  %1698 = vmatpush1.msra.mxu0 %v3283_v44 }
 0x278   :  { %v895_v46 = vpop.xlane.xlu0 %894  ;;  %1261 = vmatprep.mubr.f32.mxu1 %v2838_v61  ;;  %1699 = vmatprep.subr.mxu0 %v2838_v61 }
 0x279   :  { %v973_v48 = vsub.f32 %v3123_v63, %v895_v46  ;;  %v3304_v63 = vld [vmem:[%s4050_s4 + $0x28] sm:$0xff]  ;;  %1700 = vmatpush1.msra.mxu0 %v3292_v50  ;;  %2603 = vmatpush1.msra.mxu1 %v1569_v55 }
 0x27a   :  { %v3294_v53 = vpop.eup %2685  ;;  %1701 = vmatprep.subr.mxu0 %v2838_v61  ;;  %2577 = vmatprep.subr.mxu1 %v2838_v61 }
 0x27b   :  { %v1013_v56 = vmul.f32 1.442695, %v973_v48  ;;  %2327 = vmatmul.mubr.msk.f32.gmra.mxu1 %vm868_vm4, %v3294_v53  ;;  %1702 = vmatpush1.msra.mxu0 %v3304_v63  ;;  %v3432_v48 = vld [vmem:[%s4050_s4 + $0xa0] sm:$0xff] }
 0x27c   :  { %v901_v57 = vpop.xlane.xlu0 %900  ;;  %v898_v58 = vpop.xlane.xlu1 %897  ;;  %1267 = vmatprep.mubr.f32.mxu1 %v2838_v61  ;;  %1703 = vmatprep.subr.mxu0 %v2838_v61 }
 0x27d   :  { %2693 = vpow2.f32 %v1013_v56  ;;  %v974_v59 = vsub.f32 %v3129_v2, %v898_v58  ;;  %v975_v0 = vsub.f32 %v3120_v62, %v901_v57  ;;  %v3324_v2 = vld [vmem:[%s4050_s4 + $0x18] sm:$0xff]  ;;  %2604 = vmatpush1.msra.mxu1 %v1568_v51  ;;  %1704 = vmatpush1.msra.mxu0 %v3313_v60  ;;  %v3334_v62 = vld [vmem:[%s4050_s4 + $0x10] sm:$0xff] }
 0x27e   :  { %v3318_v3 = vpop.eup %2687  ;;  %1705 = vmatprep.subr.mxu0 %v2838_v61  ;;  %2578 = vmatprep.subr.mxu1 %v2838_v61  ;;  %v3399_v51 = vld [vmem:[%s4050_s4 + $0xb8] sm:$0xff] }
 0x27f   :  { %v1015_v4 = vmul.f32 1.442695, %v974_v59  ;;  %2328 = vmatmul.mubr.msk.f32.gmra.mxu1 %vm868_vm4, %v3318_v3  ;;  %v1017_v8 = vmul.f32 1.442695, %v975_v0  ;;  %1706 = vmatpush1.msra.mxu0 %v3324_v2  ;;  %v3339_v12 = vpop.eup %2689 }
 0x280   :  { %v904_v5 = vpop.xlane.xlu1 %903  ;;  %1273 = vmatprep.mubr.f32.mxu1 %v2838_v61  ;;  %1707 = vmatprep.subr.mxu0 %v2838_v61 }
 0x281   :  { %2695 = vpow2.f32 %v1015_v4  ;;  %v976_v11 = vsub.f32 %v3127_v1, %v904_v5  ;;  %2605 = vmatpush1.msra.mxu1 %v1567_v36  ;;  %1708 = vmatpush1.msra.mxu0 %v3334_v62  ;;  %v3355_v1 = vld [vmem:[%s4050_s4] sm:$0xff] }
 0x282   :  { %1709 = vmatprep.subr.mxu0 %v2838_v61  ;;  %2697 = vpow2.f32 %v1017_v8  ;;  %2579 = vmatprep.subr.mxu1 %v2838_v61  ;;  %v3359_v13 = vpop.eup %2691 }
 0x283   :  { %2329 = vmatmul.mubr.msk.f32.gmra.mxu1 %vm868_vm4, %v3339_v12  ;;  %v1019_v43 = vmul.f32 1.442695, %v976_v11  ;;  %1710 = vmatpush1.msra.mxu0 %v3345_v45 }
 0x284   :  { %1279 = vmatprep.mubr.f32.mxu1 %v2838_v61  ;;  %1711 = vmatprep.subr.mxu0 %v2838_v61 }
 0x285   :  { %2606 = vmatpush1.msra.mxu1 %v3272_v54  ;;  %1712 = vmatpush1.msra.mxu0 %v3355_v1  ;;  %2699 = vpow2.f32 %v1019_v43  ;;  %v3421_v54 = vld [vmem:[%s4050_s4 + $0xa8] sm:$0xff] }
 0x286   :  { %1723 = vmatprep.subr.mxu0 %v2838_v61  ;;  %2580 = vmatprep.subr.mxu1 %v2838_v61 }
 0x287   :  { %2330 = vmatmul.mubr.msk.f32.gmra.mxu1 %vm868_vm4, %v3359_v13  ;;  %1724 = vmatpush2.msra.mxu0 %v3365_v47 }
 0x288   :  { %v907_v52 = vpop.xlane.xlu0 %906  ;;  %1285 = vmatprep.mubr.f32.mxu1 %v2838_v61  ;;  %1725 = vmatprep.subr.mxu0 %v2838_v61 }
 0x289   :  { %v977_v16 = vsub.f32 %v3139_v7, %v907_v52  ;;  %v3387_v7 = vld [vmem:[%s4050_s4 + $0xc0] sm:$0xff]  ;;  %2607 = vmatpush1.msra.mxu1 %v3283_v44  ;;  %1726 = vmatpush2.msra.mxu0 %v3377_v19 }
 0x28a   :  { %v3379_v20 = vpop.eup %2693  ;;  %1727 = vmatprep.subr.mxu0 %v2838_v61  ;;  %2581 = vmatprep.subr.mxu1 %v2838_v61 }
 0x28b   :  { %v1021_v24 = vmul.f32 1.442695, %v977_v16  ;;  %2331 = vmatmul.mubr.msk.f32.gmra.mxu1 %vm868_vm4, %v3379_v20  ;;  %1728 = vmatpush2.msra.mxu0 %v3387_v7 }
 0x28c   :  { %v913_v27 = vpop.xlane.xlu0 %912  ;;  %v910_v55 = vpop.xlane.xlu1 %909  ;;  %1291 = vmatprep.mubr.f32.mxu1 %v2838_v61  ;;  %1729 = vmatprep.subr.mxu0 %v2838_v61 }
 0x28d   :  { %2701 = vpow2.f32 %v1021_v24  ;;  %v978_v28 = vsub.f32 %v3145_v10, %v910_v55  ;;  %v979_v32 = vsub.f32 %v3137_v6, %v913_v27  ;;  %v3410_v10 = vld [vmem:[%s4050_s4 + $0xb0] sm:$0xff]  ;;  %2608 = vmatpush1.msra.mxu1 %v3292_v50  ;;  %1730 = vmatpush2.msra.mxu0 %v3399_v51 }
 0x28e   :  { %v3404_v35 = vpop.eup %2695  ;;  %1731 = vmatprep.subr.mxu0 %v2838_v61  ;;  %2582 = vmatprep.subr.mxu1 %v2838_v61 }
 0x28f   :  { %v1023_v36 = vmul.f32 1.442695, %v978_v28  ;;  %2332 = vmatmul.mubr.msk.f32.gmra.mxu1 %vm868_vm4, %v3404_v35  ;;  %v1025_v40 = vmul.f32 1.442695, %v979_v32  ;;  %1732 = vmatpush2.msra.mxu0 %v3410_v10  ;;  %v3426_v46 = vpop.eup %2697 }
 0x290   :  { %v916_v6 = vpop.xlane.xlu1 %915  ;;  %1297 = vmatprep.mubr.f32.mxu1 %v2838_v61  ;;  %1733 = vmatprep.subr.mxu0 %v2838_v61 }
 0x291   :  { %2703 = vpow2.f32 %v1023_v36  ;;  %v980_v44 = vsub.f32 %v3143_v9, %v916_v6  ;;  %2609 = vmatpush1.msra.mxu1 %v3304_v63  ;;  %1734 = vmatpush2.msra.mxu0 %v3421_v54  ;;  %v3443_v9 = vld [vmem:[%s4050_s4 + $0x98] sm:$0xff] }
 0x292   :  { %1735 = vmatprep.subr.mxu0 %v2838_v61  ;;  %2705 = vpow2.f32 %v1025_v40  ;;  %2583 = vmatprep.subr.mxu1 %v2838_v61  ;;  %v3447_v56 = vpop.eup %2699 }
 0x293   :  { %2333 = vmatmul.mubr.msk.f32.gmra.mxu1 %vm868_vm4, %v3426_v46  ;;  %v1027_v50 = vmul.f32 1.442695, %v980_v44  ;;  %1736 = vmatpush2.msra.mxu0 %v3432_v48 }
 0x294   :  { %1303 = vmatprep.mubr.f32.mxu1 %v2838_v61  ;;  %1737 = vmatprep.subr.mxu0 %v2838_v61 }
 0x295   :  { %2610 = vmatpush1.msra.mxu1 %v3313_v60  ;;  %1738 = vmatpush2.msra.mxu0 %v3443_v9  ;;  %2707 = vpow2.f32 %v1027_v50 }
 0x296   :  { %1739 = vmatprep.subr.mxu0 %v2838_v61  ;;  %2584 = vmatprep.subr.mxu1 %v2838_v61 }
 0x297   :  { %2334 = vmatmul.mubr.msk.f32.gmra.mxu1 %vm868_vm4, %v3447_v56 }
 0x298   :  { %v919_v63 = vpop.xlane.xlu0 %918  ;;  %1309 = vmatprep.mubr.f32.mxu1 %v2838_v61  ;;  %2611 = vmatpush1.msra.mxu1 %v3324_v2 }
 0x299   :  { %v981_v57 = vsub.f32 %v3155_v15, %v919_v63  ;;  %2585 = vmatprep.subr.mxu1 %v2838_v61 }
 0x29a   :  { %v3457_v58 = vpop.eup %2701  ;;  %2612 = vmatpush1.msra.mxu1 %v3334_v62 }
 0x29b   :  { %v1029_v59 = vmul.f32 1.442695, %v981_v57  ;;  %2335 = vmatmul.mubr.msk.f32.gmra.mxu1 %vm868_vm4, %v3457_v58  ;;  %2586 = vmatprep.subr.mxu1 %v2838_v61 }
 0x29c   :  { %v925_v60 = vpop.xlane.xlu0 %924  ;;  %v922_v0 = vpop.xlane.xlu1 %921  ;;  %1315 = vmatprep.mubr.f32.mxu1 %v2838_v61  ;;  %2613 = vmatpush1.msra.mxu1 %v3345_v45 }
 0x29d   :  { %2709 = vpow2.f32 %v1029_v59  ;;  %v982_v15 = vsub.f32 %v3161_v18, %v922_v0  ;;  %v983_v4 = vsub.f32 %v3153_v14, %v925_v60  ;;  %2587 = vmatprep.subr.mxu1 %v2838_v61 }
 0x29e   :  { %v3469_v5 = vpop.eup %2703  ;;  %2614 = vmatpush1.msra.mxu1 %v3355_v1 }
 0x29f   :  { %v1031_v2 = vmul.f32 1.442695, %v982_v15  ;;  %2336 = vmatmul.mubr.msk.f32.gmra.mxu1 %vm868_vm4, %v3469_v5  ;;  %v1033_v18 = vmul.f32 1.442695, %v983_v4  ;;  %2588 = vmatprep.subr.mxu1 %v2838_v61  ;;  %v3479_v62 = vpop.eup %2705 }
 0x2a0   :  { %v928_v8 = vpop.xlane.xlu1 %927  ;;  %1321 = vmatprep.mubr.f32.mxu1 %v2838_v61  ;;  %2615 = vmatpush2.msra.mxu1 %v3365_v47 }
 0x2a1   :  { %2711 = vpow2.f32 %v1031_v2  ;;  %v984_v14 = vsub.f32 %v3159_v17, %v928_v8  ;;  %2589 = vmatprep.subr.mxu1 %v2838_v61 }
 0x2a2   :  { %2616 = vmatpush2.msra.mxu1 %v3377_v19  ;;  %2713 = vpow2.f32 %v1033_v18  ;;  %v3488_v17 = vpop.eup %2707 }
 0x2a3   :  { %2337 = vmatmul.mubr.msk.f32.gmra.mxu1 %vm868_vm4, %v3479_v62  ;;  %v1035_v11 = vmul.f32 1.442695, %v984_v14  ;;  %2590 = vmatprep.subr.mxu1 %v2838_v61 }
 0x2a4   :  { %1327 = vmatprep.mubr.f32.mxu1 %v2838_v61  ;;  %2617 = vmatpush2.msra.mxu1 %v3387_v7  ;;  %v1575_v7 = vld [vmem:[%s4050_s4 + $0x88] sm:$0xff] }
 0x2a5   :  { %2591 = vmatprep.subr.mxu1 %v2838_v61  ;;  %2715 = vpow2.f32 %v1035_v11 }
 0x2a6   :  { %2618 = vmatpush2.msra.mxu1 %v3399_v51 }
 0x2a7   :  { %2338 = vmatmul.mubr.msk.f32.gmra.mxu1 %vm868_vm4, %v3488_v17  ;;  %2592 = vmatprep.subr.mxu1 %v2838_v61 }
 0x2a8   :  { %v931_v45 = vpop.xlane.xlu0 %930  ;;  %1333 = vmatprep.mubr.f32.mxu1 %v2838_v61  ;;  %2619 = vmatpush2.msra.mxu1 %v3410_v10 }
 0x2a9   :  { %v985_v1 = vsub.f32 %v3171_v23, %v931_v45  ;;  %v1576_v23 = vld [vmem:[%s4050_s4 + $0x90] sm:$0xff]  ;;  %2593 = vmatprep.subr.mxu1 %v2838_v61 }
 0x2aa   :  { %v3497_v43 = vpop.eup %2709  ;;  %1740 = vmatpush2.msra.mxu0 %v1576_v23  ;;  %2620 = vmatpush2.msra.mxu1 %v3421_v54 }
 0x2ab   :  { %v1037_v47 = vmul.f32 1.442695, %v985_v1  ;;  %2339 = vmatmul.mubr.msk.f32.gmra.mxu1 %vm868_vm4, %v3497_v43  ;;  %1741 = vmatprep.subr.mxu0 %v2838_v61 }
 0x2ac   :  { %v937_v52 = vpop.xlane.xlu0 %936  ;;  %v934_v16 = vpop.xlane.xlu1 %933  ;;  %1339 = vmatprep.mubr.f32.mxu1 %v2838_v61  ;;  %1742 = vmatpush2.msra.mxu0 %v1575_v7 }
 0x2ad   :  { %2717 = vpow2.f32 %v1037_v47  ;;  %v986_v19 = vsub.f32 %v3177_v26, %v934_v16  ;;  %v987_v24 = vsub.f32 %v3169_v22, %v937_v52  ;;  %2594 = vmatprep.subr.mxu1 %v2838_v61  ;;  %1743 = vmatprep.subr.mxu0 %v2838_v61  ;;  %v1574_v22 = vld [vmem:[%s4050_s4 + $0x80] sm:$0xff] }
 0x2ae   :  { %v3515_v27 = vpop.eup %2711  ;;  %1744 = vmatpush2.msra.mxu0 %v1574_v22  ;;  %2621 = vmatpush2.msra.mxu1 %v3432_v48 }
 0x2af   :  { %v1039_v55 = vmul.f32 1.442695, %v986_v19  ;;  %2340 = vmatmul.mubr.msk.f32.gmra.mxu1 %vm868_vm4, %v3515_v27  ;;  %v1041_v28 = vmul.f32 1.442695, %v987_v24  ;;  %v3527_v32 = vpop.eup %2713  ;;  %2595 = vmatprep.subr.mxu1 %v2838_v61 }
 0x2b0   :  { %v940_v26 = vpop.xlane.xlu1 %939  ;;  %1345 = vmatprep.mubr.f32.mxu1 %v2838_v61  ;;  %2622 = vmatpush2.msra.mxu1 %v3443_v9 }
 0x2b1   :  { %2719 = vpow2.f32 %v1039_v55  ;;  %v988_v51 = vsub.f32 %v3175_v25, %v940_v26  ;;  %2596 = vmatprep.subr.mxu1 %v2838_v61  ;;  %v2805_v55 = vld [vmem:[%s4047_s0] sm:$0xff] }
 0x2b2   :  { %2721 = vpow2.f32 %v1041_v28  ;;  %v3535_v10 = vpop.eup %2715  ;;  %2623 = vmatpush2.msra.mxu1 %v1576_v23  ;;  %v1431_v26 = vunpack.c.h.bf16 %v2805_v55 }
 0x2b3   :  { %2341 = vmatmul.mubr.msk.f32.gmra.mxu1 %vm868_vm4, %v3527_v32  ;;  %v1043_v36 = vmul.f32 1.442695, %v988_v51  ;;  %2597 = vmatprep.subr.mxu1 %v2838_v61 }
 0x2b4   :  { %1351 = vmatprep.mubr.f32.mxu1 %v2838_v61  ;;  %2624 = vmatpush2.msra.mxu1 %v1575_v7  ;;  %v3612_v7 = vld [vmem:[%s4051_s5 + $0x20] sm:$0xf] }
 0x2b5   :  { %2723 = vpow2.f32 %v1043_v36  ;;  %2598 = vmatprep.subr.mxu1 %v2838_v61  ;;  %v2806_v36 = vld [vmem:[%s4047_s0 + $0x8] sm:$0xff] }
 0x2b6   :  { %2625 = vmatpush2.msra.mxu1 %v1574_v22 }
 0x2b7   :  { %2342 = vmatmul.mubr.msk.f32.gmra.mxu1 %vm868_vm4, %v3535_v10  ;;  %2514 = vmatprep.subr.msk.mxu1 %vm357_vm1, %v3612_v7 }
 0x2b8   :  { %v943_v25 = vpop.xlane.xlu0 %942  ;;  %1357 = vmatprep.mubr.f32.mxu1 %v2838_v61 }
 0x2b9   :  { %v989_v6 = vsub.f32 %v3187_v31, %v943_v25  ;;  %v1433_v25 = vunpack.c.h.bf16 %v2806_v36 }
 0x2ba   :  { %v3542_v54 = vpop.eup %2717 }
 0x2bb   :  { %v1045_v40 = vmul.f32 1.442695, %v989_v6  ;;  %2343 = vmatmul.mubr.msk.f32.gmra.mxu1 %vm868_vm4, %v3542_v54 }
 0x2bc   :  { %v949_v44 = vpop.xlane.xlu0 %948  ;;  %v946_v48 = vpop.xlane.xlu1 %945  ;;  %1363 = vmatprep.mubr.f32.mxu1 %v2838_v61 }
 0x2bd   :  { %2725 = vpow2.f32 %v1045_v40  ;;  %v990_v9 = vsub.f32 %v3193_v34, %v946_v48  ;;  %v991_v31 = vsub.f32 %v3185_v30, %v949_v44  ;;  %v1432_v44 = vunpack.c.l.bf16 %v2806_v36 }
 0x2be   :  { %v3550_v50 = vpop.eup %2719 }
 0x2bf   :  { %v1047_v63 = vmul.f32 1.442695, %v990_v9  ;;  %2344 = vmatmul.mubr.msk.f32.gmra.mxu1 %vm868_vm4, %v3550_v50  ;;  %v1049_v59 = vmul.f32 1.442695, %v991_v31  ;;  %v3556_v0 = vpop.eup %2721  ;;  %v2807_v31 = vld [vmem:[%s4047_s0 + $0x10] sm:$0xff] }
 0x2c0   :  { %v952_v57 = vpop.xlane.xlu1 %951  ;;  %1369 = vmatprep.mubr.f32.mxu1 %v2838_v61 }
 0x2c1   :  { %2727 = vpow2.f32 %v1047_v63  ;;  %v992_v60 = vsub.f32 %v3191_v33, %v952_v57  ;;  %v1435_v63 = vunpack.c.h.bf16 %v2807_v31 }
 0x2c2   :  { %2729 = vpow2.f32 %v1049_v59  ;;  %v3561_v34 = vpop.eup %2723 }
 0x2c3   :  { %2345 = vmatmul.mubr.msk.f32.gmra.mxu1 %vm868_vm4, %v3556_v0  ;;  %v1051_v30 = vmul.f32 1.442695, %v992_v60  ;;  %v1434_v60 = vunpack.c.l.bf16 %v2807_v31 }
 0x2c4   :  { %1375 = vmatprep.mubr.f32.mxu1 %v2838_v61 }
 0x2c5   :  { %2731 = vpow2.f32 %v1051_v30 }
 0x2c7   :  { %2346 = vmatmul.mubr.msk.f32.gmra.mxu1 %vm868_vm4, %v3561_v34 }
 0x2c8   :  { %v955_v15 = vpop.xlane.xlu0 %954  ;;  %1381 = vmatprep.mubr.f32.mxu1 %v2838_v61 }
 0x2c9   :  { %v993_v4 = vsub.f32 %v3203_v39, %v955_v15 }
 0x2ca   :  { %v3567_v33 = vpop.eup %2725 }
 0x2cb   :  { %v1053_v2 = vmul.f32 1.442695, %v993_v4  ;;  %2347 = vmatmul.mubr.msk.f32.gmra.mxu1 %vm868_vm4, %v3567_v33  ;;  %v2808_v4 = vld [vmem:[%s4047_s0 + $0x18] sm:$0xff] }
 0x2cc   :  { %v961_v8 = vpop.xlane.xlu0 %960  ;;  %v958_v18 = vpop.xlane.xlu1 %957  ;;  %1387 = vmatprep.mubr.f32.mxu1 %v2838_v61 }
 0x2cd   :  { %2733 = vpow2.f32 %v1053_v2  ;;  %v994_v14 = vsub.f32 %v3209_v42, %v958_v18  ;;  %v995_v11 = vsub.f32 %v3201_v38, %v961_v8  ;;  %v1437_v2 = vunpack.c.h.bf16 %v2808_v4 }
 0x2ce   :  { %v3574_v45 = vpop.eup %2727 }
 0x2cf   :  { %v1055_v39 = vmul.f32 1.442695, %v994_v14  ;;  %2348 = vmatmul.mubr.msk.f32.gmra.mxu1 %vm868_vm4, %v3574_v45  ;;  %v1057_v47 = vmul.f32 1.442695, %v995_v11  ;;  %v3580_v16 = vpop.eup %2729  ;;  %v1436_v14 = vunpack.c.l.bf16 %v2808_v4 }
 0x2d0   :  { %v964_v1 = vpop.xlane.xlu1 %963  ;;  %1393 = vmatprep.mubr.f32.mxu1 %v2838_v61 }
 0x2d1   :  { %2735 = vpow2.f32 %v1055_v39  ;;  %v996_v52 = vsub.f32 %v3207_v41, %v964_v1  ;;  %v2809_v1 = vld [vmem:[%s4047_s0 + $0x20] sm:$0xff] }
 0x2d2   :  { %2737 = vpow2.f32 %v1057_v47  ;;  %v3585_v42 = vpop.eup %2731  ;;  %v1439_v47 = vunpack.c.h.bf16 %v2809_v1 }
 0x2d3   :  { %2349 = vmatmul.mubr.msk.f32.gmra.mxu1 %vm868_vm4, %v3580_v16  ;;  %v1059_v38 = vmul.f32 1.442695, %v996_v52 }
 0x2d4   :  { %1399 = vmatprep.mubr.f32.mxu1 %v2838_v61 }
 0x2d5   :  { %2739 = vpow2.f32 %v1059_v38 }
 0x2d7   :  { %2350 = vmatmul.mubr.msk.f32.gmra.mxu1 %vm868_vm4, %v3585_v42 }
 0x2d8   :  { %1405 = vmatprep.mubr.f32.mxu1 %v2838_v61 }
 0x2da   :  { %v3590_v23 = vpop.eup %2733 }
 0x2db   :  { %2351 = vmatmul.mubr.msk.f32.gmra.mxu1 %vm868_vm4, %v3590_v23 }
 0x2dc   :  { %1411 = vmatprep.mubr.f32.mxu1 %v2838_v61 }
 0x2de   :  { %v3595_v41 = vpop.eup %2735 }
 0x2df   :  { %2352 = vmatmul.mubr.msk.f32.gmra.mxu1 %vm868_vm4, %v3595_v41  ;;  %v3600_v19 = vpop.eup %2737 }
 0x2e0   :  { %1417 = vmatprep.mubr.f32.mxu1 %v2838_v61 }
 0x2e2   :  { %v3605_v24 = vpop.eup %2739 }
 0x2e3   :  { %2353 = vmatmul.mubr.msk.f32.gmra.mxu1 %vm868_vm4, %v3600_v19 }
 0x2e4   :  { %1423 = vmatprep.mubr.f32.mxu1 %v2838_v61  ;;  %v1430_v61 = vunpack.c.l.bf16 %v2805_v55  ;;  %v1438_v55 = vunpack.c.l.bf16 %v2809_v1 }
 0x2e7   :  { %2354 = vmatmul.mubr.msk.f32.gmra.mxu1 %vm868_vm4, %v3605_v24 }
 0x32b   :  { %v1239_v22 = vpop.f32.mrf.mxu1 }
 0x32c   :  { %v1494_v6 = vmul.f32 %v1430_v61, %v1239_v22 }
 0x32d   :  { %v1241_v28 = vpop.f32.mrf.mxu1 }
 0x32e   :  { %v1495_v51 = vmul.f32 %v1431_v26, %v1241_v28  ;;  %v2810_v28 = vld [vmem:[%s4047_s0 + $0x28] sm:$0xff] }
 0x32f   :  { %v1245_v40 = vpop.f32.mrf.mxu1 }
 0x330   :  { %2355 = vmatprep.mubr.msk.f32.mxu0 %vm308_vm0, %v1495_v51  ;;  %v1496_v57 = vmul.f32 %v1432_v44, %v1245_v40  ;;  %v1441_v51 = vunpack.c.h.bf16 %v2810_v28  ;;  %v2811_v44 = vld [vmem:[%s4047_s0 + $0x30] sm:$0xff] }
 0x331   :  { %v1247_v48 = vpop.f32.mrf.mxu1  ;;  %1746 = vmatmul.mubr.f32.vlgmr.msra.gmra.mxu0 %v1494_v6 }
 0x332   :  { %v1497_v9 = vmul.f32 %v1433_v25, %v1247_v48  ;;  %v1440_v25 = vunpack.c.l.bf16 %v2810_v28  ;;  %v1443_v48 = vunpack.c.h.bf16 %v2811_v44 }
 0x333   :  { %v1251_v59 = vpop.f32.mrf.mxu1 }
 0x334   :  { %2356 = vmatprep.mubr.msk.f32.mxu0 %vm308_vm0, %v1497_v9  ;;  %v1498_v8 = vmul.f32 %v1434_v60, %v1251_v59  ;;  %v2812_v60 = vld [vmem:[%s4047_s0 + $0x38] sm:$0xff] }
 0x335   :  { %v1253_v30 = vpop.f32.mrf.mxu1  ;;  %1751 = vmatmul.mubr.f32.gmra.mxu0 %v1496_v57 }
 0x336   :  { %v1499_v15 = vmul.f32 %v1435_v63, %v1253_v30  ;;  %v1442_v63 = vunpack.c.l.bf16 %v2811_v44  ;;  %v1445_v30 = vunpack.c.h.bf16 %v2812_v60 }
 0x337   :  { %v1257_v18 = vpop.f32.mrf.mxu1 }
 0x338   :  { %2357 = vmatprep.mubr.msk.f32.mxu0 %vm308_vm0, %v1499_v15  ;;  %v1500_v52 = vmul.f32 %v1436_v14, %v1257_v18  ;;  %v2813_v14 = vld [vmem:[%s4047_s0 + $0x40] sm:$0xff] }
 0x339   :  { %v1259_v11 = vpop.f32.mrf.mxu1  ;;  %1756 = vmatmul.mubr.f32.gmra.mxu0 %v1498_v8 }
 0x33a   :  { %v1501_v39 = vmul.f32 %v1437_v2, %v1259_v11  ;;  %v1444_v2 = vunpack.c.l.bf16 %v2812_v60  ;;  %v1447_v11 = vunpack.c.h.bf16 %v2813_v14 }
 0x33b   :  { %v1263_v38 = vpop.f32.mrf.mxu1 }
 0x33c   :  { %2358 = vmatprep.mubr.msk.f32.mxu0 %vm308_vm0, %v1501_v39  ;;  %v1502_v61 = vmul.f32 %v1438_v55, %v1263_v38  ;;  %v2814_v55 = vld [vmem:[%s4047_s0 + $0x48] sm:$0xff] }
 0x33d   :  { %v1265_v26 = vpop.f32.mrf.mxu1  ;;  %1761 = vmatmul.mubr.f32.gmra.mxu0 %v1500_v52  ;;  %v1448_v28 = vunpack.c.l.bf16 %v2814_v55 }
 0x33e   :  { %v1503_v22 = vmul.f32 %v1439_v47, %v1265_v26  ;;  %v1446_v47 = vunpack.c.l.bf16 %v2813_v14  ;;  %v1449_v26 = vunpack.c.h.bf16 %v2814_v55 }
 0x33f   :  { %v1269_v36 = vpop.f32.mrf.mxu1 }
 0x340   :  { %2359 = vmatprep.mubr.msk.f32.mxu0 %vm308_vm0, %v1503_v22  ;;  %v1504_v9 = vmul.f32 %v1440_v25, %v1269_v36  ;;  %v2815_v25 = vld [vmem:[%s4047_s0 + $0x50] sm:$0xff] }
 0x341   :  { %1766 = vmatmul.mubr.f32.gmra.mxu0 %v1502_v61  ;;  %v1271_v6 = vpop.f32.mrf.mxu1 }
 0x342   :  { %v1505_v40 = vmul.f32 %v1441_v51, %v1271_v6  ;;  %v1451_v6 = vunpack.c.h.bf16 %v2815_v25 }
 0x343   :  { %v1275_v31 = vpop.f32.mrf.mxu1 }
 0x344   :  { %2360 = vmatprep.mubr.msk.f32.mxu0 %vm308_vm0, %v1505_v40  ;;  %v1506_v15 = vmul.f32 %v1442_v63, %v1275_v31  ;;  %v2816_v63 = vld [vmem:[%s4047_s0 + $0x58] sm:$0xff] }
 0x345   :  { %v1277_v57 = vpop.f32.mrf.mxu1  ;;  %1771 = vmatmul.mubr.f32.gmra.mxu0 %v1504_v9 }
 0x346   :  { %v1507_v59 = vmul.f32 %v1443_v48, %v1277_v57  ;;  %v1450_v48 = vunpack.c.l.bf16 %v2815_v25  ;;  %v1453_v57 = vunpack.c.h.bf16 %v2816_v63 }
 0x347   :  { %v1281_v4 = vpop.f32.mrf.mxu1 }
 0x348   :  { %2361 = vmatprep.mubr.msk.f32.mxu0 %vm308_vm0, %v1507_v59  ;;  %v1508_v39 = vmul.f32 %v1444_v2, %v1281_v4  ;;  %v2817_v2 = vld [vmem:[%s4047_s0 + $0x60] sm:$0xff] }
 0x349   :  { %v1283_v8 = vpop.f32.mrf.mxu1  ;;  %1776 = vmatmul.mubr.f32.gmra.mxu0 %v1506_v15 }
 0x34a   :  { %v1509_v18 = vmul.f32 %v1445_v30, %v1283_v8  ;;  %v1452_v30 = vunpack.c.l.bf16 %v2816_v63  ;;  %v1455_v8 = vunpack.c.h.bf16 %v2817_v2 }
 0x34b   :  { %v1287_v1 = vpop.f32.mrf.mxu1 }
 0x34c   :  { %2362 = vmatprep.mubr.msk.f32.mxu0 %vm308_vm0, %v1509_v18  ;;  %v1510_v22 = vmul.f32 %v1446_v47, %v1287_v1  ;;  %v2818_v47 = vld [vmem:[%s4047_s0 + $0x68] sm:$0xff] }
 0x34d   :  { %v1289_v52 = vpop.f32.mrf.mxu1  ;;  %1781 = vmatmul.mubr.f32.gmra.mxu0 %v1508_v39 }
 0x34e   :  { %v1511_v38 = vmul.f32 %v1447_v11, %v1289_v52  ;;  %v1454_v11 = vunpack.c.l.bf16 %v2817_v2  ;;  %v1457_v52 = vunpack.c.h.bf16 %v2818_v47 }
 0x34f   :  { %v1293_v61 = vpop.f32.mrf.mxu1 }
 0x350   :  { %2363 = vmatprep.mubr.msk.f32.mxu0 %vm308_vm0, %v1511_v38  ;;  %v1512_v40 = vmul.f32 %v1448_v28, %v1293_v61  ;;  %v2819_v28 = vld [vmem:[%s4047_s0 + $0x70] sm:$0xff] }
 0x351   :  { %v1295_v51 = vpop.f32.mrf.mxu1  ;;  %1786 = vmatmul.mubr.f32.gmra.mxu0 %v1510_v22 }
 0x352   :  { %v1513_v36 = vmul.f32 %v1449_v26, %v1295_v51  ;;  %v1456_v26 = vunpack.c.l.bf16 %v2818_v47  ;;  %v1459_v51 = vunpack.c.h.bf16 %v2819_v28 }
 0x353   :  { %v1299_v44 = vpop.f32.mrf.mxu1 }
 0x354   :  { %2364 = vmatprep.mubr.msk.f32.mxu0 %vm308_vm0, %v1513_v36  ;;  %v1514_v59 = vmul.f32 %v1450_v48, %v1299_v44  ;;  %v2820_v48 = vld [vmem:[%s4047_s0 + $0x78] sm:$0xff] }
 0x355   :  { %v1301_v9 = vpop.f32.mrf.mxu1  ;;  %1791 = vmatmul.mubr.f32.gmra.mxu0 %v1512_v40 }
 0x356   :  { %v1515_v31 = vmul.f32 %v1451_v6, %v1301_v9  ;;  %v1458_v6 = vunpack.c.l.bf16 %v2819_v28  ;;  %v1461_v9 = vunpack.c.h.bf16 %v2820_v48 }
 0x357   :  { %v1305_v60 = vpop.f32.mrf.mxu1 }
 0x358   :  { %2365 = vmatprep.mubr.msk.f32.mxu0 %vm308_vm0, %v1515_v31  ;;  %v1516_v18 = vmul.f32 %v1452_v30, %v1305_v60  ;;  %v2821_v30 = vld [vmem:[%s4047_s0 + $0x80] sm:$0xff] }
 0x359   :  { %v1307_v15 = vpop.f32.mrf.mxu1  ;;  %1796 = vmatmul.mubr.f32.gmra.mxu0 %v1514_v59 }
 0x35a   :  { %v1517_v4 = vmul.f32 %v1453_v57, %v1307_v15  ;;  %v1460_v57 = vunpack.c.l.bf16 %v2820_v48  ;;  %v1463_v15 = vunpack.c.h.bf16 %v2821_v30 }
 0x35b   :  { %v1311_v14 = vpop.f32.mrf.mxu1 }
 0x35c   :  { %2366 = vmatprep.mubr.msk.f32.mxu0 %vm308_vm0, %v1517_v4  ;;  %v1518_v38 = vmul.f32 %v1454_v11, %v1311_v14  ;;  %v2822_v11 = vld [vmem:[%s4047_s0 + $0x88] sm:$0xff] }
 0x35d   :  { %v1313_v39 = vpop.f32.mrf.mxu1  ;;  %1801 = vmatmul.mubr.f32.gmra.mxu0 %v1516_v18 }
 0x35e   :  { %v1519_v1 = vmul.f32 %v1455_v8, %v1313_v39  ;;  %v1462_v8 = vunpack.c.l.bf16 %v2821_v30  ;;  %v1465_v39 = vunpack.c.h.bf16 %v2822_v11 }
 0x35f   :  { %v1317_v55 = vpop.f32.mrf.mxu1 }
 0x360   :  { %2367 = vmatprep.mubr.msk.f32.mxu0 %vm308_vm0, %v1519_v1  ;;  %v1520_v36 = vmul.f32 %v1456_v26, %v1317_v55  ;;  %v2823_v26 = vld [vmem:[%s4047_s0 + $0x90] sm:$0xff] }
 0x361   :  { %v1319_v22 = vpop.f32.mrf.mxu1  ;;  %1806 = vmatmul.mubr.f32.gmra.mxu0 %v1518_v38 }
 0x362   :  { %v1521_v61 = vmul.f32 %v1457_v52, %v1319_v22  ;;  %v1464_v52 = vunpack.c.l.bf16 %v2822_v11  ;;  %v1467_v22 = vunpack.c.h.bf16 %v2823_v26 }
 0x363   :  { %v1323_v25 = vpop.f32.mrf.mxu1 }
 0x364   :  { %2368 = vmatprep.mubr.msk.f32.mxu0 %vm308_vm0, %v1521_v61  ;;  %v1522_v31 = vmul.f32 %v1458_v6, %v1323_v25  ;;  %v2824_v6 = vld [vmem:[%s4047_s0 + $0x98] sm:$0xff] }
 0x365   :  { %v1325_v40 = vpop.f32.mrf.mxu1  ;;  %1811 = vmatmul.mubr.f32.gmra.mxu0 %v1520_v36 }
 0x366   :  { %v1523_v44 = vmul.f32 %v1459_v51, %v1325_v40  ;;  %v1466_v51 = vunpack.c.l.bf16 %v2823_v26  ;;  %v1469_v40 = vunpack.c.h.bf16 %v2824_v6 }
 0x367   :  { %v1329_v63 = vpop.f32.mrf.mxu1 }
 0x368   :  { %2369 = vmatprep.mubr.msk.f32.mxu0 %vm308_vm0, %v1523_v44  ;;  %v1524_v4 = vmul.f32 %v1460_v57, %v1329_v63  ;;  %v2825_v57 = vld [vmem:[%s4047_s0 + $0xa0] sm:$0xff] }
 0x369   :  { %v1331_v59 = vpop.f32.mrf.mxu1  ;;  %1816 = vmatmul.mubr.f32.gmra.mxu0 %v1522_v31 }
 0x36a   :  { %v1525_v60 = vmul.f32 %v1461_v9, %v1331_v59  ;;  %v1468_v9 = vunpack.c.l.bf16 %v2824_v6  ;;  %v1471_v59 = vunpack.c.h.bf16 %v2825_v57 }
 0x36b   :  { %v1335_v2 = vpop.f32.mrf.mxu1 }
 0x36c   :  { %2370 = vmatprep.mubr.msk.f32.mxu0 %vm308_vm0, %v1525_v60  ;;  %v1526_v1 = vmul.f32 %v1462_v8, %v1335_v2  ;;  %v2826_v8 = vld [vmem:[%s4047_s0 + $0xa8] sm:$0xff] }
 0x36d   :  { %v1337_v18 = vpop.f32.mrf.mxu1  ;;  %1821 = vmatmul.mubr.f32.gmra.mxu0 %v1524_v4 }
 0x36e   :  { %v1527_v14 = vmul.f32 %v1463_v15, %v1337_v18  ;;  %v1470_v15 = vunpack.c.l.bf16 %v2825_v57  ;;  %v1473_v18 = vunpack.c.h.bf16 %v2826_v8 }
 0x36f   :  { %v1341_v47 = vpop.f32.mrf.mxu1 }
 0x370   :  { %2371 = vmatprep.mubr.msk.f32.mxu0 %vm308_vm0, %v1527_v14  ;;  %v1528_v61 = vmul.f32 %v1464_v52, %v1341_v47  ;;  %v2827_v52 = vld [vmem:[%s4047_s0 + $0xb0] sm:$0xff] }
 0x371   :  { %v1343_v38 = vpop.f32.mrf.mxu1  ;;  %1826 = vmatmul.mubr.f32.gmra.mxu0 %v1526_v1 }
 0x372   :  { %v1529_v55 = vmul.f32 %v1465_v39, %v1343_v38  ;;  %v1472_v39 = vunpack.c.l.bf16 %v2826_v8  ;;  %v1475_v38 = vunpack.c.h.bf16 %v2827_v52 }
 0x373   :  { %v1347_v28 = vpop.f32.mrf.mxu1 }
 0x374   :  { %2372 = vmatprep.mubr.msk.f32.mxu0 %vm308_vm0, %v1529_v55  ;;  %v1530_v44 = vmul.f32 %v1466_v51, %v1347_v28  ;;  %v2828_v51 = vld [vmem:[%s4047_s0 + $0xb8] sm:$0xff] }
 0x375   :  { %v1349_v36 = vpop.f32.mrf.mxu1  ;;  %1831 = vmatmul.mubr.f32.gmra.mxu0 %v1528_v61 }
 0x376   :  { %v1531_v25 = vmul.f32 %v1467_v22, %v1349_v36  ;;  %v1474_v22 = vunpack.c.l.bf16 %v2827_v52  ;;  %v1477_v36 = vunpack.c.h.bf16 %v2828_v51 }
 0x377   :  { %v1353_v48 = vpop.f32.mrf.mxu1 }
 0x378   :  { %2373 = vmatprep.mubr.msk.f32.mxu0 %vm308_vm0, %v1531_v25  ;;  %v1532_v60 = vmul.f32 %v1468_v9, %v1353_v48  ;;  %v2829_v9 = vld [vmem:[%s4047_s0 + $0xc0] sm:$0xff] }
 0x379   :  { %v1355_v31 = vpop.f32.mrf.mxu1  ;;  %1836 = vmatmul.mubr.f32.gmra.mxu0 %v1530_v44 }
 0x37a   :  { %v1533_v63 = vmul.f32 %v1469_v40, %v1355_v31  ;;  %v1476_v40 = vunpack.c.l.bf16 %v2828_v51  ;;  %v1479_v31 = vunpack.c.h.bf16 %v2829_v9 }
 0x37b   :  { %v1359_v30 = vpop.f32.mrf.mxu1 }
 0x37c   :  { %2374 = vmatprep.mubr.msk.f32.mxu0 %vm308_vm0, %v1533_v63  ;;  %v1534_v14 = vmul.f32 %v1470_v15, %v1359_v30  ;;  %v2830_v15 = vld [vmem:[%s4047_s0 + $0xc8] sm:$0xff] }
 0x37d   :  { %v1361_v4 = vpop.f32.mrf.mxu1  ;;  %1841 = vmatmul.mubr.f32.gmra.mxu0 %v1532_v60 }
 0x37e   :  { %v1535_v2 = vmul.f32 %v1471_v59, %v1361_v4  ;;  %v1478_v59 = vunpack.c.l.bf16 %v2829_v9  ;;  %v1481_v4 = vunpack.c.h.bf16 %v2830_v15 }
 0x37f   :  { %v1365_v11 = vpop.f32.mrf.mxu1 }
 0x380   :  { %2375 = vmatprep.mubr.msk.f32.mxu0 %vm308_vm0, %v1535_v2  ;;  %v1536_v55 = vmul.f32 %v1472_v39, %v1365_v11  ;;  %v2831_v39 = vld [vmem:[%s4047_s0 + $0xd0] sm:$0xff] }
 0x381   :  { %v1367_v1 = vpop.f32.mrf.mxu1  ;;  %1846 = vmatmul.mubr.f32.gmra.mxu0 %v1534_v14 }
 0x382   :  { %v1537_v47 = vmul.f32 %v1473_v18, %v1367_v1  ;;  %v1480_v18 = vunpack.c.l.bf16 %v2830_v15  ;;  %v1483_v1 = vunpack.c.h.bf16 %v2831_v39  ;;  %v1908_v15 = vld [vmem:[%s4051_s5 + $0x10] sm:$0xff] }
 0x383   :  { %v1371_v26 = vpop.f32.mrf.mxu1 }
 0x384   :  { %2376 = vmatprep.mubr.msk.f32.mxu0 %vm308_vm0, %v1537_v47  ;;  %v1538_v25 = vmul.f32 %v1474_v22, %v1371_v26  ;;  %v2832_v22 = vld [vmem:[%s4047_s0 + $0xd8] sm:$0xff] }
 0x385   :  { %v1373_v61 = vpop.f32.mrf.mxu1  ;;  %1851 = vmatmul.mubr.f32.gmra.mxu0 %v1536_v55 }
 0x386   :  { %v1539_v28 = vmul.f32 %v1475_v38, %v1373_v61  ;;  %v1482_v38 = vunpack.c.l.bf16 %v2831_v39  ;;  %v1485_v61 = vunpack.c.h.bf16 %v2832_v22 }
 0x387   :  { %v1377_v6 = vpop.f32.mrf.mxu1 }
 0x388   :  { %2377 = vmatprep.mubr.msk.f32.mxu0 %vm308_vm0, %v1539_v28  ;;  %v1540_v63 = vmul.f32 %v1476_v40, %v1377_v6  ;;  %v2833_v40 = vld [vmem:[%s4047_s0 + $0xe0] sm:$0xff] }
 0x389   :  { %v1379_v44 = vpop.f32.mrf.mxu1  ;;  %1856 = vmatmul.mubr.f32.gmra.mxu0 %v1538_v25 }
 0x38a   :  { %v1541_v48 = vmul.f32 %v1477_v36, %v1379_v44  ;;  %v1484_v36 = vunpack.c.l.bf16 %v2832_v22  ;;  %v1487_v44 = vunpack.c.h.bf16 %v2833_v40  ;;  %v2836_v22 = vld [vmem:[%s4047_s0 + $0xf8] sm:$0xff] }
 0x38b   :  { %v1383_v57 = vpop.f32.mrf.mxu1 }
 0x38c   :  { %2378 = vmatprep.mubr.msk.f32.mxu0 %vm308_vm0, %v1541_v48  ;;  %v1542_v2 = vmul.f32 %v1478_v59, %v1383_v57 }
 0x38d   :  { %v1385_v60 = vpop.f32.mrf.mxu1  ;;  %1861 = vmatmul.mubr.f32.gmra.mxu0 %v1540_v63  ;;  %v1909_v63 = vld [vmem:[%s4051_s5 + $0x18] sm:$0xff] }
 0x38e   :  { %v1543_v30 = vmul.f32 %v1479_v31, %v1385_v60  ;;  %v1486_v31 = vunpack.c.l.bf16 %v2833_v40  ;;  %v2834_v60 = vld [vmem:[%s4047_s0 + $0xe8] sm:$0xff] }
 0x38f   :  { %v1389_v8 = vpop.f32.mrf.mxu1 }
 0x390   :  { %2379 = vmatprep.mubr.msk.f32.mxu0 %vm308_vm0, %v1543_v30  ;;  %v1544_v47 = vmul.f32 %v1480_v18, %v1389_v8  ;;  %v1489_v30 = vunpack.c.h.bf16 %v2834_v60  ;;  %v1488_v8 = vunpack.c.l.bf16 %v2834_v60 }
 0x391   :  { %v1391_v14 = vpop.f32.mrf.mxu1  ;;  %1866 = vmatmul.mubr.f32.gmra.mxu0 %v1542_v2 }
 0x392   :  { %v1545_v11 = vmul.f32 %v1481_v4, %v1391_v14 }
 0x393   :  { %v1395_v52 = vpop.f32.mrf.mxu1 }
 0x394   :  { %2380 = vmatprep.mubr.msk.f32.mxu0 %vm308_vm0, %v1545_v11  ;;  %v1546_v28 = vmul.f32 %v1482_v38, %v1395_v52  ;;  %v2835_v11 = vld [vmem:[%s4047_s0 + $0xf0] sm:$0xff] }
 0x395   :  { %v1397_v55 = vpop.f32.mrf.mxu1  ;;  %1871 = vmatmul.mubr.f32.gmra.mxu0 %v1544_v47  ;;  %v1491_v39 = vunpack.c.h.bf16 %v2835_v11  ;;  %v1490_v38 = vunpack.c.l.bf16 %v2835_v11 }
 0x396   :  { %v1547_v26 = vmul.f32 %v1483_v1, %v1397_v55  ;;  %v1906_v1 = vld [vmem:[%s4051_s5] sm:$0xff] }
 0x397   :  { %v1401_v51 = vpop.f32.mrf.mxu1 }
 0x398   :  { %2381 = vmatprep.mubr.msk.f32.mxu0 %vm308_vm0, %v1547_v26  ;;  %v1548_v48 = vmul.f32 %v1484_v36, %v1401_v51  ;;  %v1492_v36 = vunpack.c.l.bf16 %v2836_v22 }
 0x399   :  { %v1403_v25 = vpop.f32.mrf.mxu1  ;;  %1876 = vmatmul.mubr.f32.gmra.mxu0 %v1546_v28 }
 0x39a   :  { %v1549_v6 = vmul.f32 %v1485_v61, %v1403_v25  ;;  %v1493_v61 = vunpack.c.h.bf16 %v2836_v22 }
 0x39b   :  { %v1407_v9 = vpop.f32.mrf.mxu1 }
 0x39c   :  { %2382 = vmatprep.mubr.msk.f32.mxu1 %vm308_vm0, %v1549_v6  ;;  %v1550_v4 = vmul.f32 %v1486_v31, %v1407_v9 }
 0x39d   :  { %v1409_v57 = vpop.f32.mrf.mxu1  ;;  %1881 = vmatmul.mubr.f32.vlgmr.msra.gmra.mxu1 %v1548_v48 }
 0x39e   :  { %v1551_v59 = vmul.f32 %v1487_v44, %v1409_v57  ;;  %2515 = vmatpush3.msk.msra.mxu1 %vm357_vm1, %v3612_v7  ;;  %v1907_v7 = vld [vmem:[%s4051_s5 + $0x8] sm:$0xff] }
 0x39f   :  { %v1413_v2 = vpop.f32.mrf.mxu1  ;;  %2516 = vmatprep.subr.mxu1 %v1909_v63 }
 0x3a0   :  { %2383 = vmatprep.mubr.msk.f32.mxu1 %vm308_vm0, %v1551_v59  ;;  %2517 = vmatpush3.msra.mxu1 %v1909_v63  ;;  %v1552_v47 = vmul.f32 %v1488_v8, %v1413_v2 }
 0x3a1   :  { %v1415_v18 = vpop.f32.mrf.mxu1  ;;  %1886 = vmatmul.mubr.f32.gmra.mxu1 %v1550_v4  ;;  %2518 = vmatprep.subr.mxu1 %v1908_v15 }
 0x3a2   :  { %v1553_v14 = vmul.f32 %v1489_v30, %v1415_v18  ;;  %2519 = vmatpush3.msra.mxu1 %v1908_v15 }
 0x3a3   :  { %v1419_v52 = vpop.f32.mrf.mxu1  ;;  %2520 = vmatprep.subr.mxu1 %v1907_v7 }
 0x3a4   :  { %2384 = vmatprep.mubr.msk.f32.mxu1 %vm308_vm0, %v1553_v14  ;;  %2521 = vmatpush3.msra.mxu1 %v1907_v7  ;;  %v1554_v28 = vmul.f32 %v1490_v38, %v1419_v52 }
 0x3a5   :  { %v1421_v55 = vpop.f32.mrf.mxu1  ;;  %1891 = vmatmul.mubr.f32.gmra.mxu1 %v1552_v47  ;;  %2522 = vmatprep.subr.mxu1 %v1906_v1 }
 0x3a6   :  { %v1555_v26 = vmul.f32 %v1491_v39, %v1421_v55  ;;  %2523 = vmatpush3.msra.mxu1 %v1906_v1 }
 0x3a7   :  { %v1425_v51 = vpop.f32.mrf.mxu1 }
 0x3a8   :  { %2385 = vmatprep.mubr.msk.f32.mxu1 %vm308_vm0, %v1555_v26  ;;  %v1556_v40 = vmul.f32 %v1492_v36, %v1425_v51 }
 0x3a9   :  { %v1427_v25 = vpop.f32.mrf.mxu1  ;;  %1896 = vmatmul.mubr.f32.gmra.mxu1 %v1554_v28 }
 0x3aa   :  { %v1557_v6 = vmul.f32 %v1493_v61, %v1427_v25 }
 0x3ac   :  { %2386 = vmatprep.mubr.msk.f32.mxu1 %vm308_vm0, %v1557_v6  ;;  %vm2203_vm0 = vcmask 195584  }
 0x3ad   :  { %1901 = vmatmul.mubr.f32.gmra.mxu1 %v1556_v40 }
 0x3ae   :  { %2524 = vmatprep.mubr.msk.f32.mxu1 %vm868_vm4, %v3228_v49 }
 0x3b1   :  { %2525 = vmatmul.mubr.msk.f32.vlgmr.msra.gmra.mxu1 %vm868_vm4, %v3242_v21 }
 0x3b2   :  { %2527 = vmatprep.mubr.msk.f32.mxu1 %vm868_vm4, %v3257_v29 }
 0x3b5   :  { %2528 = vmatmul.mubr.msk.f32.gmra.mxu1 %vm868_vm4, %v3274_v37 }
 0x3b6   :  { %2530 = vmatprep.mubr.msk.f32.mxu1 %vm868_vm4, %v3294_v53 }
 0x3b9   :  { %2531 = vmatmul.mubr.msk.f32.gmra.mxu1 %vm868_vm4, %v3318_v3 }
 0x3ba   :  { %2533 = vmatprep.mubr.msk.f32.mxu1 %vm868_vm4, %v3339_v12 }
 0x3bd   :  { %2534 = vmatmul.mubr.msk.f32.gmra.mxu1 %vm868_vm4, %v3359_v13 }
 0x3be   :  { %2536 = vmatprep.mubr.msk.f32.mxu1 %vm868_vm4, %v3379_v20 }
 0x3c1   :  { %2537 = vmatmul.mubr.msk.f32.gmra.mxu1 %vm868_vm4, %v3404_v35 }
 0x3c2   :  { %2539 = vmatprep.mubr.msk.f32.mxu1 %vm868_vm4, %v3426_v46 }
 0x3c5   :  { %2540 = vmatmul.mubr.msk.f32.gmra.mxu1 %vm868_vm4, %v3447_v56 }
 0x3c6   :  { %2542 = vmatprep.mubr.msk.f32.mxu1 %vm868_vm4, %v3457_v58 }
 0x3c9   :  { %2543 = vmatmul.mubr.msk.f32.gmra.mxu1 %vm868_vm4, %v3469_v5 }
 0x3ca   :  { %2545 = vmatprep.mubr.msk.f32.mxu1 %vm868_vm4, %v3479_v62 }
 0x3cd   :  { %2546 = vmatmul.mubr.msk.f32.gmra.mxu1 %vm868_vm4, %v3488_v17 }
 0x3ce   :  { %2548 = vmatprep.mubr.msk.f32.mxu1 %vm868_vm4, %v3497_v43 }
 0x3d1   :  { %2549 = vmatmul.mubr.msk.f32.gmra.mxu1 %vm868_vm4, %v3515_v27 }
 0x3d2   :  { %2551 = vmatprep.mubr.msk.f32.mxu1 %vm868_vm4, %v3527_v32 }
 0x3d5   :  { %2552 = vmatmul.mubr.msk.f32.gmra.mxu1 %vm868_vm4, %v3535_v10 }
 0x3d6   :  { %2554 = vmatprep.mubr.msk.f32.mxu1 %vm868_vm4, %v3542_v54 }
 0x3d9   :  { %2555 = vmatmul.mubr.msk.f32.gmra.mxu1 %vm868_vm4, %v3550_v50 }
 0x3da   :  { %2557 = vmatprep.mubr.msk.f32.mxu1 %vm868_vm4, %v3556_v0 }
 0x3dd   :  { %2558 = vmatmul.mubr.msk.f32.gmra.mxu1 %vm868_vm4, %v3561_v34 }
 0x3de   :  { %2560 = vmatprep.mubr.msk.f32.mxu1 %vm868_vm4, %v3567_v33 }
 0x3e1   :  { %2561 = vmatmul.mubr.msk.f32.gmra.mxu1 %vm868_vm4, %v3574_v45 }
 0x3e2   :  { %2563 = vmatprep.mubr.msk.f32.mxu1 %vm868_vm4, %v3580_v16 }
 0x3e5   :  { %2564 = vmatmul.mubr.msk.f32.gmra.mxu1 %vm868_vm4, %v3585_v42 }
 0x3e6   :  { %2566 = vmatprep.mubr.msk.f32.mxu1 %vm868_vm4, %v3590_v23 }
 0x3e9   :  { %2567 = vmatmul.mubr.msk.f32.gmra.mxu1 %vm868_vm4, %v3595_v41 }
 0x3ea   :  { %2569 = vmatprep.mubr.msk.f32.mxu1 %vm868_vm4, %v3600_v19 }
 0x3ed   :  { %2570 = vmatmul.mubr.msk.f32.gmra.mxu1 %vm868_vm4, %v3605_v24 }
 0x3f1   :  { %v3822_v49 = vpop.f32.mrf.mxu0 }
 0x3f3   :  { %v1749_v21 = vpop.f32.mrf.mxu0 }
 0x3f5   :  { %v3824_v29 = vpop.f32.mrf.mxu0 }
 0x3f7   :  { %v1754_v37 = vpop.f32.mrf.mxu0 }
 0x3f9   :  { %v3826_v53 = vpop.f32.mrf.mxu0 }
 0x3fb   :  { %v1759_v3 = vpop.f32.mrf.mxu0 }
 0x3fd   :  { %v3828_v12 = vpop.f32.mrf.mxu0 }
 0x3ff   :  { %v1764_v13 = vpop.f32.mrf.mxu0 }
 0x401   :  { %v3830_v20 = vpop.f32.mrf.mxu0 }
 0x403   :  { %v1769_v35 = vpop.f32.mrf.mxu0 }
 0x405   :  { %v3832_v46 = vpop.f32.mrf.mxu0 }
 0x407   :  { %v1774_v56 = vpop.f32.mrf.mxu0 }
 0x409   :  { %v3834_v58 = vpop.f32.mrf.mxu0 }
 0x40b   :  { %v1779_v5 = vpop.f32.mrf.mxu0 }
 0x40d   :  { %v3836_v62 = vpop.f32.mrf.mxu0 }
 0x40f   :  { %v1784_v17 = vpop.f32.mrf.mxu0 }
 0x411   :  { %v3838_v43 = vpop.f32.mrf.mxu0 }
 0x413   :  { %v1789_v27 = vpop.f32.mrf.mxu0 }
 0x415   :  { %v3840_v32 = vpop.f32.mrf.mxu0 }
 0x417   :  { %v1794_v10 = vpop.f32.mrf.mxu0 }
 0x419   :  { %v3842_v54 = vpop.f32.mrf.mxu0 }
 0x41b   :  { %v1799_v50 = vpop.f32.mrf.mxu0 }
 0x41d   :  { %v3844_v0 = vpop.f32.mrf.mxu0 }
 0x41f   :  { %v1804_v34 = vpop.f32.mrf.mxu0 }
 0x421   :  { %v3846_v33 = vpop.f32.mrf.mxu0 }
 0x423   :  { %v1809_v45 = vpop.f32.mrf.mxu0 }
 0x425   :  { %v3848_v16 = vpop.f32.mrf.mxu0 }
 0x427   :  { %v1814_v42 = vpop.f32.mrf.mxu0 }
 0x429   :  { %v3850_v23 = vpop.f32.mrf.mxu0 }
 0x42b   :  { %v1819_v41 = vpop.f32.mrf.mxu0 }
 0x42d   :  { %v3852_v19 = vpop.f32.mrf.mxu0 }
 0x42f   :  { %v1824_v24 = vpop.f32.mrf.mxu0 }
 0x431   :  { %v3854_v44 = vpop.f32.mrf.mxu0 }
 0x433   :  { %v1829_v48 = vpop.f32.mrf.mxu0 }
 0x435   :  { %v3856_v9 = vpop.f32.mrf.mxu0 }
 0x437   :  { %v1834_v31 = vpop.f32.mrf.mxu0 }
 0x439   :  { %v3858_v63 = vpop.f32.mrf.mxu0 }
 0x43b   :  { %v1839_v57 = vpop.f32.mrf.mxu0 }
 0x43d   :  { %v3860_v59 = vpop.f32.mrf.mxu0 }
 0x43f   :  { %v1844_v60 = vpop.f32.mrf.mxu0 }
 0x441   :  { %v3862_v30 = vpop.f32.mrf.mxu0 }
 0x443   :  { %v1849_v15 = vpop.f32.mrf.mxu0 }
 0x445   :  { %v3864_v4 = vpop.f32.mrf.mxu0 }
 0x447   :  { %v1854_v2 = vpop.f32.mrf.mxu0 }
 0x449   :  { %v3866_v8 = vpop.f32.mrf.mxu0 }
 0x44b   :  { %v1859_v7 = vpop.f32.mrf.mxu0 }
 0x44d   :  { %v3868_v18 = vpop.f32.mrf.mxu0 }
 0x44f   :  { %v1864_v14 = vpop.f32.mrf.mxu0 }
 0x451   :  { %v3870_v11 = vpop.f32.mrf.mxu0 }
 0x453   :  { %v1869_v39 = vpop.f32.mrf.mxu0 }
 0x455   :  { %v3872_v1 = vpop.f32.mrf.mxu0 }
 0x457   :  { %v1874_v47 = vpop.f32.mrf.mxu0 }
 0x459   :  { %v3874_v52 = vpop.f32.mrf.mxu0 }
 0x45b   :  { %v1879_v38 = vpop.f32.mrf.mxu0 }
 0x45d   :  { %v3876_v55 = vpop.f32.mrf.mxu1 }
 0x45f   :  { %v1884_v26 = vpop.f32.mrf.mxu1 }
 0x461   :  { %v3878_v22 = vpop.f32.mrf.mxu1 }
 0x463   :  { %v1889_v61 = vpop.f32.mrf.mxu1 }
 0x465   :  { %v3880_v28 = vpop.f32.mrf.mxu1 }
 0x467   :  { %v1894_v51 = vpop.f32.mrf.mxu1 }
 0x469   :  { %v3882_v36 = vpop.f32.mrf.mxu1 }
 0x46b   :  { %v1899_v25 = vpop.f32.mrf.mxu1 }
 0x46d   :  { %v3884_v6 = vpop.f32.mrf.mxu1 }
 0x46f   :  { %v1904_v40 = vpop.f32.mrf.mxu1 }
 0x471   :  { %v2526_v21 = vpop.f32.mrf.mxu1 }
 0x472   :  { %2741 = vrcp.f32 %v2526_v21 }
 0x473   :  { %v1980_v37 = vpop.f32.mrf.mxu1 }
 0x474   :  { %2743 = vrcp.f32 %v1980_v37 }
 0x475   :  { %v2529_v3 = vpop.f32.mrf.mxu1 }
 0x476   :  { %2745 = vrcp.f32 %v2529_v3 }
 0x477   :  { %v1990_v13 = vpop.f32.mrf.mxu1 }
 0x478   :  { %2747 = vrcp.f32 %v1990_v13 }
 0x479   :  { %v2532_v35 = vpop.f32.mrf.mxu1 }
 0x47a   :  { %2749 = vrcp.f32 %v2532_v35 }
 0x47b   :  { %v2000_v56 = vpop.f32.mrf.mxu1 }
 0x47c   :  { %2751 = vrcp.f32 %v2000_v56 }
 0x47d   :  { %v2535_v5 = vpop.f32.mrf.mxu1 }
 0x47e   :  { %2753 = vrcp.f32 %v2535_v5 }
 0x47f   :  { %v2742_v17 = vpop.eup %2741  ;;  %v2010_v27 = vpop.f32.mrf.mxu1 }
 0x480   :  { %v2172_v10 = vmul.f32 %v2742_v17, %v3824_v29  ;;  %2755 = vrcp.f32 %v2010_v27 }
 0x481   :  { %v2744_v50 = vpop.eup %2743  ;;  %v2538_v34 = vpop.f32.mrf.mxu1 }
 0x482   :  { %2205 = vst.msk [vmem:[%s4052_s6 + $0x8] sm:$0xff] %vm2203_vm0, %v2172_v10  ;;  %v2171_v45 = vmul.f32 %v2744_v50, %v3822_v49  ;;  %2757 = vrcp.f32 %v2538_v34 }
 0x483   :  { %v2746_v42 = vpop.eup %2745  ;;  %v2020_v41 = vpop.f32.mrf.mxu1 }
 0x484   :  { %2204 = vst.msk [vmem:[%s4052_s6] sm:$0xff] %vm2203_vm0, %v2171_v45  ;;  %v2174_v29 = vmul.f32 %v2746_v42, %v3828_v12  ;;  %2759 = vrcp.f32 %v2020_v41 }
 0x485   :  { %v2748_v24 = vpop.eup %2747  ;;  %v2541_v48 = vpop.f32.mrf.mxu1 }
 0x486   :  { %2207 = vst.msk [vmem:[%s4052_s6 + $0x18] sm:$0xff] %vm2203_vm0, %v2174_v29  ;;  %v2173_v49 = vmul.f32 %v2748_v24, %v3826_v53  ;;  %2761 = vrcp.f32 %v2541_v48 }
 0x487   :  { %v2750_v31 = vpop.eup %2749  ;;  %v2030_v57 = vpop.f32.mrf.mxu1 }
 0x488   :  { %2206 = vst.msk [vmem:[%s4052_s6 + $0x10] sm:$0xff] %vm2203_vm0, %v2173_v49  ;;  %v2176_v12 = vmul.f32 %v2750_v31, %v3832_v46  ;;  %2763 = vrcp.f32 %v2030_v57 }
 0x489   :  { %v2752_v60 = vpop.eup %2751  ;;  %v2544_v15 = vpop.f32.mrf.mxu1 }
 0x48a   :  { %2209 = vst.msk [vmem:[%s4052_s6 + $0x28] sm:$0xff] %vm2203_vm0, %v2176_v12  ;;  %v2175_v53 = vmul.f32 %v2752_v60, %v3830_v20  ;;  %2765 = vrcp.f32 %v2544_v15 }
 0x48b   :  { %v2754_v2 = vpop.eup %2753  ;;  %v2040_v7 = vpop.f32.mrf.mxu1 }
 0x48c   :  { %2208 = vst.msk [vmem:[%s4052_s6 + $0x20] sm:$0xff] %vm2203_vm0, %v2175_v53  ;;  %v2178_v46 = vmul.f32 %v2754_v2, %v3836_v62  ;;  %2767 = vrcp.f32 %v2040_v7 }
 0x48d   :  { %v2756_v14 = vpop.eup %2755  ;;  %v2547_v39 = vpop.f32.mrf.mxu1 }
 0x48e   :  { %2211 = vst.msk [vmem:[%s4052_s6 + $0x38] sm:$0xff] %vm2203_vm0, %v2178_v46  ;;  %v2177_v20 = vmul.f32 %v2756_v14, %v3834_v58  ;;  %2769 = vrcp.f32 %v2547_v39 }
 0x48f   :  { %v2758_v47 = vpop.eup %2757  ;;  %v2050_v38 = vpop.f32.mrf.mxu1 }
 0x490   :  { %2210 = vst.msk [vmem:[%s4052_s6 + $0x30] sm:$0xff] %vm2203_vm0, %v2177_v20  ;;  %v2180_v62 = vmul.f32 %v2758_v47, %v3840_v32  ;;  %2771 = vrcp.f32 %v2050_v38 }
 0x491   :  { %v2760_v26 = vpop.eup %2759  ;;  %v2550_v61 = vpop.f32.mrf.mxu1 }
 0x492   :  { %2213 = vst.msk [vmem:[%s4052_s6 + $0x48] sm:$0xff] %vm2203_vm0, %v2180_v62  ;;  %v2179_v58 = vmul.f32 %v2760_v26, %v3838_v43  ;;  %2773 = vrcp.f32 %v2550_v61 }
 0x493   :  { %v2762_v51 = vpop.eup %2761  ;;  %v2060_v25 = vpop.f32.mrf.mxu1 }
 0x494   :  { %2212 = vst.msk [vmem:[%s4052_s6 + $0x40] sm:$0xff] %vm2203_vm0, %v2179_v58  ;;  %v2182_v32 = vmul.f32 %v2762_v51, %v3844_v0  ;;  %2775 = vrcp.f32 %v2060_v25 }
 0x495   :  { %v2764_v40 = vpop.eup %2763  ;;  %v2553_v21 = vpop.f32.mrf.mxu1 }
 0x496   :  { %2215 = vst.msk [vmem:[%s4052_s6 + $0x58] sm:$0xff] %vm2203_vm0, %v2182_v32  ;;  %v2181_v43 = vmul.f32 %v2764_v40, %v3842_v54  ;;  %2777 = vrcp.f32 %v2553_v21 }
 0x497   :  { %v2766_v37 = vpop.eup %2765  ;;  %v2070_v3 = vpop.f32.mrf.mxu1 }
 0x498   :  { %2214 = vst.msk [vmem:[%s4052_s6 + $0x50] sm:$0xff] %vm2203_vm0, %v2181_v43  ;;  %v2184_v0 = vmul.f32 %v2766_v37, %v3848_v16  ;;  %2779 = vrcp.f32 %v2070_v3 }
 0x499   :  { %v2768_v13 = vpop.eup %2767  ;;  %v2556_v35 = vpop.f32.mrf.mxu1 }
 0x49a   :  { %2217 = vst.msk [vmem:[%s4052_s6 + $0x68] sm:$0xff] %vm2203_vm0, %v2184_v0  ;;  %v2183_v54 = vmul.f32 %v2768_v13, %v3846_v33  ;;  %2781 = vrcp.f32 %v2556_v35 }
 0x49b   :  { %v2770_v56 = vpop.eup %2769  ;;  %v2080_v5 = vpop.f32.mrf.mxu1 }
 0x49c   :  { %2216 = vst.msk [vmem:[%s4052_s6 + $0x60] sm:$0xff] %vm2203_vm0, %v2183_v54  ;;  %v2186_v16 = vmul.f32 %v2770_v56, %v3852_v19  ;;  %2783 = vrcp.f32 %v2080_v5 }
 0x49d   :  { %v2772_v17 = vpop.eup %2771  ;;  %v2559_v27 = vpop.f32.mrf.mxu1 }
 0x49e   :  { %2219 = vst.msk [vmem:[%s4052_s6 + $0x78] sm:$0xff] %vm2203_vm0, %v2186_v16  ;;  %v2185_v33 = vmul.f32 %v2772_v17, %v3850_v23  ;;  %2785 = vrcp.f32 %v2559_v27 }
 0x49f   :  { %v2774_v10 = vpop.eup %2773  ;;  %v2090_v50 = vpop.f32.mrf.mxu1 }
 0x4a0   :  { %2218 = vst.msk [vmem:[%s4052_s6 + $0x70] sm:$0xff] %vm2203_vm0, %v2185_v33  ;;  %v2188_v19 = vmul.f32 %v2774_v10, %v3856_v9  ;;  %2787 = vrcp.f32 %v2090_v50 }
 0x4a1   :  { %v2776_v34 = vpop.eup %2775  ;;  %v2562_v45 = vpop.f32.mrf.mxu1 }
 0x4a2   :  { %2221 = vst.msk [vmem:[%s4052_s6 + $0x88] sm:$0xff] %vm2203_vm0, %v2188_v19  ;;  %v2187_v23 = vmul.f32 %v2776_v34, %v3854_v44  ;;  %2789 = vrcp.f32 %v2562_v45 }
 0x4a3   :  { %v2778_v42 = vpop.eup %2777  ;;  %v2100_v41 = vpop.f32.mrf.mxu1 }
 0x4a4   :  { %2220 = vst.msk [vmem:[%s4052_s6 + $0x80] sm:$0xff] %vm2203_vm0, %v2187_v23  ;;  %v2190_v9 = vmul.f32 %v2778_v42, %v3860_v59  ;;  %2791 = vrcp.f32 %v2100_v41 }
 0x4a5   :  { %v2780_v29 = vpop.eup %2779  ;;  %v2565_v24 = vpop.f32.mrf.mxu1 }
 0x4a6   :  { %2223 = vst.msk [vmem:[%s4052_s6 + $0x98] sm:$0xff] %vm2203_vm0, %v2190_v9  ;;  %v2189_v44 = vmul.f32 %v2780_v29, %v3858_v63  ;;  %2793 = vrcp.f32 %v2565_v24 }
 0x4a7   :  { %v2782_v48 = vpop.eup %2781  ;;  %v2110_v49 = vpop.f32.mrf.mxu1 }
 0x4a8   :  { %2222 = vst.msk [vmem:[%s4052_s6 + $0x90] sm:$0xff] %vm2203_vm0, %v2189_v44  ;;  %v2192_v59 = vmul.f32 %v2782_v48, %v3864_v4  ;;  %2795 = vrcp.f32 %v2110_v49 }
 0x4a9   :  { %v2784_v31 = vpop.eup %2783  ;;  %v2568_v57 = vpop.f32.mrf.mxu1 }
 0x4aa   :  { %2225 = vst.msk [vmem:[%s4052_s6 + $0xa8] sm:$0xff] %vm2203_vm0, %v2192_v59  ;;  %v2191_v63 = vmul.f32 %v2784_v31, %v3862_v30  ;;  %2797 = vrcp.f32 %v2568_v57 }
 0x4ab   :  { %v2786_v12 = vpop.eup %2785  ;;  %v2120_v60 = vpop.f32.mrf.mxu1 }
 0x4ac   :  { %2224 = vst.msk [vmem:[%s4052_s6 + $0xa0] sm:$0xff] %vm2203_vm0, %v2191_v63  ;;  %v2194_v4 = vmul.f32 %v2786_v12, %v3868_v18  ;;  %2799 = vrcp.f32 %v2120_v60 }
 0x4ad   :  { %v2788_v15 = vpop.eup %2787  ;;  %v2571_v53 = vpop.f32.mrf.mxu1 }
 0x4ae   :  { %2227 = vst.msk [vmem:[%s4052_s6 + $0xb8] sm:$0xff] %vm2203_vm0, %v2194_v4  ;;  %v2193_v30 = vmul.f32 %v2788_v15, %v3866_v8  ;;  %2801 = vrcp.f32 %v2571_v53 }
 0x4af   :  { %v2790_v2 = vpop.eup %2789  ;;  %v2130_v7 = vpop.f32.mrf.mxu1 }
 0x4b0   :  { %2226 = vst.msk [vmem:[%s4052_s6 + $0xb0] sm:$0xff] %vm2203_vm0, %v2193_v30  ;;  %v2196_v18 = vmul.f32 %v2790_v2, %v3872_v1  ;;  %2803 = vrcp.f32 %v2130_v7 }
 0x4b1   :  { %v2792_v46 = vpop.eup %2791 }
 0x4b2   :  { %2229 = vst.msk [vmem:[%s4052_s6 + $0xc8] sm:$0xff] %vm2203_vm0, %v2196_v18  ;;  %v2195_v14 = vmul.f32 %v2792_v46, %v3870_v11 }
 0x4b3   :  { %v2794_v8 = vpop.eup %2793 }
 0x4b4   :  { %2228 = vst.msk [vmem:[%s4052_s6 + $0xc0] sm:$0xff] %vm2203_vm0, %v2195_v14  ;;  %v2198_v39 = vmul.f32 %v2794_v8, %v3876_v55 }
 0x4b5   :  { %v2796_v20 = vpop.eup %2795 }
 0x4b6   :  { %2231 = vst.msk [vmem:[%s4052_s6 + $0xd8] sm:$0xff] %vm2203_vm0, %v2198_v39  ;;  %v2197_v1 = vmul.f32 %v2796_v20, %v3874_v52 }
 0x4b7   :  { %v2798_v47 = vpop.eup %2797 }
 0x4b8   :  { %2230 = vst.msk [vmem:[%s4052_s6 + $0xd0] sm:$0xff] %vm2203_vm0, %v2197_v1  ;;  %v2200_v11 = vmul.f32 %v2798_v47, %v3880_v28 }
 0x4b9   :  { %v2800_v38 = vpop.eup %2799 }
 0x4ba   :  { %2233 = vst.msk [vmem:[%s4052_s6 + $0xe8] sm:$0xff] %vm2203_vm0, %v2200_v11  ;;  %v2199_v55 = vmul.f32 %v2800_v38, %v3878_v22 }
 0x4bb   :  { %v2802_v62 = vpop.eup %2801 }
 0x4bc   :  { %2232 = vst.msk [vmem:[%s4052_s6 + $0xe0] sm:$0xff] %vm2203_vm0, %v2199_v55  ;;  %v2202_v52 = vmul.f32 %v2802_v62, %v3884_v6 }
 0x4bd   :  { %v2804_v26 = vpop.eup %2803 }
 0x4be   :  { %2235 = vst.msk [vmem:[%s4052_s6 + $0xf8] sm:$0xff] %vm2203_vm0, %v2202_v52  ;;  %v2201_v28 = vmul.f32 %v2804_v26, %v3882_v36 }
 0x4c0   :  { %2234 = vst.msk [vmem:[%s4052_s6 + $0xf0] sm:$0xff] %vm2203_vm0, %v2201_v28 }

// kernel: _lambda_.5
= control target key start
LH: loop header
LB: loop body
LE: loop exit
PB: predicated region body
PF: predicated region fallthrough
CT: control target
= control target key end

     0   :  { %s1215_s9 = smov 0   ;;  %s1217_s10 = smov 0   ;;  %s1807_s0 = inlined_call_operand.vmem [shape: f32[2,24,8,8], index: 0, kind: input, shape index: {}]   ;;  %s1808_s1 = inlined_call_operand.vmem [shape: f32[2,24,8,12], index: 1, kind: input, shape index: {}]   ;;  %s1809_s2 = inlined_call_operand.vmem [shape: f32[2,4,4,8,8], index: 2, kind: output, shape index: {}]  }
   0x1   :  { %s1219_s11 = smov 0  }
   0x2 LB: > { %s24_s12 = sadd.s32 1, %s1190_s10  ;;  %p1123_p0 = scmp.ge.s32.totalorder %s1194_s11, 1  ;;  %s1194_s11 = sphi %s1219_s11, %s12_s11   ;;  %s1190_s10 = sphi %s1217_s10, %s1811_s10   ;;  %s1186_s9 = sphi %s1215_s9, %s1810_s9  }
   0x3   : > { %p26_p1 = scmp.ge.s32.totalorder %s24_s12, 2  ;;  %p146_p2 = scmp.lt.s32.totalorder %s1194_s11, 3 }
   0x5   : > { %s1813_s12 = smov (%p26_p1, %s24_s12), 0  ;;  %p147_p3 = pnand %p1123_p0, %p146_p2 }
   0x6   : > { %p182_p4 = scmp.lt.s32.totalorder (!%p147_p3), %s1186_s9, 1  ;;  %s1196_s17 = smov (!%p147_p3), 124  }
   0x7   : > { %150 = sbr.rel (%p147_p3) target bundleno = 328 (0x148), region = 28  ;;  %s1197_s18 = smov (!%p147_p3), 125  }
   0x8   : > { %s1198_s19 = smov (!%p147_p3), 126   ;;  %s1199_s24 = smov (!%p147_p3), 127  }
   0xc   : > { %s1815_s9 = smov (!%p182_p4, %s1186_s9), 1  ;;  %vm374_vm0 = vcmask 64512  }
   0xd   : > { %s1143_s13 = smul.u32 192, %s1815_s9  ;;  %s1142_s23 = sshll.u32 %s1815_s9, 7 }
   0xe   : > { %s1480_s27 = scalar_lea.vmem %s1809_s2, %s1142_s23 }
   0xf   : > { %s1241_s16 = scalar_lea.vmem %s1808_s1, %s1143_s13  ;;  %s1408_s22 = scalar_lea.vmem %s1807_s0, %s1143_s13 }
  0x10   : > { %v1244_v0 = vld [vmem:[%s1241_s16 + $0x10] sm:$0xff]  ;;  %v1247_v1 = vld [vmem:[%s1241_s16] sm:$0xff]  ;;  %v1254_v2 = vld [vmem:[%s1241_s16 + $0x18] sm:$0xff] }
  0x11   : > { %282 = vrot.lane.b32.xlu1 %v1244_v0, %s1196_s17  ;;  %278 = vrot.lane.b32.xlu0 %v1247_v1, %s1196_s17  ;;  %v1257_v3 = vld [vmem:[%s1241_s16 + $0x8] sm:$0xff]  ;;  %v1267_v5 = vld [vmem:[%s1241_s16 + $0x20] sm:$0xff] }
  0x12   : > { %v1264_v4 = vld [vmem:[%s1241_s16 + $0x28] sm:$0xff]  ;;  %v1274_v6 = vld [vmem:[%s1241_s16 + $0x38] sm:$0xff]  ;;  %v1277_v7 = vld [vmem:[%s1241_s16 + $0x30] sm:$0xff] }
  0x13   : > { %v1284_v8 = vld [vmem:[%s1241_s16 + $0x48] sm:$0xff]  ;;  %v1287_v9 = vld [vmem:[%s1241_s16 + $0x40] sm:$0xff]  ;;  %v1294_v10 = vld [vmem:[%s1241_s16 + $0x58] sm:$0xff] }
  0x14   : > { %v1297_v11 = vld [vmem:[%s1241_s16 + $0x50] sm:$0xff]  ;;  %v1304_v12 = vld [vmem:[%s1241_s16 + $0x68] sm:$0xff]  ;;  %v1307_v13 = vld [vmem:[%s1241_s16 + $0x60] sm:$0xff] }
  0x15   : > { %284 = vrot.lane.b32.xlu1 %v1254_v2, %s1196_s17  ;;  %280 = vrot.lane.b32.xlu0 %v1257_v3, %s1196_s17  ;;  %v1314_v14 = vld [vmem:[%s1241_s16 + $0x78] sm:$0xff]  ;;  %v1317_v15 = vld [vmem:[%s1241_s16 + $0x70] sm:$0xff] }
  0x16   : > { %v1324_v16 = vld [vmem:[%s1241_s16 + $0x88] sm:$0xff]  ;;  %v1327_v17 = vld [vmem:[%s1241_s16 + $0x80] sm:$0xff]  ;;  %v1334_v18 = vld [vmem:[%s1241_s16 + $0x98] sm:$0xff] }
  0x17   : > { %v1337_v19 = vld [vmem:[%s1241_s16 + $0x90] sm:$0xff]  ;;  %v1344_v20 = vld [vmem:[%s1241_s16 + $0xa8] sm:$0xff]  ;;  %v1347_v21 = vld [vmem:[%s1241_s16 + $0xa0] sm:$0xff] }
  0x18   : > { %v1354_v22 = vld [vmem:[%s1241_s16 + $0xb8] sm:$0xff]  ;;  %v1357_v23 = vld [vmem:[%s1241_s16 + $0xb0] sm:$0xff]  ;;  %v1415_v26 = vld [vmem:[%s1408_s22] sm:$0xff] }
  0x19   : > { %288 = vrot.lane.b32.xlu1 %v1264_v4, %s1196_s17  ;;  %286 = vrot.lane.b32.xlu0 %v1267_v5, %s1196_s17  ;;  %v1418_v27 = vld [vmem:[%s1408_s22 + $0x10] sm:$0xff]  ;;  %v1425_v28 = vld [vmem:[%s1408_s22 + $0x8] sm:$0xff] }
  0x1a   : > { %v1429_v31 = vld [vmem:[%s1408_s22 + $0x18] sm:$0xff]  ;;  %v1438_v35 = vld [vmem:[%s1408_s22 + $0x20] sm:$0xff]  ;;  %v1444_v41 = vld [vmem:[%s1408_s22 + $0x28] sm:$0xff] }
  0x1b   : > { %v1453_v46 = vld [vmem:[%s1408_s22 + $0x38] sm:$0xff]  ;;  %v1456_v47 = vld [vmem:[%s1408_s22 + $0x30] sm:$0xff]  ;;  %v1469_v57 = vld [vmem:[%s1408_s22 + $0x48] sm:$0xff] }
  0x1c   : > { %v1472_v58 = vld [vmem:[%s1408_s22 + $0x40] sm:$0xff] }
  0x1d   : > { %292 = vrot.lane.b32.xlu1 %v1274_v6, %s1196_s17  ;;  %290 = vrot.lane.b32.xlu0 %v1277_v7, %s1196_s17 }
  0x21   : > { %296 = vrot.lane.b32.xlu1 %v1284_v8, %s1196_s17  ;;  %294 = vrot.lane.b32.xlu0 %v1287_v9, %s1196_s17 }
  0x25   : > { %300 = vrot.lane.b32.xlu1 %v1294_v10, %s1196_s17  ;;  %298 = vrot.lane.b32.xlu0 %v1297_v11, %s1196_s17 }
  0x29   : > { %304 = vrot.lane.b32.xlu1 %v1304_v12, %s1196_s17  ;;  %302 = vrot.lane.b32.xlu0 %v1307_v13, %s1196_s17 }
  0x2d   : > { %308 = vrot.lane.b32.xlu1 %v1314_v14, %s1196_s17  ;;  %306 = vrot.lane.b32.xlu0 %v1317_v15, %s1196_s17 }
  0x31   : > { %312 = vrot.lane.b32.xlu1 %v1324_v16, %s1196_s17  ;;  %310 = vrot.lane.b32.xlu0 %v1327_v17, %s1196_s17 }
  0x35   : > { %316 = vrot.lane.b32.xlu1 %v1334_v18, %s1196_s17  ;;  %314 = vrot.lane.b32.xlu0 %v1337_v19, %s1196_s17 }
  0x39   : > { %320 = vrot.lane.b32.xlu1 %v1344_v20, %s1196_s17  ;;  %318 = vrot.lane.b32.xlu0 %v1347_v21, %s1196_s17 }
  0x3d   : > { %324 = vrot.lane.b32.xlu1 %v1354_v22, %s1196_s17  ;;  %322 = vrot.lane.b32.xlu0 %v1357_v23, %s1196_s17 }
  0x41   : > { %477 = vrot.lane.b32.xlu1 %v1257_v3, %s1197_s18  ;;  %475 = vrot.lane.b32.xlu0 %v1247_v1, %s1197_s18 }
  0x45   : > { %481 = vrot.lane.b32.xlu1 %v1254_v2, %s1197_s18  ;;  %479 = vrot.lane.b32.xlu0 %v1244_v0, %s1197_s18 }
  0x49   : > { %485 = vrot.lane.b32.xlu1 %v1264_v4, %s1197_s18  ;;  %483 = vrot.lane.b32.xlu0 %v1267_v5, %s1197_s18 }
  0x4d   : > { %489 = vrot.lane.b32.xlu1 %v1274_v6, %s1197_s18  ;;  %487 = vrot.lane.b32.xlu0 %v1277_v7, %s1197_s18 }
  0x51   : > { %493 = vrot.lane.b32.xlu1 %v1284_v8, %s1197_s18  ;;  %491 = vrot.lane.b32.xlu0 %v1287_v9, %s1197_s18 }
  0x55   : > { %497 = vrot.lane.b32.xlu1 %v1294_v10, %s1197_s18  ;;  %495 = vrot.lane.b32.xlu0 %v1297_v11, %s1197_s18 }
  0x59   : > { %501 = vrot.lane.b32.xlu1 %v1304_v12, %s1197_s18  ;;  %499 = vrot.lane.b32.xlu0 %v1307_v13, %s1197_s18 }
  0x5d   : > { %505 = vrot.lane.b32.xlu1 %v1314_v14, %s1197_s18  ;;  %503 = vrot.lane.b32.xlu0 %v1317_v15, %s1197_s18 }
  0x61   : > { %509 = vrot.lane.b32.xlu1 %v1324_v16, %s1197_s18  ;;  %507 = vrot.lane.b32.xlu0 %v1327_v17, %s1197_s18 }
  0x65   : > { %513 = vrot.lane.b32.xlu1 %v1334_v18, %s1197_s18  ;;  %511 = vrot.lane.b32.xlu0 %v1337_v19, %s1197_s18 }
  0x69   : > { %517 = vrot.lane.b32.xlu1 %v1344_v20, %s1197_s18  ;;  %515 = vrot.lane.b32.xlu0 %v1347_v21, %s1197_s18 }
  0x6d   : > { %521 = vrot.lane.b32.xlu1 %v1354_v22, %s1197_s18  ;;  %519 = vrot.lane.b32.xlu0 %v1357_v23, %s1197_s18 }
  0x71   : > { %674 = vrot.lane.b32.xlu1 %v1257_v3, %s1198_s19  ;;  %672 = vrot.lane.b32.xlu0 %v1247_v1, %s1198_s19 }
  0x75   : > { %678 = vrot.lane.b32.xlu1 %v1254_v2, %s1198_s19  ;;  %676 = vrot.lane.b32.xlu0 %v1244_v0, %s1198_s19 }
  0x79   : > { %682 = vrot.lane.b32.xlu1 %v1264_v4, %s1198_s19  ;;  %680 = vrot.lane.b32.xlu0 %v1267_v5, %s1198_s19 }
  0x7d   : > { %686 = vrot.lane.b32.xlu1 %v1274_v6, %s1198_s19  ;;  %684 = vrot.lane.b32.xlu0 %v1277_v7, %s1198_s19 }
  0x81   : > { %690 = vrot.lane.b32.xlu1 %v1284_v8, %s1198_s19  ;;  %688 = vrot.lane.b32.xlu0 %v1287_v9, %s1198_s19 }
  0x83   : > { %v283_v24 = vpop.permute.xlu1 %282  ;;  %v279_v25 = vpop.permute.xlu0 %278 }
  0x84   : > { %v350_v29 = vmul.f32 %v279_v25, %v1415_v26  ;;  %v352_v33 = vmul.f32 %v283_v24, %v1418_v27 }
  0x85   : > { %694 = vrot.lane.b32.xlu1 %v1294_v10, %s1198_s19  ;;  %692 = vrot.lane.b32.xlu0 %v1297_v11, %s1198_s19 }
  0x86   : > { %v375_v36 = vsel %vm374_vm0, %v350_v29, 0.0  ;;  %v378_v43 = vsel %vm374_vm0, %v352_v33, 0.0 }
  0x87   : > { %v285_v30 = vpop.permute.xlu1 %284  ;;  %v281_v32 = vpop.permute.xlu0 %280 }
  0x88   : > { %v351_v34 = vmul.f32 %v281_v32, %v1425_v28  ;;  %v353_v37 = vmul.f32 %v285_v30, %v1429_v31  ;;  %v1489_v30 = vld [vmem:[%s1408_s22 + $0x58] sm:$0xff]  ;;  %v1492_v32 = vld [vmem:[%s1408_s22 + $0x50] sm:$0xff] }
  0x89   : > { %698 = vrot.lane.b32.xlu1 %v1304_v12, %s1198_s19  ;;  %696 = vrot.lane.b32.xlu0 %v1307_v13, %s1198_s19 }
  0x8a   : > { %v376_v38 = vsel %vm374_vm0, %v351_v34, 0.0  ;;  %v380_v48 = vsel %vm374_vm0, %v353_v37, 0.0 }
  0x8b   : > { %v377_v39 = vadd.f32 %v376_v38, %v375_v36  ;;  %v289_v40 = vpop.permute.xlu1 %288  ;;  %v287_v42 = vpop.permute.xlu0 %286 }
  0x8c   : > { %v354_v44 = vmul.f32 %v287_v42, %v1438_v35  ;;  %v355_v49 = vmul.f32 %v289_v40, %v1444_v41  ;;  %v1508_v42 = vld [vmem:[%s1408_s22 + $0x60] sm:$0xff] }
  0x8d   : > { %v379_v45 = vadd.f32 %v378_v43, %v377_v39  ;;  %710 = vrot.lane.b32.xlu1 %v1334_v18, %s1198_s19  ;;  %708 = vrot.lane.b32.xlu0 %v1337_v19, %s1198_s19 }
  0x8e   : > { %v382_v53 = vsel %vm374_vm0, %v354_v44, 0.0  ;;  %v384_v59 = vsel %vm374_vm0, %v355_v49, 0.0 }
  0x8f   : > { %v381_v50 = vadd.f32 %v380_v48, %v379_v45  ;;  %v293_v51 = vpop.permute.xlu1 %292  ;;  %v291_v52 = vpop.permute.xlu0 %290 }
  0x90   : > { %v357_v54 = vmul.f32 %v293_v51, %v1453_v46  ;;  %v356_v55 = vmul.f32 %v291_v52, %v1456_v47  ;;  %v1522_v52 = vld [vmem:[%s1408_s22 + $0x70] sm:$0xff] }
  0x91   : > { %v383_v56 = vadd.f32 %v382_v53, %v381_v50  ;;  %871 = vrot.lane.b32.xlu1 %v1257_v3, %s1199_s24  ;;  %869 = vrot.lane.b32.xlu0 %v1247_v1, %s1199_s24 }
  0x92   : > { %v387_v60 = vsel %vm374_vm0, %v357_v54, 0.0  ;;  %v386_v61 = vsel %vm374_vm0, %v356_v55, 0.0 }
  0x93   : > { %v385_v62 = vadd.f32 %v384_v59, %v383_v56  ;;  %v297_v63 = vpop.permute.xlu1 %296  ;;  %v295_v24 = vpop.permute.xlu0 %294  ;;  %v388_v29 = vadd.f32 %v387_v60, %v386_v61 }
  0x94   : > { %v359_v1 = vmul.f32 %v297_v63, %v1469_v57  ;;  %v358_v3 = vmul.f32 %v295_v24, %v1472_v58 }
  0x95   : > { %v419_v25 = vmul.f32 0.16666667, %v385_v62  ;;  %883 = vrot.lane.b32.xlu1 %v1274_v6, %s1199_s24  ;;  %881 = vrot.lane.b32.xlu0 %v1277_v7, %s1199_s24  ;;  %v1505_v7 = vld [vmem:[%s1408_s22 + $0x68] sm:$0xff]  ;;  %v1538_v62 = vld [vmem:[%s1408_s22 + $0x80] sm:$0xff] }
  0x96   : > { %v389_v33 = vsel %vm374_vm0, %v358_v3, 0.0  ;;  %v391_v38 = vsel %vm374_vm0, %v359_v1, 0.0 }
  0x97   : > { %423 = vst.msk [vmem:[%s1480_s27] sm:$0xff] %vm374_vm0, %v419_v25  ;;  %v390_v34 = vadd.f32 %v389_v33, %v388_v29  ;;  %v301_v36 = vpop.permute.xlu1 %300  ;;  %v299_v37 = vpop.permute.xlu0 %298 }
  0x98   : > { %v361_v39 = vmul.f32 %v301_v36, %v1489_v30  ;;  %v360_v6 = vmul.f32 %v299_v37, %v1492_v32  ;;  %v1549_v36 = vld [vmem:[%s1408_s22 + $0x98] sm:$0xff]  ;;  %v1552_v37 = vld [vmem:[%s1408_s22 + $0x90] sm:$0xff] }
  0x99   : > { %v392_v40 = vadd.f32 %v391_v38, %v390_v34  ;;  %895 = vrot.lane.b32.xlu1 %v1304_v12, %s1199_s24  ;;  %893 = vrot.lane.b32.xlu0 %v1307_v13, %s1199_s24  ;;  %v1519_v13 = vld [vmem:[%s1408_s22 + $0x78] sm:$0xff] }
  0x9a   : > { %v393_v43 = vsel %vm374_vm0, %v360_v6, 0.0  ;;  %v395_v49 = vsel %vm374_vm0, %v361_v39, 0.0 }
  0x9b   : > { %v394_v44 = vadd.f32 %v393_v43, %v392_v40  ;;  %v305_v45 = vpop.permute.xlu1 %304  ;;  %v303_v48 = vpop.permute.xlu0 %302 }
  0x9c   : > { %v363_v50 = vmul.f32 %v305_v45, %v1505_v7  ;;  %v362_v51 = vmul.f32 %v303_v48, %v1508_v42  ;;  %v1566_v48 = vld [vmem:[%s1408_s22 + $0xa0] sm:$0xff] }
  0x9d   : > { %v396_v12 = vadd.f32 %v395_v49, %v394_v44  ;;  %907 = vrot.lane.b32.xlu1 %v1334_v18, %s1199_s24  ;;  %905 = vrot.lane.b32.xlu0 %v1337_v19, %s1199_s24  ;;  %v1535_v19 = vld [vmem:[%s1408_s22 + $0x88] sm:$0xff] }
  0x9e   : > { %v398_v53 = vsel %vm374_vm0, %v363_v50, 0.0  ;;  %v397_v54 = vsel %vm374_vm0, %v362_v51, 0.0 }
  0x9f   : > { %v420_v55 = vmul.f32 0.16666667, %v396_v12  ;;  %v309_v56 = vpop.permute.xlu1 %308  ;;  %v307_v59 = vpop.permute.xlu0 %306  ;;  %v399_v18 = vadd.f32 %v398_v53, %v397_v54 }
  0xa0   : > { %v365_v60 = vmul.f32 %v309_v56, %v1519_v13  ;;  %v364_v61 = vmul.f32 %v307_v59, %v1522_v52  ;;  %v1582_v56 = vld [vmem:[%s1408_s22 + $0xb0] sm:$0xff] }
  0xa1   : > { %424 = vst.msk [vmem:[%s1480_s27 + $0x20] sm:$0xff] %vm374_vm0, %v420_v55  ;;  %712 = vrot.lane.b32.xlu1 %v1347_v21, %s1198_s19  ;;  %700 = vrot.lane.b32.xlu0 %v1317_v15, %s1198_s19 }
  0xa2   : > { %v400_v63 = vsel %vm374_vm0, %v364_v61, 0.0  ;;  %v402_v25 = vsel %vm374_vm0, %v365_v60, 0.0 }
  0xa3   : > { %v401_v24 = vadd.f32 %v400_v63, %v399_v18  ;;  %v313_v1 = vpop.permute.xlu1 %312  ;;  %v311_v3 = vpop.permute.xlu0 %310 }
  0xa4   : > { %v367_v29 = vmul.f32 %v313_v1, %v1535_v19  ;;  %v366_v33 = vmul.f32 %v311_v3, %v1538_v62 }
  0xa5   : > { %v403_v34 = vadd.f32 %v402_v25, %v401_v24  ;;  %885 = vrot.lane.b32.xlu1 %v1287_v9, %s1199_s24  ;;  %873 = vrot.lane.b32.xlu0 %v1244_v0, %s1199_s24  ;;  %v1563_v0 = vld [vmem:[%s1408_s22 + $0xa8] sm:$0xff] }
  0xa6   : > { %v404_v38 = vsel %vm374_vm0, %v366_v33, 0.0  ;;  %v406_v43 = vsel %vm374_vm0, %v367_v29, 0.0 }
  0xa7   : > { %v405_v39 = vadd.f32 %v404_v38, %v403_v34  ;;  %v317_v6 = vpop.permute.xlu1 %316  ;;  %v315_v40 = vpop.permute.xlu0 %314 }
  0xa8   : > { %v369_v44 = vmul.f32 %v317_v6, %v1549_v36  ;;  %v368_v45 = vmul.f32 %v315_v40, %v1552_v37 }
  0xa9   : > { %v407_v9 = vadd.f32 %v406_v43, %v405_v39  ;;  %909 = vrot.lane.b32.xlu1 %v1347_v21, %s1199_s24  ;;  %897 = vrot.lane.b32.xlu0 %v1317_v15, %s1199_s24  ;;  %v1579_v15 = vld [vmem:[%s1408_s22 + $0xb8] sm:$0xff] }
  0xaa   : > { %v409_v49 = vsel %vm374_vm0, %v369_v44, 0.0  ;;  %v408_v50 = vsel %vm374_vm0, %v368_v45, 0.0 }
  0xab   : > { %v421_v51 = vmul.f32 0.16666667, %v407_v9  ;;  %v321_v12 = vpop.permute.xlu1 %320  ;;  %v319_v53 = vpop.permute.xlu0 %318  ;;  %v410_v21 = vadd.f32 %v409_v49, %v408_v50 }
  0xac   : > { %v371_v54 = vmul.f32 %v321_v12, %v1563_v0  ;;  %v370_v55 = vmul.f32 %v319_v53, %v1566_v48 }
  0xad   : > { %425 = vst.msk [vmem:[%s1480_s27 + $0x40] sm:$0xff] %vm374_vm0, %v421_v51  ;;  %714 = vrot.lane.b32.xlu1 %v1344_v20, %s1198_s19  ;;  %702 = vrot.lane.b32.xlu0 %v1314_v14, %s1198_s19 }
  0xae   : > { %v411_v59 = vsel %vm374_vm0, %v370_v55, 0.0  ;;  %v413_v63 = vsel %vm374_vm0, %v371_v54, 0.0 }
  0xaf   : > { %v412_v60 = vadd.f32 %v411_v59, %v410_v21  ;;  %v325_v61 = vpop.permute.xlu1 %324  ;;  %v323_v18 = vpop.permute.xlu0 %322 }
  0xb0   : > { %v373_v24 = vmul.f32 %v325_v61, %v1579_v15  ;;  %v372_v1 = vmul.f32 %v323_v18, %v1582_v56 }
  0xb1   : > { %v414_v3 = vadd.f32 %v413_v63, %v412_v60  ;;  %887 = vrot.lane.b32.xlu1 %v1284_v8, %s1199_s24  ;;  %875 = vrot.lane.b32.xlu0 %v1254_v2, %s1199_s24 }
  0xb2   : > { %v415_v25 = vsel %vm374_vm0, %v372_v1, 0.0  ;;  %v417_v38 = vsel %vm374_vm0, %v373_v24, 0.0 }
  0xb3   : > { %v416_v29 = vadd.f32 %v415_v25, %v414_v3  ;;  %v478_v33 = vpop.permute.xlu1 %477  ;;  %v476_v34 = vpop.permute.xlu0 %475 }
  0xb4   : > { %v548_v39 = vmul.f32 %v478_v33, %v1425_v28  ;;  %v547_v6 = vmul.f32 %v476_v34, %v1415_v26 }
  0xb5   : > { %v418_v40 = vadd.f32 %v417_v38, %v416_v29  ;;  %911 = vrot.lane.b32.xlu1 %v1344_v20, %s1199_s24  ;;  %899 = vrot.lane.b32.xlu0 %v1314_v14, %s1199_s24 }
  0xb6   : > { %v572_v2 = vsel %vm374_vm0, %v548_v39, 0.0  ;;  %v571_v8 = vsel %vm374_vm0, %v547_v6, 0.0 }
  0xb7   : > { %v422_v43 = vmul.f32 0.16666667, %v418_v40  ;;  %v482_v44 = vpop.permute.xlu1 %481  ;;  %v480_v45 = vpop.permute.xlu0 %479  ;;  %v573_v50 = vadd.f32 %v572_v2, %v571_v8 }
  0xb8   : > { %v550_v9 = vmul.f32 %v482_v44, %v1429_v31  ;;  %v549_v49 = vmul.f32 %v480_v45, %v1418_v27 }
  0xb9   : > { %426 = vst.msk [vmem:[%s1480_s27 + $0x60] sm:$0xff] %vm374_vm0, %v422_v43  ;;  %716 = vrot.lane.b32.xlu1 %v1357_v23, %s1198_s19  ;;  %704 = vrot.lane.b32.xlu0 %v1327_v17, %s1198_s19 }
  0xba   : > { %v574_v14 = vsel %vm374_vm0, %v549_v49, 0.0  ;;  %v576_v53 = vsel %vm374_vm0, %v550_v9, 0.0 }
  0xbb   : > { %v575_v20 = vadd.f32 %v574_v14, %v573_v50  ;;  %v486_v51 = vpop.permute.xlu1 %485  ;;  %v484_v12 = vpop.permute.xlu0 %483 }
  0xbc   : > { %v552_v54 = vmul.f32 %v486_v51, %v1444_v41  ;;  %v551_v55 = vmul.f32 %v484_v12, %v1438_v35 }
  0xbd   : > { %v577_v21 = vadd.f32 %v576_v53, %v575_v20  ;;  %889 = vrot.lane.b32.xlu1 %v1297_v11, %s1199_s24  ;;  %877 = vrot.lane.b32.xlu0 %v1267_v5, %s1199_s24 }
  0xbe   : > { %v578_v59 = vsel %vm374_vm0, %v551_v55, 0.0  ;;  %v580_v63 = vsel %vm374_vm0, %v552_v54, 0.0 }
  0xbf   : > { %v579_v60 = vadd.f32 %v578_v59, %v577_v21  ;;  %v490_v61 = vpop.permute.xlu1 %489  ;;  %v488_v18 = vpop.permute.xlu0 %487 }
  0xc0   : > { %v554_v24 = vmul.f32 %v490_v61, %v1453_v46  ;;  %v553_v1 = vmul.f32 %v488_v18, %v1456_v47 }
  0xc1   : > { %v581_v3 = vadd.f32 %v580_v63, %v579_v60  ;;  %913 = vrot.lane.b32.xlu1 %v1357_v23, %s1199_s24  ;;  %901 = vrot.lane.b32.xlu0 %v1327_v17, %s1199_s24 }
  0xc2   : > { %v583_v5 = vsel %vm374_vm0, %v554_v24, 0.0  ;;  %v582_v11 = vsel %vm374_vm0, %v553_v1, 0.0 }
  0xc3   : > { %v615_v25 = vmul.f32 0.16666667, %v581_v3  ;;  %v494_v29 = vpop.permute.xlu1 %493  ;;  %v492_v33 = vpop.permute.xlu0 %491  ;;  %v584_v39 = vadd.f32 %v583_v5, %v582_v11 }
  0xc4   : > { %v556_v34 = vmul.f32 %v494_v29, %v1469_v57  ;;  %v555_v38 = vmul.f32 %v492_v33, %v1472_v58 }
  0xc5   : > { %1128 = vst.msk [vmem:[%s1480_s27 + $0x8] sm:$0xff] %vm374_vm0, %v615_v25  ;;  %718 = vrot.lane.b32.xlu1 %v1354_v22, %s1198_s19  ;;  %706 = vrot.lane.b32.xlu0 %v1324_v16, %s1198_s19 }
  0xc6   : > { %v585_v17 = vsel %vm374_vm0, %v555_v38, 0.0  ;;  %v587_v2 = vsel %vm374_vm0, %v556_v34, 0.0 }
  0xc7   : > { %v586_v23 = vadd.f32 %v585_v17, %v584_v39  ;;  %v498_v6 = vpop.permute.xlu1 %497  ;;  %v496_v40 = vpop.permute.xlu0 %495 }
  0xc8   : > { %v558_v8 = vmul.f32 %v498_v6, %v1489_v30  ;;  %v557_v43 = vmul.f32 %v496_v40, %v1492_v32 }
  0xc9   : > { %v588_v44 = vadd.f32 %v587_v2, %v586_v23  ;;  %891 = vrot.lane.b32.xlu1 %v1294_v10, %s1199_s24  ;;  %879 = vrot.lane.b32.xlu0 %v1264_v4, %s1199_s24 }
  0xca   : > { %v589_v45 = vsel %vm374_vm0, %v557_v43, 0.0  ;;  %v591_v14 = vsel %vm374_vm0, %v558_v8, 0.0 }
  0xcb   : > { %v590_v9 = vadd.f32 %v589_v45, %v588_v44  ;;  %v502_v49 = vpop.permute.xlu1 %501  ;;  %v500_v50 = vpop.permute.xlu0 %499 }
  0xcc   : > { %v560_v20 = vmul.f32 %v502_v49, %v1505_v7  ;;  %v559_v51 = vmul.f32 %v500_v50, %v1508_v42 }
  0xcd   : > { %v592_v12 = vadd.f32 %v591_v14, %v590_v9  ;;  %915 = vrot.lane.b32.xlu1 %v1354_v22, %s1199_s24  ;;  %903 = vrot.lane.b32.xlu0 %v1324_v16, %s1199_s24 }
  0xce   : > { %v594_v4 = vsel %vm374_vm0, %v560_v20, 0.0  ;;  %v593_v10 = vsel %vm374_vm0, %v559_v51, 0.0 }
  0xcf   : > { %v616_v53 = vmul.f32 0.16666667, %v592_v12  ;;  %v506_v54 = vpop.permute.xlu1 %505  ;;  %v504_v55 = vpop.permute.xlu0 %503  ;;  %v595_v60 = vadd.f32 %v594_v4, %v593_v10 }
  0xd0   : > { %v562_v21 = vmul.f32 %v506_v54, %v1519_v13  ;;  %v561_v59 = vmul.f32 %v504_v55, %v1522_v52 }
  0xd1   : > { %1129 = vst.msk [vmem:[%s1480_s27 + $0x28] sm:$0xff] %vm374_vm0, %v616_v53 }
  0xd2   : > { %v596_v61 = vsel %vm374_vm0, %v561_v59, 0.0  ;;  %v598_v16 = vsel %vm374_vm0, %v562_v21, 0.0 }
  0xd3   : > { %v597_v22 = vadd.f32 %v596_v61, %v595_v60  ;;  %v510_v18 = vpop.permute.xlu1 %509  ;;  %v508_v63 = vpop.permute.xlu0 %507 }
  0xd4   : > { %v564_v24 = vmul.f32 %v510_v18, %v1535_v19  ;;  %v563_v1 = vmul.f32 %v508_v63, %v1538_v62 }
  0xd5   : > { %v599_v3 = vadd.f32 %v598_v16, %v597_v22 }
  0xd6   : > { %v600_v5 = vsel %vm374_vm0, %v563_v1, 0.0  ;;  %v602_v33 = vsel %vm374_vm0, %v564_v24, 0.0 }
  0xd7   : > { %v601_v11 = vadd.f32 %v600_v5, %v599_v3  ;;  %v514_v25 = vpop.permute.xlu1 %513  ;;  %v512_v29 = vpop.permute.xlu0 %511 }
  0xd8   : > { %v566_v34 = vmul.f32 %v514_v25, %v1549_v36  ;;  %v565_v38 = vmul.f32 %v512_v29, %v1552_v37 }
  0xd9   : > { %v603_v39 = vadd.f32 %v602_v33, %v601_v11 }
  0xda   : > { %v605_v17 = vsel %vm374_vm0, %v566_v34, 0.0  ;;  %v604_v23 = vsel %vm374_vm0, %v565_v38, 0.0 }
  0xdb   : > { %v617_v6 = vmul.f32 0.16666667, %v603_v39  ;;  %v518_v40 = vpop.permute.xlu1 %517  ;;  %v516_v2 = vpop.permute.xlu0 %515  ;;  %v606_v44 = vadd.f32 %v605_v17, %v604_v23 }
  0xdc   : > { %v568_v8 = vmul.f32 %v518_v40, %v1563_v0  ;;  %v567_v43 = vmul.f32 %v516_v2, %v1566_v48 }
  0xdd   : > { %1130 = vst.msk [vmem:[%s1480_s27 + $0x48] sm:$0xff] %vm374_vm0, %v617_v6 }
  0xde   : > { %v607_v45 = vsel %vm374_vm0, %v567_v43, 0.0  ;;  %v609_v14 = vsel %vm374_vm0, %v568_v8, 0.0 }
  0xdf   : > { %v608_v9 = vadd.f32 %v607_v45, %v606_v44  ;;  %v522_v49 = vpop.permute.xlu1 %521  ;;  %v520_v50 = vpop.permute.xlu0 %519 }
  0xe0   : > { %v570_v20 = vmul.f32 %v522_v49, %v1579_v15  ;;  %v569_v51 = vmul.f32 %v520_v50, %v1582_v56 }
  0xe1   : > { %v610_v12 = vadd.f32 %v609_v14, %v608_v9 }
  0xe2   : > { %v611_v4 = vsel %vm374_vm0, %v569_v51, 0.0  ;;  %v613_v55 = vsel %vm374_vm0, %v570_v20, 0.0 }
  0xe3   : > { %v612_v10 = vadd.f32 %v611_v4, %v610_v12  ;;  %v675_v53 = vpop.permute.xlu1 %674  ;;  %v673_v54 = vpop.permute.xlu0 %672 }
  0xe4   : > { %v745_v21 = vmul.f32 %v675_v53, %v1425_v28  ;;  %v744_v59 = vmul.f32 %v673_v54, %v1415_v26 }
  0xe5   : > { %v614_v60 = vadd.f32 %v613_v55, %v612_v10 }
  0xe6   : > { %v769_v61 = vsel %vm374_vm0, %v745_v21, 0.0  ;;  %v768_v22 = vsel %vm374_vm0, %v744_v59, 0.0 }
  0xe7   : > { %v618_v18 = vmul.f32 0.16666667, %v614_v60  ;;  %v679_v63 = vpop.permute.xlu1 %678  ;;  %v677_v16 = vpop.permute.xlu0 %676  ;;  %v770_v3 = vadd.f32 %v769_v61, %v768_v22 }
  0xe8   : > { %v747_v24 = vmul.f32 %v679_v63, %v1429_v31  ;;  %v746_v1 = vmul.f32 %v677_v16, %v1418_v27 }
  0xe9   : > { %1131 = vst.msk [vmem:[%s1480_s27 + $0x68] sm:$0xff] %vm374_vm0, %v618_v18 }
  0xea   : > { %v771_v5 = vsel %vm374_vm0, %v746_v1, 0.0  ;;  %v773_v33 = vsel %vm374_vm0, %v747_v24, 0.0 }
  0xeb   : > { %v772_v11 = vadd.f32 %v771_v5, %v770_v3  ;;  %v683_v25 = vpop.permute.xlu1 %682  ;;  %v681_v29 = vpop.permute.xlu0 %680 }
  0xec   : > { %v749_v34 = vmul.f32 %v683_v25, %v1444_v41  ;;  %v748_v38 = vmul.f32 %v681_v29, %v1438_v35 }
  0xed   : > { %v774_v39 = vadd.f32 %v773_v33, %v772_v11 }
  0xee   : > { %v775_v17 = vsel %vm374_vm0, %v748_v38, 0.0  ;;  %v777_v2 = vsel %vm374_vm0, %v749_v34, 0.0 }
  0xef   : > { %v776_v23 = vadd.f32 %v775_v17, %v774_v39  ;;  %v687_v6 = vpop.permute.xlu1 %686  ;;  %v685_v40 = vpop.permute.xlu0 %684 }
  0xf0   : > { %v751_v8 = vmul.f32 %v687_v6, %v1453_v46  ;;  %v750_v43 = vmul.f32 %v685_v40, %v1456_v47 }
  0xf1   : > { %v778_v44 = vadd.f32 %v777_v2, %v776_v23 }
  0xf2   : > { %v780_v45 = vsel %vm374_vm0, %v751_v8, 0.0  ;;  %v779_v9 = vsel %vm374_vm0, %v750_v43, 0.0 }
  0xf3   : > { %v812_v49 = vmul.f32 0.16666667, %v778_v44  ;;  %v691_v50 = vpop.permute.xlu1 %690  ;;  %v689_v14 = vpop.permute.xlu0 %688  ;;  %v781_v12 = vadd.f32 %v780_v45, %v779_v9 }
  0xf4   : > { %v753_v20 = vmul.f32 %v691_v50, %v1469_v57  ;;  %v752_v51 = vmul.f32 %v689_v14, %v1472_v58 }
  0xf5   : > { %1132 = vst.msk [vmem:[%s1480_s27 + $0x10] sm:$0xff] %vm374_vm0, %v812_v49 }
  0xf6   : > { %v782_v4 = vsel %vm374_vm0, %v752_v51, 0.0  ;;  %v784_v55 = vsel %vm374_vm0, %v753_v20, 0.0 }
  0xf7   : > { %v783_v10 = vadd.f32 %v782_v4, %v781_v12  ;;  %v695_v53 = vpop.permute.xlu1 %694  ;;  %v693_v54 = vpop.permute.xlu0 %692 }
  0xf8   : > { %v755_v21 = vmul.f32 %v695_v53, %v1489_v30  ;;  %v754_v59 = vmul.f32 %v693_v54, %v1492_v32 }
  0xf9   : > { %v785_v60 = vadd.f32 %v784_v55, %v783_v10 }
  0xfa   : > { %v786_v61 = vsel %vm374_vm0, %v754_v59, 0.0  ;;  %v788_v16 = vsel %vm374_vm0, %v755_v21, 0.0 }
  0xfb   : > { %v787_v22 = vadd.f32 %v786_v61, %v785_v60  ;;  %v699_v18 = vpop.permute.xlu1 %698  ;;  %v697_v63 = vpop.permute.xlu0 %696 }
  0xfc   : > { %v757_v50 = vmul.f32 %v699_v18, %v1505_v7  ;;  %v756_v14 = vmul.f32 %v697_v63, %v1508_v42 }
  0xfd   : > { %v789_v24 = vadd.f32 %v788_v16, %v787_v22 }
  0xfe   : > { %v791_v22 = vsel %vm374_vm0, %v757_v50, 0.0  ;;  %v790_v18 = vsel %vm374_vm0, %v756_v14, 0.0 }
  0xff   : > { %v813_v1 = vmul.f32 0.16666667, %v789_v24  ;;  %v711_v3 = vpop.permute.xlu1 %710  ;;  %v709_v5 = vpop.permute.xlu0 %708 }
 0x100   : > { %v763_v20 = vmul.f32 %v711_v3, %v1549_v36  ;;  %v762_v51 = vmul.f32 %v709_v5, %v1552_v37 }
 0x101   : > { %1133 = vst.msk [vmem:[%s1480_s27 + $0x30] sm:$0xff] %vm374_vm0, %v813_v1 }
 0x103   : > { %v872_v11 = vpop.permute.xlu1 %871  ;;  %v870_v25 = vpop.permute.xlu0 %869 }
 0x104   : > { %v942_v10 = vmul.f32 %v872_v11, %v1425_v28  ;;  %v941_v53 = vmul.f32 %v870_v25, %v1415_v26  ;;  %v802_v28 = vsel %vm374_vm0, %v763_v20, 0.0  ;;  %v801_v26 = vsel %vm374_vm0, %v762_v51, 0.0 }
 0x107   : > { %v884_v29 = vpop.permute.xlu1 %883  ;;  %v882_v33 = vpop.permute.xlu0 %881 }
 0x108   : > { %v948_v54 = vmul.f32 %v884_v29, %v1453_v46  ;;  %v947_v55 = vmul.f32 %v882_v33, %v1456_v47  ;;  %v966_v47 = vsel %vm374_vm0, %v942_v10, 0.0  ;;  %v792_v29 = vadd.f32 %v791_v22, %v790_v18 }
 0x109   : > { %v803_v33 = vadd.f32 %v802_v28, %v801_v26 }
 0x10b   : > { %v896_v34 = vpop.permute.xlu1 %895  ;;  %v894_v38 = vpop.permute.xlu0 %893 }
 0x10c   : > { %v954_v21 = vmul.f32 %v896_v34, %v1505_v7  ;;  %v953_v59 = vmul.f32 %v894_v38, %v1508_v42  ;;  %v965_v7 = vsel %vm374_vm0, %v941_v53, 0.0  ;;  %v977_v42 = vsel %vm374_vm0, %v948_v54, 0.0 }
 0x10d   : > { %v967_v50 = vadd.f32 %v966_v47, %v965_v7 }
 0x10e   : > { %v987_v16 = vsel %vm374_vm0, %v953_v59, 0.0 }
 0x10f   : > { %v908_v39 = vpop.permute.xlu1 %907  ;;  %v906_v17 = vpop.permute.xlu0 %905 }
 0x110   : > { %v960_v60 = vmul.f32 %v908_v39, %v1549_v36  ;;  %v959_v61 = vmul.f32 %v906_v17, %v1552_v37  ;;  %v976_v36 = vsel %vm374_vm0, %v947_v55, 0.0  ;;  %v988_v37 = vsel %vm374_vm0, %v954_v21, 0.0 }
 0x111   : > { %v989_v20 = vadd.f32 %v988_v37, %v987_v16 }
 0x112   : > { %v999_v3 = vsel %vm374_vm0, %v960_v60, 0.0  ;;  %v998_v5 = vsel %vm374_vm0, %v959_v61, 0.0 }
 0x113   : > { %v713_v23 = vpop.permute.xlu1 %712  ;;  %v701_v6 = vpop.permute.xlu0 %700  ;;  %v1000_v51 = vadd.f32 %v999_v3, %v998_v5 }
 0x114   : > { %v764_v24 = vmul.f32 %v713_v23, %v1566_v48  ;;  %v758_v1 = vmul.f32 %v701_v6, %v1522_v52  ;;  %v978_v23 = vadd.f32 %v977_v42, %v976_v36 }
 0x117   : > { %v886_v40 = vpop.permute.xlu1 %885  ;;  %v874_v2 = vpop.permute.xlu0 %873 }
 0x118   : > { %v949_v11 = vmul.f32 %v886_v40, %v1472_v58  ;;  %v943_v25 = vmul.f32 %v874_v2, %v1418_v27  ;;  %v804_v58 = vsel %vm374_vm0, %v764_v24, 0.0  ;;  %v793_v27 = vsel %vm374_vm0, %v758_v1, 0.0 }
 0x119   : > { %v805_v54 = vadd.f32 %v804_v58, %v803_v33  ;;  %v794_v55 = vadd.f32 %v793_v27, %v792_v29 }
 0x11a   : > { %v979_v40 = vsel %vm374_vm0, %v949_v11, 0.0 }
 0x11b   : > { %v910_v8 = vpop.permute.xlu1 %909  ;;  %v898_v43 = vpop.permute.xlu0 %897  ;;  %v980_v60 = vadd.f32 %v979_v40, %v978_v23 }
 0x11c   : > { %v961_v34 = vmul.f32 %v910_v8, %v1566_v48  ;;  %v955_v38 = vmul.f32 %v898_v43, %v1522_v52  ;;  %v968_v48 = vsel %vm374_vm0, %v943_v25, 0.0 }
 0x11d   : > { %v969_v61 = vadd.f32 %v968_v48, %v967_v50 }
 0x11e   : > { %v1001_v8 = vsel %vm374_vm0, %v961_v34, 0.0  ;;  %v990_v43 = vsel %vm374_vm0, %v955_v38, 0.0 }
 0x11f   : > { %v715_v44 = vpop.permute.xlu1 %714  ;;  %v703_v45 = vpop.permute.xlu0 %702  ;;  %v1002_v28 = vadd.f32 %v1001_v8, %v1000_v51  ;;  %v991_v26 = vadd.f32 %v990_v43, %v989_v20 }
 0x120   : > { %v765_v6 = vmul.f32 %v715_v44, %v1563_v0  ;;  %v759_v14 = vmul.f32 %v703_v45, %v1519_v13 }
 0x122   : > { %v806_v21 = vsel %vm374_vm0, %v765_v6, 0.0  ;;  %v795_v59 = vsel %vm374_vm0, %v759_v14, 0.0 }
 0x123   : > { %v888_v9 = vpop.permute.xlu1 %887  ;;  %v876_v49 = vpop.permute.xlu0 %875 }
 0x124   : > { %v950_v44 = vmul.f32 %v888_v9, %v1469_v57  ;;  %v944_v45 = vmul.f32 %v876_v49, %v1429_v31  ;;  %v807_v9 = vadd.f32 %v806_v21, %v805_v54  ;;  %v796_v49 = vadd.f32 %v795_v59, %v794_v55 }
 0x127   : > { %v1712_v12 = vpop.permute.xlu1 %911  ;;  %v1714_v4 = vpop.permute.xlu0 %899 }
 0x128   : > { %v962_v42 = vmul.f32 %v1712_v12, %v1563_v0 }
 0x12a   : > { %v1003_v34 = vsel %vm374_vm0, %v962_v42, 0.0 }
 0x12b   : > { %v717_v63 = vpop.permute.xlu1 %716  ;;  %v705_v46 = vpop.permute.xlu0 %704  ;;  %v1004_v58 = vadd.f32 %v1003_v34, %v1002_v28 }
 0x12c   : > { %v766_v52 = vmul.f32 %v717_v63, %v1582_v56  ;;  %v760_v2 = vmul.f32 %v705_v46, %v1538_v62  ;;  %v981_v63 = vsel %vm374_vm0, %v950_v44, 0.0  ;;  %v970_v46 = vsel %vm374_vm0, %v944_v45, 0.0 }
 0x12d   : > { %v982_v12 = vadd.f32 %v981_v63, %v980_v60 }
 0x12e   : > { %v808_v57 = vsel %vm374_vm0, %v766_v52, 0.0  ;;  %v797_v31 = vsel %vm374_vm0, %v760_v2, 0.0 }
 0x12f   : > { %v890_v39 = vpop.permute.xlu1 %889  ;;  %v878_v17 = vpop.permute.xlu0 %877  ;;  %v809_v37 = vadd.f32 %v808_v57, %v807_v9  ;;  %v798_v16 = vadd.f32 %v797_v31, %v796_v49 }
 0x130   : > { %v951_v22 = vmul.f32 %v890_v39, %v1492_v32  ;;  %v945_v18 = vmul.f32 %v878_v17, %v1438_v35  ;;  %v956_v35 = vmul.f32 %v1714_v4, %v1519_v13  ;;  %v971_v13 = vadd.f32 %v970_v46, %v969_v61 }
 0x132   : > { %v983_v24 = vsel %vm374_vm0, %v951_v22, 0.0  ;;  %v972_v1 = vsel %vm374_vm0, %v945_v18, 0.0  ;;  %v992_v38 = vsel %vm374_vm0, %v956_v35, 0.0 }
 0x133   : > { %v914_v10 = vpop.permute.xlu1 %913  ;;  %v902_v53 = vpop.permute.xlu0 %901  ;;  %v984_v39 = vadd.f32 %v983_v24, %v982_v12  ;;  %v973_v17 = vadd.f32 %v972_v1, %v971_v13  ;;  %v993_v27 = vadd.f32 %v992_v38, %v991_v26 }
 0x134   : > { %v963_v3 = vmul.f32 %v914_v10, %v1582_v56  ;;  %v957_v5 = vmul.f32 %v902_v53, %v1538_v62 }
 0x136   : > { %v1005_v6 = vsel %vm374_vm0, %v963_v3, 0.0  ;;  %v994_v14 = vsel %vm374_vm0, %v957_v5, 0.0 }
 0x137   : > { %v719_v47 = vpop.permute.xlu1 %718  ;;  %v707_v7 = vpop.permute.xlu0 %706  ;;  %v1006_v8 = vadd.f32 %v1005_v6, %v1004_v58  ;;  %v995_v43 = vadd.f32 %v994_v14, %v993_v27 }
 0x138   : > { %v767_v32 = vmul.f32 %v719_v47, %v1579_v15  ;;  %v761_v36 = vmul.f32 %v707_v7, %v1535_v19 }
 0x13a   : > { %v810_v11 = vsel %vm374_vm0, %v767_v32, 0.0  ;;  %v799_v0 = vsel %vm374_vm0, %v761_v36, 0.0 }
 0x13b   : > { %v811_v4 = vadd.f32 %v810_v11, %v809_v37  ;;  %v800_v25 = vadd.f32 %v799_v0, %v798_v16  ;;  %v892_v29 = vpop.permute.xlu1 %891  ;;  %v880_v33 = vpop.permute.xlu0 %879 }
 0x13c   : > { %v952_v56 = vmul.f32 %v892_v29, %v1489_v30  ;;  %v946_v62 = vmul.f32 %v880_v33, %v1444_v41 }
 0x13d   : > { %v815_v50 = vmul.f32 0.16666667, %v811_v4  ;;  %v814_v23 = vmul.f32 0.16666667, %v800_v25 }
 0x13e   : > { %v985_v20 = vsel %vm374_vm0, %v952_v56, 0.0  ;;  %v974_v51 = vsel %vm374_vm0, %v946_v62, 0.0 }
 0x13f   : > { %1135 = vst.msk [vmem:[%s1480_s27 + $0x70] sm:$0xff] %vm374_vm0, %v815_v50  ;;  %1134 = vst.msk [vmem:[%s1480_s27 + $0x50] sm:$0xff] %vm374_vm0, %v814_v23  ;;  %v986_v41 = vadd.f32 %v985_v20, %v984_v39  ;;  %v975_v30 = vadd.f32 %v974_v51, %v973_v17  ;;  %v916_v40 = vpop.permute.xlu1 %915  ;;  %v904_v48 = vpop.permute.xlu0 %903 }
 0x140   : > { %v964_v52 = vmul.f32 %v916_v40, %v1579_v15  ;;  %v958_v2 = vmul.f32 %v904_v48, %v1535_v19 }
 0x141   : > { %v1010_v44 = vmul.f32 0.16666667, %v986_v41  ;;  %v1009_v45 = vmul.f32 0.16666667, %v975_v30 }
 0x142   : > { %v1007_v10 = vsel %vm374_vm0, %v964_v52, 0.0  ;;  %v996_v53 = vsel %vm374_vm0, %v958_v2, 0.0 }
 0x143   : > { %1137 = vst.msk [vmem:[%s1480_s27 + $0x38] sm:$0xff] %vm374_vm0, %v1010_v44  ;;  %1136 = vst.msk [vmem:[%s1480_s27 + $0x18] sm:$0xff] %vm374_vm0, %v1009_v45  ;;  %v1008_v54 = vadd.f32 %v1007_v10, %v1006_v8  ;;  %v997_v55 = vadd.f32 %v996_v53, %v995_v43 }
 0x145   : > { %v1012_v21 = vmul.f32 0.16666667, %v1008_v54  ;;  %v1011_v59 = vmul.f32 0.16666667, %v997_v55 }
 0x147   : > { %1139 = vst.msk [vmem:[%s1480_s27 + $0x78] sm:$0xff] %vm374_vm0, %v1012_v21  ;;  %1138 = vst.msk [vmem:[%s1480_s27 + $0x58] sm:$0xff] %vm374_vm0, %v1011_v59 }
 0x148 PF: > { %s12_s11 = sadd.s32 1, %s1194_s11   ;;  %s1810_s9 = smov %s1190_s10 }
 0x149   : > { %p9_p5 = scmp.ge.s32.totalorder %s12_s11, 4   ;;  %s1811_s10 = smov %s1813_s12 }
 0x14b   :  { %11 = sbr.rel (!%p9_p5) target bundleno = 2 (0x2), region = 64 }

// kernel: _lambda_.4
= control target key start
LH: loop header
LB: loop body
LE: loop exit
PB: predicated region body
PF: predicated region fallthrough
CT: control target
= control target key end

     0   :  { %vm221_vm0 = vcmask 1043456   ;;  %vm172_vm1 = vcmask 588800   ;;  %vm506_vm6 = vcmask 130048   ;;  %s3479_s1 = inlined_call_operand.vmem [shape: bf16[72,16], index: 1, kind: input, shape index: {}]   ;;  %s3480_s0 = inlined_call_operand.vmem [shape: bf16[256,72], index: 0, kind: input, shape index: {}]   ;;  %s3481_s2 = inlined_call_operand.vmem [shape: bf16[16,72], index: 2, kind: input, shape index: {}]   ;;  %s3482_s3 = inlined_call_operand.vmem [shape: f32[72,72], index: 3, kind: input, shape index: {}]   ;;  %s3483_s5 = inlined_call_operand.vmem [shape: f32[72,8], index: 5, kind: input, shape index: {}, may-alias: {4,5}]   ;;  %s3484_s4 = inlined_call_operand.vmem [shape: f32[72,8], index: 4, kind: input, shape index: {}, may-alias: {4,5}]   ;;  %s3485_s6 = inlined_call_operand.vmem [shape: f32[256,8], index: 6, kind: output, shape index: {}]  }
   0x1   :  { %v2555_v0 = vld [vmem:[%s3479_s1 + $0x20] ss:$0 sps:$4 sm:$0xff]   ;;  %v2556_v1 = vld [vmem:[%s3479_s1 + $0x18] sm:$0xff]   ;;  %v2557_v3 = vld [vmem:[%s3479_s1 + $0x10] sm:$0xff]  }
   0x2   :  { %2554 = vmatprep.subr.msk.bf16.mxu0 %vm221_vm0, %v2555_v0  ;;  %v223_v2 = vsel %vm221_vm0, %v2555_v0, 0  ;;  %v24_v4 = vld [vmem:[%s3480_s0] sm:$0xff]   ;;  %v2558_v5 = vld [vmem:[%s3479_s1 + $0x8] sm:$0xff]   ;;  %v28_v9 = vld [vmem:[%s3480_s0 + $0x10] sm:$0xff]  }
   0x3   :  { %2279 = vmatpush3.bf16.msra.mxu0 %v223_v2  ;;  %2288 = vmatprep.mubr.msk.bf16.mxu0 %vm172_vm1, %v24_v4  ;;  %v2576_v6 = vld [vmem:[%s3481_s2] sm:$0xff]   ;;  %v26_v8 = vld [vmem:[%s3480_s0 + $0x8] sm:$0xff]   ;;  %v30_v10 = vld [vmem:[%s3480_s0 + $0x18] sm:$0xff]  }
   0x4   :  { %2280 = vmatprep.subr.bf16.mxu0 %v2556_v1  ;;  %v2559_v7 = vld [vmem:[%s3479_s1] sm:$0xff]   ;;  %2552 = vmatprep.subr.bf16.mxu1 %v2576_v6  ;;  %v34_v12 = vld [vmem:[%s3480_s0 + $0x28] sm:$0xff]   ;;  %v36_v13 = vld [vmem:[%s3480_s0 + $0x30] sm:$0xff]  }
   0x5   :  { %2553 = vmatpush3.bf16.msra.mxu1 %v2576_v6  ;;  %v32_v11 = vld [vmem:[%s3480_s0 + $0x20] sm:$0xff]   ;;  %v38_v14 = vld [vmem:[%s3480_s0 + $0x38] sm:$0xff]   ;;  %v42_v16 = vld [vmem:[%s3480_s0 + $0x48] sm:$0xff]  }
   0x6   :  { %v40_v15 = vld [vmem:[%s3480_s0 + $0x40] sm:$0xff]   ;;  %v44_v17 = vld [vmem:[%s3480_s0 + $0x50] sm:$0xff]   ;;  %v46_v18 = vld [vmem:[%s3480_s0 + $0x58] sm:$0xff]  }
   0x7   :  { %2281 = vmatpush3.bf16.msra.mxu0 %v2556_v1  ;;  %v48_v19 = vld [vmem:[%s3480_s0 + $0x60] sm:$0xff]   ;;  %v50_v20 = vld [vmem:[%s3480_s0 + $0x68] sm:$0xff]   ;;  %v52_v21 = vld [vmem:[%s3480_s0 + $0x70] sm:$0xff]  }
   0x8   :  { %2282 = vmatprep.subr.bf16.mxu0 %v2557_v3  ;;  %v54_v22 = vld [vmem:[%s3480_s0 + $0x78] sm:$0xff]  }
   0xb   :  { %2283 = vmatpush3.bf16.msra.mxu0 %v2557_v3 }
   0xc   :  { %2284 = vmatprep.subr.bf16.mxu0 %v2558_v5 }
   0xf   :  { %2285 = vmatpush3.bf16.msra.mxu0 %v2558_v5 }
  0x10   :  { %2286 = vmatprep.subr.bf16.mxu0 %v2559_v7 }
  0x13   :  { %2287 = vmatpush3.bf16.msra.mxu0 %v2559_v7 }
  0x14   :  { %2320 = vmatprep.subr.bf16.mxu0 %v2576_v6 }
  0x16   :  { %2289 = vmatmul.mubr.msk.bf16.vlgmr.msra.gmra.mxu0 %vm172_vm1, %v26_v8 }
  0x17   :  { %2292 = vmatprep.mubr.msk.bf16.mxu0 %vm172_vm1, %v28_v9  ;;  %2321 = vmatpush3.bf16.msra.mxu0 %v2576_v6 }
  0x1e   :  { %2293 = vmatmul.mubr.msk.bf16.gmra.mxu0 %vm172_vm1, %v30_v10 }
  0x1f   :  { %2296 = vmatprep.mubr.msk.bf16.mxu0 %vm172_vm1, %v32_v11 }
  0x26   :  { %2297 = vmatmul.mubr.msk.bf16.gmra.mxu0 %vm172_vm1, %v34_v12 }
  0x27   :  { %2300 = vmatprep.mubr.msk.bf16.mxu0 %vm172_vm1, %v36_v13 }
  0x2e   :  { %2301 = vmatmul.mubr.msk.bf16.gmra.mxu0 %vm172_vm1, %v38_v14 }
  0x2f   :  { %2304 = vmatprep.mubr.msk.bf16.mxu0 %vm172_vm1, %v40_v15 }
  0x36   :  { %2305 = vmatmul.mubr.msk.bf16.gmra.mxu0 %vm172_vm1, %v42_v16 }
  0x37   :  { %2308 = vmatprep.mubr.msk.bf16.mxu0 %vm172_vm1, %v44_v17 }
  0x3e   :  { %2309 = vmatmul.mubr.msk.bf16.gmra.mxu0 %vm172_vm1, %v46_v18 }
  0x3f   :  { %2312 = vmatprep.mubr.msk.bf16.mxu0 %vm172_vm1, %v48_v19 }
  0x46   :  { %2313 = vmatmul.mubr.msk.bf16.gmra.mxu0 %vm172_vm1, %v50_v20 }
  0x47   :  { %2316 = vmatprep.mubr.msk.bf16.mxu0 %vm172_vm1, %v52_v21 }
  0x4e   :  { %2317 = vmatmul.mubr.msk.bf16.gmra.mxu0 %vm172_vm1, %v54_v22 }
  0xd6   :  { %v2290_v23 = vpop.f32.mrf.mxu0 }
  0xd7   :  { %v420_v28 = vmul.f32 0.1, %v2290_v23  ;;  %vm388_vm4 = vcmp.gt.f32.partialorder %v2290_v23, 0.0 }
  0xd8   :  { %v259_v24 = vpop.f32.mrf.mxu0 }
  0xd9   :  { %v418_v26 = vmul.f32 0.1, %v259_v24  ;;  %vm386_vm3 = vcmp.gt.f32.partialorder %v259_v24, 0.0  ;;  %v452_v35 = vsel %vm388_vm4, %v2290_v23, %v420_v28 }
  0xda   :  { %v2291_v25 = vpop.f32.mrf.mxu0 }
  0xdb   :  { %vm389_vm2 = vcmp.gt.f32.partialorder %v2291_v25, 0.0  ;;  %v421_v27 = vmul.f32 0.1, %v2291_v25  ;;  %v450_v33 = vsel %vm386_vm3, %v259_v24, %v418_v26 }
  0xdc   :  { %v262_v29 = vpop.f32.mrf.mxu0 }
  0xdd   :  { %vm387_vm5 = vcmp.gt.f32.partialorder %v262_v29, 0.0  ;;  %v419_v30 = vmul.f32 0.1, %v262_v29  ;;  %v453_v31 = vsel %vm389_vm2, %v2291_v25, %v421_v27 }
  0xde   :  { %v2294_v32 = vpop.f32.mrf.mxu0  ;;  %v483_v38 = vpack.c.bf16 %v453_v31, %v452_v35 }
  0xdf   :  { %v451_v34 = vsel %vm387_vm5, %v262_v29, %v419_v30  ;;  %v424_v42 = vmul.f32 0.1, %v2294_v32  ;;  %vm392_vm9 = vcmp.gt.f32.partialorder %v2294_v32, 0.0 }
  0xe0   :  { %v482_v36 = vpack.c.bf16 %v451_v34, %v450_v33  ;;  %v275_v37 = vpop.f32.mrf.mxu0 }
  0xe1   :  { %v422_v40 = vmul.f32 0.1, %v275_v37  ;;  %vm390_vm8 = vcmp.gt.f32.partialorder %v275_v37, 0.0  ;;  %v456_v49 = vsel %vm392_vm9, %v2294_v32, %v424_v42 }
  0xe2   :  { %v2295_v39 = vpop.f32.mrf.mxu0  ;;  %2322 = vmatprep.mubr.msk.bf16.mxu0 %vm506_vm6, %v482_v36 }
  0xe3   :  { %vm393_vm7 = vcmp.gt.f32.partialorder %v2295_v39, 0.0  ;;  %v425_v41 = vmul.f32 0.1, %v2295_v39  ;;  %2323 = vmatmul.mubr.msk.bf16.vlgmr.msra.gmra.mxu0 %vm506_vm6, %v483_v38  ;;  %v454_v47 = vsel %vm390_vm8, %v275_v37, %v422_v40 }
  0xe4   :  { %v278_v43 = vpop.f32.mrf.mxu0 }
  0xe5   :  { %vm391_vm10 = vcmp.gt.f32.partialorder %v278_v43, 0.0  ;;  %v423_v44 = vmul.f32 0.1, %v278_v43  ;;  %v457_v45 = vsel %vm393_vm7, %v2295_v39, %v425_v41 }
  0xe6   :  { %v2298_v46 = vpop.f32.mrf.mxu0  ;;  %v485_v52 = vpack.c.bf16 %v457_v45, %v456_v49 }
  0xe7   :  { %v455_v48 = vsel %vm391_vm10, %v278_v43, %v423_v44  ;;  %v428_v56 = vmul.f32 0.1, %v2298_v46  ;;  %vm396_vm13 = vcmp.gt.f32.partialorder %v2298_v46, 0.0 }
  0xe8   :  { %v484_v50 = vpack.c.bf16 %v455_v48, %v454_v47  ;;  %v291_v51 = vpop.f32.mrf.mxu0 }
  0xe9   :  { %v426_v54 = vmul.f32 0.1, %v291_v51  ;;  %vm394_vm12 = vcmp.gt.f32.partialorder %v291_v51, 0.0  ;;  %v460_v63 = vsel %vm396_vm13, %v2298_v46, %v428_v56 }
  0xea   :  { %v2299_v53 = vpop.f32.mrf.mxu0  ;;  %2326 = vmatprep.mubr.msk.bf16.mxu0 %vm506_vm6, %v484_v50 }
  0xeb   :  { %vm397_vm11 = vcmp.gt.f32.partialorder %v2299_v53, 0.0  ;;  %v429_v55 = vmul.f32 0.1, %v2299_v53  ;;  %2327 = vmatmul.mubr.msk.bf16.gmra.mxu0 %vm506_vm6, %v485_v52  ;;  %v458_v61 = vsel %vm394_vm12, %v291_v51, %v426_v54 }
  0xec   :  { %v294_v57 = vpop.f32.mrf.mxu0 }
  0xed   :  { %vm395_vm14 = vcmp.gt.f32.partialorder %v294_v57, 0.0  ;;  %v427_v58 = vmul.f32 0.1, %v294_v57  ;;  %v461_v59 = vsel %vm397_vm11, %v2299_v53, %v429_v55 }
  0xee   :  { %v2302_v60 = vpop.f32.mrf.mxu0  ;;  %v487_v2 = vpack.c.bf16 %v461_v59, %v460_v63 }
  0xef   :  { %v459_v62 = vsel %vm395_vm14, %v294_v57, %v427_v58  ;;  %v432_v6 = vmul.f32 0.1, %v2302_v60  ;;  %vm400_vm2 = vcmp.gt.f32.partialorder %v2302_v60, 0.0 }
  0xf0   :  { %v486_v0 = vpack.c.bf16 %v459_v62, %v458_v61  ;;  %v307_v1 = vpop.f32.mrf.mxu0 }
  0xf1   :  { %v430_v4 = vmul.f32 0.1, %v307_v1  ;;  %vm398_vm0 = vcmp.gt.f32.partialorder %v307_v1, 0.0  ;;  %v464_v13 = vsel %vm400_vm2, %v2302_v60, %v432_v6 }
  0xf2   :  { %v2303_v3 = vpop.f32.mrf.mxu0  ;;  %2330 = vmatprep.mubr.msk.bf16.mxu0 %vm506_vm6, %v486_v0 }
  0xf3   :  { %vm401_vm15 = vcmp.gt.f32.partialorder %v2303_v3, 0.0  ;;  %v433_v5 = vmul.f32 0.1, %v2303_v3  ;;  %2331 = vmatmul.mubr.msk.bf16.gmra.mxu0 %vm506_vm6, %v487_v2  ;;  %v462_v11 = vsel %vm398_vm0, %v307_v1, %v430_v4 }
  0xf4   :  { %v310_v7 = vpop.f32.mrf.mxu0 }
  0xf5   :  { %vm399_vm3 = vcmp.gt.f32.partialorder %v310_v7, 0.0  ;;  %v431_v8 = vmul.f32 0.1, %v310_v7  ;;  %v465_v9 = vsel %vm401_vm15, %v2303_v3, %v433_v5 }
  0xf6   :  { %v2306_v10 = vpop.f32.mrf.mxu0  ;;  %v489_v16 = vpack.c.bf16 %v465_v9, %v464_v13  ;;  %v914_v9 = vld [vmem:[%s3482_s3 + $0x30] sm:$0xff] }
  0xf7   :  { %v463_v12 = vsel %vm399_vm3, %v310_v7, %v431_v8  ;;  %v436_v20 = vmul.f32 0.1, %v2306_v10  ;;  %vm404_vm7 = vcmp.gt.f32.partialorder %v2306_v10, 0.0  ;;  %v916_v7 = vld [vmem:[%s3482_s3 + $0x40] sm:$0xff]  ;;  %v915_v8 = vld [vmem:[%s3482_s3 + $0x38] sm:$0xff] }
  0xf8   :  { %v323_v14 = vpop.f32.mrf.mxu0  ;;  %v488_v15 = vpack.c.bf16 %v463_v12, %v462_v11  ;;  %2354 = vmatprep.subr.mxu1 %v916_v7 }
  0xf9   :  { %v434_v18 = vmul.f32 0.1, %v323_v14  ;;  %vm402_vm5 = vcmp.gt.f32.partialorder %v323_v14, 0.0  ;;  %v468_v27 = vsel %vm404_vm7, %v2306_v10, %v436_v20  ;;  %v913_v10 = vld [vmem:[%s3482_s3 + $0x28] sm:$0xff] }
  0xfa   :  { %v2307_v17 = vpop.f32.mrf.mxu0  ;;  %2334 = vmatprep.mubr.msk.bf16.mxu1 %vm506_vm6, %v488_v15 }
  0xfb   :  { %vm405_vm4 = vcmp.gt.f32.partialorder %v2307_v17, 0.0  ;;  %v437_v19 = vmul.f32 0.1, %v2307_v17  ;;  %2335 = vmatmul.mubr.msk.bf16.vlgmr.msra.gmra.mxu1 %vm506_vm6, %v489_v16  ;;  %v466_v25 = vsel %vm402_vm5, %v323_v14, %v434_v18 }
  0xfc   :  { %v326_v21 = vpop.f32.mrf.mxu0  ;;  %2355 = vmatpush3.msra.mxu1 %v916_v7 }
  0xfd   :  { %vm403_vm8 = vcmp.gt.f32.partialorder %v326_v21, 0.0  ;;  %v435_v22 = vmul.f32 0.1, %v326_v21  ;;  %v469_v23 = vsel %vm405_vm4, %v2307_v17, %v437_v19  ;;  %2356 = vmatprep.subr.mxu1 %v915_v8 }
  0xfe   :  { %v2310_v24 = vpop.f32.mrf.mxu0  ;;  %v491_v30 = vpack.c.bf16 %v469_v23, %v468_v27  ;;  %2357 = vmatpush3.msra.mxu1 %v915_v8  ;;  %v912_v27 = vld [vmem:[%s3482_s3 + $0x20] sm:$0xff] }
  0xff   :  { %v467_v26 = vsel %vm403_vm8, %v326_v21, %v435_v22  ;;  %v440_v34 = vmul.f32 0.1, %v2310_v24  ;;  %vm408_vm11 = vcmp.gt.f32.partialorder %v2310_v24, 0.0  ;;  %2358 = vmatprep.subr.mxu1 %v914_v9 }
 0x100   :  { %v490_v28 = vpack.c.bf16 %v467_v26, %v466_v25  ;;  %v339_v29 = vpop.f32.mrf.mxu0  ;;  %2359 = vmatpush3.msra.mxu1 %v914_v9 }
 0x101   :  { %v438_v32 = vmul.f32 0.1, %v339_v29  ;;  %vm406_vm10 = vcmp.gt.f32.partialorder %v339_v29, 0.0  ;;  %v472_v41 = vsel %vm408_vm11, %v2310_v24, %v440_v34  ;;  %2360 = vmatprep.subr.mxu1 %v913_v10 }
 0x102   :  { %v2311_v31 = vpop.f32.mrf.mxu0  ;;  %2338 = vmatprep.mubr.msk.bf16.mxu1 %vm506_vm6, %v490_v28  ;;  %2361 = vmatpush3.msra.mxu1 %v913_v10 }
 0x103   :  { %vm409_vm9 = vcmp.gt.f32.partialorder %v2311_v31, 0.0  ;;  %v441_v33 = vmul.f32 0.1, %v2311_v31  ;;  %2339 = vmatmul.mubr.msk.bf16.gmra.mxu1 %vm506_vm6, %v491_v30  ;;  %v470_v39 = vsel %vm406_vm10, %v339_v29, %v438_v32  ;;  %2362 = vmatprep.subr.mxu1 %v912_v27 }
 0x104   :  { %v342_v35 = vpop.f32.mrf.mxu0  ;;  %2363 = vmatpush3.msra.mxu1 %v912_v27 }
 0x105   :  { %vm407_vm12 = vcmp.gt.f32.partialorder %v342_v35, 0.0  ;;  %v439_v36 = vmul.f32 0.1, %v342_v35  ;;  %v473_v37 = vsel %vm409_vm9, %v2311_v31, %v441_v33  ;;  %v911_v33 = vld [vmem:[%s3482_s3 + $0x18] sm:$0xff] }
 0x106   :  { %v2314_v38 = vpop.f32.mrf.mxu0  ;;  %v493_v44 = vpack.c.bf16 %v473_v37, %v472_v41  ;;  %2364 = vmatprep.subr.mxu1 %v911_v33 }
 0x107   :  { %v471_v40 = vsel %vm407_vm12, %v342_v35, %v439_v36  ;;  %v444_v48 = vmul.f32 0.1, %v2314_v38  ;;  %vm412_vm15 = vcmp.gt.f32.partialorder %v2314_v38, 0.0  ;;  %2365 = vmatpush3.msra.mxu1 %v911_v33 }
 0x108   :  { %v492_v42 = vpack.c.bf16 %v471_v40, %v470_v39  ;;  %v355_v43 = vpop.f32.mrf.mxu0 }
 0x109   :  { %v442_v46 = vmul.f32 0.1, %v355_v43  ;;  %vm410_vm14 = vcmp.gt.f32.partialorder %v355_v43, 0.0  ;;  %v476_v55 = vsel %vm412_vm15, %v2314_v38, %v444_v48  ;;  %v910_v38 = vld [vmem:[%s3482_s3 + $0x10] sm:$0xff]  ;;  %v908_v48 = vld [vmem:[%s3482_s3] sm:$0xff] }
 0x10a   :  { %v2315_v45 = vpop.f32.mrf.mxu0  ;;  %2342 = vmatprep.mubr.msk.bf16.mxu1 %vm506_vm6, %v492_v42  ;;  %2366 = vmatprep.subr.mxu1 %v910_v38 }
 0x10b   :  { %vm413_vm13 = vcmp.gt.f32.partialorder %v2315_v45, 0.0  ;;  %v445_v47 = vmul.f32 0.1, %v2315_v45  ;;  %2343 = vmatmul.mubr.msk.bf16.gmra.mxu1 %vm506_vm6, %v493_v44  ;;  %v474_v53 = vsel %vm410_vm14, %v355_v43, %v442_v46 }
 0x10c   :  { %v358_v49 = vpop.f32.mrf.mxu0  ;;  %2367 = vmatpush3.msra.mxu1 %v910_v38 }
 0x10d   :  { %vm411_vm0 = vcmp.gt.f32.partialorder %v358_v49, 0.0  ;;  %v443_v50 = vmul.f32 0.1, %v358_v49  ;;  %v477_v51 = vsel %vm413_vm13, %v2315_v45, %v445_v47  ;;  %v909_v45 = vld [vmem:[%s3482_s3 + $0x8] sm:$0xff] }
 0x10e   :  { %v2318_v52 = vpop.f32.mrf.mxu0  ;;  %v495_v58 = vpack.c.bf16 %v477_v51, %v476_v55  ;;  %2368 = vmatprep.subr.mxu1 %v909_v45 }
 0x10f   :  { %v475_v54 = vsel %vm411_vm0, %v358_v49, %v443_v50  ;;  %v448_v62 = vmul.f32 0.1, %v2318_v52  ;;  %vm416_vm4 = vcmp.gt.f32.partialorder %v2318_v52, 0.0  ;;  %2369 = vmatpush3.msra.mxu1 %v909_v45 }
 0x110   :  { %v494_v56 = vpack.c.bf16 %v475_v54, %v474_v53  ;;  %v371_v57 = vpop.f32.mrf.mxu0  ;;  %2370 = vmatprep.subr.mxu1 %v908_v48 }
 0x111   :  { %v446_v60 = vmul.f32 0.1, %v371_v57  ;;  %vm414_vm3 = vcmp.gt.f32.partialorder %v371_v57, 0.0  ;;  %v480_v4 = vsel %vm416_vm4, %v2318_v52, %v448_v62  ;;  %2371 = vmatpush3.msra.mxu1 %v908_v48 }
 0x112   :  { %v2319_v59 = vpop.f32.mrf.mxu0  ;;  %2346 = vmatprep.mubr.msk.bf16.mxu1 %vm506_vm6, %v494_v56 }
 0x113   :  { %vm417_vm2 = vcmp.gt.f32.partialorder %v2319_v59, 0.0  ;;  %v449_v61 = vmul.f32 0.1, %v2319_v59  ;;  %2347 = vmatmul.mubr.msk.bf16.gmra.mxu1 %vm506_vm6, %v495_v58  ;;  %v478_v2 = vsel %vm414_vm3, %v371_v57, %v446_v60 }
 0x114   :  { %v374_v63 = vpop.f32.mrf.mxu0 }
 0x115   :  { %vm415_vm5 = vcmp.gt.f32.partialorder %v374_v63, 0.0  ;;  %v447_v0 = vmul.f32 0.1, %v374_v63  ;;  %v481_v1 = vsel %vm417_vm2, %v2319_v59, %v449_v61 }
 0x116   :  { %v497_v6 = vpack.c.bf16 %v481_v1, %v480_v4 }
 0x117   :  { %v479_v3 = vsel %vm415_vm5, %v374_v63, %v447_v0 }
 0x118   :  { %v496_v5 = vpack.c.bf16 %v479_v3, %v478_v2 }
 0x11a   :  { %2350 = vmatprep.mubr.msk.bf16.mxu1 %vm506_vm6, %v496_v5 }
 0x11b   :  { %2351 = vmatmul.mubr.msk.bf16.gmra.mxu1 %vm506_vm6, %v497_v6 }
 0x1a3   :  { %v2882_v11 = vpop.f32.mrf.mxu0 }
 0x1a4   :  { %v722_v12 = vsel %vm172_vm1, %v2882_v11, -inf }
 0x1a5   :  { %723 = vmax.xlane.f32.xlu1 %v722_v12  ;;  %v2886_v13 = vpop.f32.mrf.mxu0 }
 0x1a6   :  { %v716_v14 = vsel %vm172_vm1, %v2886_v13, -inf }
 0x1a7   :  { %717 = vmax.xlane.f32.xlu0 %v716_v14  ;;  %v2890_v15 = vpop.f32.mrf.mxu0 }
 0x1a8   :  { %v725_v16 = vsel %vm172_vm1, %v2890_v15, -inf }
 0x1a9   :  { %726 = vmax.xlane.f32.xlu1 %v725_v16  ;;  %v2894_v17 = vpop.f32.mrf.mxu0 }
 0x1aa   :  { %v719_v18 = vsel %vm172_vm1, %v2894_v17, -inf }
 0x1ab   :  { %720 = vmax.xlane.f32.xlu0 %v719_v18  ;;  %v2898_v19 = vpop.f32.mrf.mxu0 }
 0x1ac   :  { %v734_v24 = vsel %vm172_vm1, %v2898_v19, -inf }
 0x1ad   :  { %v2900_v20 = vpop.f32.mrf.mxu0 }
 0x1ae   :  { %v728_v21 = vsel %vm172_vm1, %v2900_v20, -inf }
 0x1af   :  { %729 = vmax.xlane.f32.xlu0 %v728_v21  ;;  %v2904_v22 = vpop.f32.mrf.mxu0 }
 0x1b0   :  { %v737_v29 = vsel %vm172_vm1, %v2904_v22, -inf }
 0x1b1   :  { %v2906_v23 = vpop.f32.mrf.mxu0 }
 0x1b2   :  { %v731_v25 = vsel %vm172_vm1, %v2906_v23, -inf }
 0x1b3   :  { %735 = vmax.xlane.f32.xlu0 %v734_v24  ;;  %732 = vmax.xlane.f32.xlu1 %v731_v25  ;;  %v2912_v26 = vpop.f32.mrf.mxu0  ;;  %v1640_v24 = vld [vmem:[%s3483_s5 + $0x40] sm:$0xff] }
 0x1b4   :  { %v746_v34 = vsel %vm172_vm1, %v2912_v26, -inf  ;;  %2486 = vmatprep.subr.mxu1 %v1640_v24 }
 0x1b5   :  { %v2917_v28 = vpop.f32.mrf.mxu0 }
 0x1b6   :  { %v740_v30 = vsel %vm172_vm1, %v2917_v28, -inf }
 0x1b7   :  { %738 = vmax.xlane.f32.xlu1 %v737_v29  ;;  %741 = vmax.xlane.f32.xlu0 %v740_v30  ;;  %v2923_v31 = vpop.f32.mrf.mxu0 }
 0x1b8   :  { %v749_v40 = vsel %vm172_vm1, %v2923_v31, -inf }
 0x1b9   :  { %v2925_v32 = vpop.f32.mrf.mxu0 }
 0x1ba   :  { %v743_v35 = vsel %vm172_vm1, %v2925_v32, -inf }
 0x1bb   :  { %v2934_v36 = vpop.f32.mrf.mxu1  ;;  %747 = vmax.xlane.f32.xlu0 %v746_v34  ;;  %744 = vmax.xlane.f32.xlu1 %v743_v35 }
 0x1bc   :  { %v758_v43 = vsel %vm172_vm1, %v2934_v36, -inf }
 0x1bd   :  { %v2936_v37 = vpop.f32.mrf.mxu1 }
 0x1be   :  { %v752_v39 = vsel %vm172_vm1, %v2936_v37, -inf }
 0x1bf   :  { %v2945_v41 = vpop.f32.mrf.mxu1  ;;  %753 = vmax.xlane.f32.xlu0 %v752_v39  ;;  %750 = vmax.xlane.f32.xlu1 %v749_v40 }
 0x1c0   :  { %v761_v50 = vsel %vm172_vm1, %v2945_v41, -inf }
 0x1c1   :  { %v2947_v42 = vpop.f32.mrf.mxu1 }
 0x1c2   :  { %v755_v44 = vsel %vm172_vm1, %v2947_v42, -inf }
 0x1c3   :  { %v2956_v46 = vpop.f32.mrf.mxu1  ;;  %759 = vmax.xlane.f32.xlu0 %v758_v43  ;;  %756 = vmax.xlane.f32.xlu1 %v755_v44 }
 0x1c4   :  { %v770_v53 = vsel %vm172_vm1, %v2956_v46, -inf }
 0x1c5   :  { %v2958_v47 = vpop.f32.mrf.mxu1 }
 0x1c6   :  { %v764_v49 = vsel %vm172_vm1, %v2958_v47, -inf }
 0x1c7   :  { %v2967_v51 = vpop.f32.mrf.mxu1  ;;  %765 = vmax.xlane.f32.xlu0 %v764_v49  ;;  %762 = vmax.xlane.f32.xlu1 %v761_v50 }
 0x1c8   :  { %v773_v58 = vsel %vm172_vm1, %v2967_v51, -inf }
 0x1c9   :  { %v2969_v52 = vpop.f32.mrf.mxu1 }
 0x1ca   :  { %v767_v54 = vsel %vm172_vm1, %v2969_v52, -inf }
 0x1cb   :  { %v2975_v55 = vpop.f32.mrf.mxu1  ;;  %771 = vmax.xlane.f32.xlu0 %v770_v53  ;;  %768 = vmax.xlane.f32.xlu1 %v767_v54 }
 0x1cc   :  { %v782_v61 = vsel %vm172_vm1, %v2975_v55, -inf }
 0x1cd   :  { %v2977_v56 = vpop.f32.mrf.mxu1 }
 0x1ce   :  { %v776_v57 = vsel %vm172_vm1, %v2977_v56, -inf }
 0x1cf   :  { %v2983_v59 = vpop.f32.mrf.mxu1  ;;  %777 = vmax.xlane.f32.xlu0 %v776_v57  ;;  %774 = vmax.xlane.f32.xlu1 %v773_v58 }
 0x1d0   :  { %v785_v2 = vsel %vm172_vm1, %v2983_v59, -inf }
 0x1d1   :  { %v2985_v60 = vpop.f32.mrf.mxu1 }
 0x1d2   :  { %v779_v62 = vsel %vm172_vm1, %v2985_v60, -inf }
 0x1d3   :  { %v2991_v63 = vpop.f32.mrf.mxu1  ;;  %783 = vmax.xlane.f32.xlu0 %v782_v61  ;;  %780 = vmax.xlane.f32.xlu1 %v779_v62 }
 0x1d4   :  { %v794_v5 = vsel %vm172_vm1, %v2991_v63, -inf }
 0x1d5   :  { %v2993_v0 = vpop.f32.mrf.mxu1 }
 0x1d6   :  { %v788_v1 = vsel %vm172_vm1, %v2993_v0, -inf }
 0x1d7   :  { %v2999_v3 = vpop.f32.mrf.mxu1  ;;  %789 = vmax.xlane.f32.xlu0 %v788_v1  ;;  %786 = vmax.xlane.f32.xlu1 %v785_v2 }
 0x1d8   :  { %v797_v9 = vsel %vm172_vm1, %v2999_v3, -inf }
 0x1d9   :  { %v3001_v4 = vpop.f32.mrf.mxu1 }
 0x1da   :  { %v791_v6 = vsel %vm172_vm1, %v3001_v4, -inf }
 0x1db   :  { %795 = vmax.xlane.f32.xlu0 %v794_v5  ;;  %792 = vmax.xlane.f32.xlu1 %v791_v6  ;;  %v3007_v7 = vpop.f32.mrf.mxu1  ;;  %v1639_v6 = vld [vmem:[%s3483_s5 + $0x38] sm:$0xff] }
 0x1dc   :  { %v806_v16 = vsel %vm172_vm1, %v3007_v7, -inf }
 0x1dd   :  { %v3009_v8 = vpop.f32.mrf.mxu1 }
 0x1de   :  { %v800_v10 = vsel %vm172_vm1, %v3009_v8, -inf }
 0x1df   :  { %798 = vmax.xlane.f32.xlu1 %v797_v9  ;;  %801 = vmax.xlane.f32.xlu0 %v800_v10  ;;  %v3015_v12 = vpop.f32.mrf.mxu1  ;;  %v1309_v9 = vld [vmem:[%s3484_s4 + $0x38] sm:$0xff] }
 0x1e0   :  { %v809_v21 = vsel %vm172_vm1, %v3015_v12, -inf }
 0x1e1   :  { %v3017_v14 = vpop.f32.mrf.mxu1 }
 0x1e2   :  { %v803_v18 = vsel %vm172_vm1, %v3017_v14, -inf }
 0x1e3   :  { %807 = vmax.xlane.f32.xlu0 %v806_v16  ;;  %804 = vmax.xlane.f32.xlu1 %v803_v18 }
 0x1e7   :  { %810 = vmax.xlane.f32.xlu1 %v809_v21  ;;  %v1638_v21 = vld [vmem:[%s3483_s5 + $0x30] sm:$0xff] }
 0x22e   :  { %v724_v25 = vpop.xlane.xlu1 %723 }
 0x22f   :  { %v814_v30 = vsub.f32 %v2882_v11, %v724_v25 }
 0x230   :  { %v718_v27 = vpop.xlane.xlu0 %717 }
 0x231   :  { %v812_v29 = vsub.f32 %v2886_v13, %v718_v27  ;;  %v848_v40 = vmul.f32 1.442695, %v814_v30 }
 0x232   :  { %v727_v33 = vpop.xlane.xlu1 %726 }
 0x233   :  { %v844_v34 = vmul.f32 1.442695, %v812_v29  ;;  %v815_v35 = vsub.f32 %v2890_v15, %v727_v33  ;;  %v1308_v33 = vld [vmem:[%s3484_s4 + $0x30] sm:$0xff] }
 0x234   :  { %v721_v38 = vpop.xlane.xlu0 %720 }
 0x235   :  { %2593 = vpow2.f32 %v844_v34  ;;  %v813_v39 = vsub.f32 %v2894_v17, %v721_v38  ;;  %v850_v44 = vmul.f32 1.442695, %v815_v35  ;;  %v1636_v38 = vld [vmem:[%s3483_s5 + $0x20] sm:$0xff] }
 0x237   :  { %v846_v43 = vmul.f32 1.442695, %v813_v39  ;;  %v1307_v39 = vld [vmem:[%s3484_s4 + $0x28] sm:$0xff] }
 0x238   :  { %v730_v45 = vpop.xlane.xlu0 %729 }
 0x239   :  { %2595 = vpow2.f32 %v846_v43  ;;  %v816_v48 = vsub.f32 %v2900_v20, %v730_v45 }
 0x23a   :  { %2597 = vpow2.f32 %v848_v40 }
 0x23b   :  { %v852_v49 = vmul.f32 1.442695, %v816_v48  ;;  %2599 = vpow2.f32 %v850_v44 }
 0x23c   :  { %v736_v13 = vpop.xlane.xlu0 %735  ;;  %v733_v11 = vpop.xlane.xlu1 %732 }
 0x23d   :  { %2601 = vpow2.f32 %v852_v49  ;;  %v818_v50 = vsub.f32 %v2898_v19, %v736_v13  ;;  %v817_v15 = vsub.f32 %v2906_v23, %v733_v11  ;;  %v1635_v13 = vld [vmem:[%s3483_s5 + $0x18] sm:$0xff] }
 0x23f   :  { %v856_v53 = vmul.f32 1.442695, %v818_v50  ;;  %v854_v54 = vmul.f32 1.442695, %v817_v15 }
 0x240   :  { %v739_v17 = vpop.xlane.xlu1 %738  ;;  %v742_v57 = vpop.xlane.xlu0 %741 }
 0x241   :  { %2603 = vpow2.f32 %v856_v53  ;;  %v819_v58 = vsub.f32 %v2904_v22, %v739_v17  ;;  %v820_v61 = vsub.f32 %v2917_v28, %v742_v57  ;;  %v1310_v22 = vld [vmem:[%s3484_s4 + $0x40] sm:$0xff]  ;;  %v1634_v53 = vld [vmem:[%s3483_s5 + $0x10] sm:$0xff] }
 0x242   :  { %v3037_v20 = vpop.eup %2593  ;;  %2605 = vpow2.f32 %v854_v54  ;;  %2420 = vmatprep.subr.mxu0 %v1310_v22 }
 0x243   :  { %v858_v62 = vmul.f32 1.442695, %v819_v58  ;;  %v860_v1 = vmul.f32 1.442695, %v820_v61  ;;  %2372 = vmatprep.mubr.msk.f32.mxu1 %vm172_vm1, %v3037_v20  ;;  %2421 = vmatpush3.msra.mxu0 %v1310_v22 }
 0x244   :  { %v748_v19 = vpop.xlane.xlu0 %747  ;;  %v745_v2 = vpop.xlane.xlu1 %744  ;;  %2422 = vmatprep.subr.mxu0 %v1309_v9 }
 0x245   :  { %2607 = vpow2.f32 %v858_v62  ;;  %v822_v23 = vsub.f32 %v2912_v26, %v748_v19  ;;  %v821_v5 = vsub.f32 %v2925_v32, %v745_v2  ;;  %2423 = vmatpush3.msra.mxu0 %v1309_v9  ;;  %v1632_v2 = vld [vmem:[%s3483_s5] sm:$0xff] }
 0x246   :  { %v3046_v28 = vpop.eup %2595  ;;  %2609 = vpow2.f32 %v860_v1  ;;  %2424 = vmatprep.subr.mxu0 %v1308_v33 }
 0x247   :  { %v3054_v10 = vpop.eup %2597  ;;  %v864_v26 = vmul.f32 1.442695, %v822_v23  ;;  %v862_v32 = vmul.f32 1.442695, %v821_v5  ;;  %2373 = vmatmul.mubr.msk.f32.vlgmr.msra.gmra.mxu1 %vm172_vm1, %v3046_v28  ;;  %2425 = vmatpush3.msra.mxu0 %v1308_v33 }
 0x248   :  { %v754_v16 = vpop.xlane.xlu0 %753  ;;  %v751_v18 = vpop.xlane.xlu1 %750  ;;  %2375 = vmatprep.mubr.msk.f32.mxu1 %vm172_vm1, %v3054_v10  ;;  %2487 = vmatpush3.msra.mxu1 %v1640_v24  ;;  %v1637_v24 = vld [vmem:[%s3483_s5 + $0x28] sm:$0xff] }
 0x249   :  { %v3063_v25 = vpop.eup %2599  ;;  %2611 = vpow2.f32 %v864_v26  ;;  %v824_v27 = vsub.f32 %v2936_v37, %v754_v16  ;;  %v823_v29 = vsub.f32 %v2923_v31, %v751_v18  ;;  %2488 = vmatprep.subr.mxu1 %v1639_v6  ;;  %2426 = vmatprep.subr.mxu0 %v1307_v39 }
 0x24a   :  { %v3067_v30 = vpop.eup %2601  ;;  %2613 = vpow2.f32 %v862_v32  ;;  %2489 = vmatpush3.msra.mxu1 %v1639_v6  ;;  %2427 = vmatpush3.msra.mxu0 %v1307_v39 }
 0x24b   :  { %v868_v34 = vmul.f32 1.442695, %v824_v27  ;;  %v866_v35 = vmul.f32 1.442695, %v823_v29  ;;  %2376 = vmatmul.mubr.msk.f32.gmra.mxu1 %vm172_vm1, %v3063_v25  ;;  %2490 = vmatprep.subr.mxu1 %v1638_v21 }
 0x24c   :  { %v760_v31 = vpop.xlane.xlu0 %759  ;;  %v757_v37 = vpop.xlane.xlu1 %756  ;;  %2378 = vmatprep.mubr.msk.f32.mxu1 %vm172_vm1, %v3067_v30  ;;  %2491 = vmatpush3.msra.mxu1 %v1638_v21 }
 0x24d   :  { %2615 = vpow2.f32 %v868_v34  ;;  %v826_v40 = vsub.f32 %v2934_v36, %v760_v31  ;;  %v825_v43 = vsub.f32 %v2947_v42, %v757_v37  ;;  %2492 = vmatprep.subr.mxu1 %v1637_v24  ;;  %v1306_v36 = vld [vmem:[%s3484_s4 + $0x20] sm:$0xff] }
 0x24e   :  { %v3087_v44 = vpop.eup %2603  ;;  %2617 = vpow2.f32 %v866_v35  ;;  %2493 = vmatpush3.msra.mxu1 %v1637_v24  ;;  %2428 = vmatprep.subr.mxu0 %v1306_v36 }
 0x24f   :  { %v3089_v45 = vpop.eup %2605  ;;  %v872_v48 = vmul.f32 1.442695, %v826_v40  ;;  %v870_v49 = vmul.f32 1.442695, %v825_v43  ;;  %2494 = vmatprep.subr.mxu1 %v1636_v38  ;;  %2429 = vmatpush3.msra.mxu0 %v1306_v36 }
 0x250   :  { %2379 = vmatmul.mubr.msk.f32.gmra.mxu1 %vm172_vm1, %v3089_v45  ;;  %v766_v42 = vpop.xlane.xlu0 %765  ;;  %v763_v11 = vpop.xlane.xlu1 %762 }
 0x251   :  { %2619 = vpow2.f32 %v872_v48  ;;  %v828_v50 = vsub.f32 %v2958_v47, %v766_v42  ;;  %v827_v15 = vsub.f32 %v2945_v41, %v763_v11  ;;  %2381 = vmatprep.mubr.msk.f32.mxu1 %vm172_vm1, %v3087_v44  ;;  %2495 = vmatpush3.msra.mxu1 %v1636_v38  ;;  %v1633_v41 = vld [vmem:[%s3483_s5 + $0x8] sm:$0xff]  ;;  %v1305_v47 = vld [vmem:[%s3484_s4 + $0x18] sm:$0xff] }
 0x252   :  { %v3106_v54 = vpop.eup %2607  ;;  %2621 = vpow2.f32 %v870_v49  ;;  %2496 = vmatprep.subr.mxu1 %v1635_v13  ;;  %2430 = vmatprep.subr.mxu0 %v1305_v47 }
 0x253   :  { %v3108_v17 = vpop.eup %2609  ;;  %v876_v57 = vmul.f32 1.442695, %v828_v50  ;;  %v874_v58 = vmul.f32 1.442695, %v827_v15  ;;  %2497 = vmatpush3.msra.mxu1 %v1635_v13  ;;  %2431 = vmatpush3.msra.mxu0 %v1305_v47 }
 0x254   :  { %2382 = vmatmul.mubr.msk.f32.gmra.mxu1 %vm172_vm1, %v3106_v54  ;;  %v772_v61 = vpop.xlane.xlu0 %771  ;;  %v769_v62 = vpop.xlane.xlu1 %768  ;;  %2498 = vmatprep.subr.mxu1 %v1634_v53 }
 0x255   :  { %2623 = vpow2.f32 %v876_v57  ;;  %v830_v1 = vsub.f32 %v2956_v46, %v772_v61  ;;  %v829_v19 = vsub.f32 %v2969_v52, %v769_v62  ;;  %2384 = vmatprep.mubr.msk.f32.mxu1 %vm172_vm1, %v3108_v17  ;;  %2499 = vmatpush3.msra.mxu1 %v1634_v53  ;;  %v1304_v46 = vld [vmem:[%s3484_s4 + $0x10] sm:$0xff] }
 0x256   :  { %v3125_v23 = vpop.eup %2611  ;;  %2625 = vpow2.f32 %v874_v58  ;;  %2500 = vmatprep.subr.mxu1 %v1633_v41  ;;  %2432 = vmatprep.subr.mxu0 %v1304_v46 }
 0x257   :  { %v3127_v5 = vpop.eup %2613  ;;  %v880_v22 = vmul.f32 1.442695, %v830_v1  ;;  %v878_v6 = vmul.f32 1.442695, %v829_v19  ;;  %2501 = vmatpush3.msra.mxu1 %v1633_v41  ;;  %2433 = vmatpush3.msra.mxu0 %v1304_v46 }
 0x258   :  { %2385 = vmatmul.mubr.msk.f32.gmra.mxu1 %vm172_vm1, %v3127_v5  ;;  %v778_v52 = vpop.xlane.xlu0 %777  ;;  %v775_v9 = vpop.xlane.xlu1 %774  ;;  %2502 = vmatprep.subr.mxu1 %v1632_v2 }
 0x259   :  { %2627 = vpow2.f32 %v880_v22  ;;  %v832_v26 = vsub.f32 %v2977_v56, %v778_v52  ;;  %v831_v32 = vsub.f32 %v2967_v51, %v775_v9  ;;  %2387 = vmatprep.mubr.msk.f32.mxu1 %vm172_vm1, %v3125_v23  ;;  %2503 = vmatpush3.msra.mxu1 %v1632_v2 }
 0x25a   :  { %v3138_v16 = vpop.eup %2615  ;;  %2629 = vpow2.f32 %v878_v6 }
 0x25b   :  { %v3140_v18 = vpop.eup %2617  ;;  %v884_v21 = vmul.f32 1.442695, %v832_v26  ;;  %v882_v27 = vmul.f32 1.442695, %v831_v32 }
 0x25c   :  { %2388 = vmatmul.mubr.msk.f32.gmra.mxu1 %vm172_vm1, %v3140_v18  ;;  %v784_v29 = vpop.xlane.xlu0 %783  ;;  %v781_v56 = vpop.xlane.xlu1 %780 }
 0x25d   :  { %2631 = vpow2.f32 %v884_v21  ;;  %v834_v51 = vsub.f32 %v2975_v55, %v784_v29  ;;  %v833_v24 = vsub.f32 %v2985_v60, %v781_v56  ;;  %2390 = vmatprep.mubr.msk.f32.mxu1 %vm172_vm1, %v3138_v16  ;;  %v1303_v56 = vld [vmem:[%s3484_s4 + $0x8] sm:$0xff] }
 0x25e   :  { %v3148_v33 = vpop.eup %2619  ;;  %2633 = vpow2.f32 %v882_v27  ;;  %2434 = vmatprep.subr.mxu0 %v1303_v56 }
 0x25f   :  { %v3150_v34 = vpop.eup %2621  ;;  %v888_v35 = vmul.f32 1.442695, %v834_v51  ;;  %v886_v31 = vmul.f32 1.442695, %v833_v24  ;;  %2435 = vmatpush3.msra.mxu0 %v1303_v56  ;;  %v1302_v51 = vld [vmem:[%s3484_s4] sm:$0xff]  ;;  %v2730_v56 = vld [vmem:[%s3480_s0 + $0x48] sm:$0xff]  }
 0x260   :  { %2391 = vmatmul.mubr.msk.f32.gmra.mxu1 %vm172_vm1, %v3150_v34  ;;  %v790_v37 = vpop.xlane.xlu0 %789  ;;  %v787_v38 = vpop.xlane.xlu1 %786  ;;  %2436 = vmatprep.subr.mxu0 %v1302_v51 }
 0x261   :  { %2635 = vpow2.f32 %v888_v35  ;;  %v836_v55 = vsub.f32 %v2993_v0, %v790_v37  ;;  %v835_v60 = vsub.f32 %v2983_v59, %v787_v38  ;;  %2393 = vmatprep.mubr.msk.f32.mxu1 %vm172_vm1, %v3148_v33  ;;  %2437 = vmatpush3.msra.mxu0 %v1302_v51  ;;  %v1256_v51 = vunpack.c.l.bf16 %v2730_v56 }
 0x262   :  { %v3158_v39 = vpop.eup %2623  ;;  %2637 = vpow2.f32 %v886_v31 }
 0x263   :  { %v3160_v40 = vpop.eup %2625  ;;  %v892_v43 = vmul.f32 1.442695, %v836_v55  ;;  %v890_v48 = vmul.f32 1.442695, %v835_v60  ;;  %v2724_v55 = vld [vmem:[%s3480_s0 + $0x18] sm:$0xff]  }
 0x264   :  { %2394 = vmatmul.mubr.msk.f32.gmra.mxu1 %vm172_vm1, %v3160_v40  ;;  %v796_v49 = vpop.xlane.xlu0 %795  ;;  %v793_v13 = vpop.xlane.xlu1 %792  ;;  %v1244_v60 = vunpack.c.l.bf16 %v2724_v55 }
 0x265   :  { %2639 = vpow2.f32 %v892_v43  ;;  %v838_v0 = vsub.f32 %v2991_v63, %v796_v49  ;;  %v837_v59 = vsub.f32 %v3001_v4, %v793_v13  ;;  %2396 = vmatprep.mubr.msk.f32.mxu1 %vm172_vm1, %v3158_v39  ;;  %v1245_v43 = vunpack.c.h.bf16 %v2724_v55  ;;  %v2725_v13 = vld [vmem:[%s3480_s0 + $0x20] sm:$0xff]  }
 0x266   :  { %v3168_v36 = vpop.eup %2627  ;;  %2641 = vpow2.f32 %v890_v48 }
 0x267   :  { %v3170_v42 = vpop.eup %2629  ;;  %v896_v11 = vmul.f32 1.442695, %v838_v0  ;;  %v894_v50 = vmul.f32 1.442695, %v837_v59  ;;  %v1246_v0 = vunpack.c.l.bf16 %v2725_v13 }
 0x268   :  { %2397 = vmatmul.mubr.msk.f32.gmra.mxu1 %vm172_vm1, %v3170_v42  ;;  %v799_v15 = vpop.xlane.xlu1 %798  ;;  %v802_v53 = vpop.xlane.xlu0 %801 }
 0x269   :  { %2643 = vpow2.f32 %v896_v11  ;;  %v839_v63 = vsub.f32 %v2999_v3, %v799_v15  ;;  %2399 = vmatprep.mubr.msk.f32.mxu1 %vm172_vm1, %v3168_v36  ;;  %v840_v4 = vsub.f32 %v3009_v8, %v802_v53  ;;  %v2726_v15 = vld [vmem:[%s3480_s0 + $0x28] sm:$0xff]  }
 0x26a   :  { %v3178_v57 = vpop.eup %2631  ;;  %2645 = vpow2.f32 %v894_v50  ;;  %v1248_v53 = vunpack.c.l.bf16 %v2726_v15 }
 0x26b   :  { %v3180_v58 = vpop.eup %2633  ;;  %v898_v41 = vmul.f32 1.442695, %v839_v63  ;;  %v900_v47 = vmul.f32 1.442695, %v840_v4 }
 0x26c   :  { %2400 = vmatmul.mubr.msk.f32.gmra.mxu1 %vm172_vm1, %v3180_v58  ;;  %v808_v61 = vpop.xlane.xlu0 %807  ;;  %v805_v62 = vpop.xlane.xlu1 %804 }
 0x26d   :  { %2647 = vpow2.f32 %v898_v41  ;;  %2402 = vmatprep.mubr.msk.f32.mxu1 %vm172_vm1, %v3178_v57  ;;  %v842_v3 = vsub.f32 %v3007_v7, %v808_v61  ;;  %v841_v8 = vsub.f32 %v3017_v14, %v805_v62 }
 0x26e   :  { %v2636_v1 = vpop.eup %2635  ;;  %2649 = vpow2.f32 %v900_v47  ;;  %v2727_v47 = vld [vmem:[%s3480_s0 + $0x30] sm:$0xff]  }
 0x26f   :  { %v2638_v19 = vpop.eup %2637  ;;  %v904_v2 = vmul.f32 1.442695, %v842_v3  ;;  %v902_v22 = vmul.f32 1.442695, %v841_v8  ;;  %v1250_v61 = vunpack.c.l.bf16 %v2727_v47  ;;  %v1251_v8 = vunpack.c.h.bf16 %v2727_v47 }
 0x270   :  { %2403 = vmatmul.mubr.msk.f32.gmra.mxu1 %vm172_vm1, %v2638_v19  ;;  %v811_v6 = vpop.xlane.xlu1 %810 }
 0x271   :  { %2651 = vpow2.f32 %v904_v2  ;;  %2405 = vmatprep.mubr.msk.f32.mxu1 %vm172_vm1, %v2636_v1  ;;  %v843_v46 = vsub.f32 %v3015_v12, %v811_v6  ;;  %v2728_v2 = vld [vmem:[%s3480_s0 + $0x38] sm:$0xff]  }
 0x272   :  { %v2640_v52 = vpop.eup %2639  ;;  %2653 = vpow2.f32 %v902_v22  ;;  %v1252_v22 = vunpack.c.l.bf16 %v2728_v2 }
 0x273   :  { %v2642_v9 = vpop.eup %2641  ;;  %v906_v26 = vmul.f32 1.442695, %v843_v46 }
 0x274   :  { %2406 = vmatmul.mubr.msk.f32.gmra.mxu1 %vm172_vm1, %v2642_v9 }
 0x275   :  { %2655 = vpow2.f32 %v906_v26  ;;  %2408 = vmatprep.mubr.msk.f32.mxu1 %vm172_vm1, %v2640_v52 }
 0x276   :  { %v2644_v7 = vpop.eup %2643 }
 0x277   :  { %v2646_v14 = vpop.eup %2645 }
 0x278   :  { %2409 = vmatmul.mubr.msk.f32.gmra.mxu1 %vm172_vm1, %v2646_v14 }
 0x279   :  { %2411 = vmatprep.mubr.msk.f32.mxu1 %vm172_vm1, %v2644_v7 }
 0x27a   :  { %v2648_v32 = vpop.eup %2647 }
 0x27b   :  { %v2650_v21 = vpop.eup %2649 }
 0x27c   :  { %2412 = vmatmul.mubr.msk.f32.gmra.mxu1 %vm172_vm1, %v2648_v32 }
 0x27d   :  { %2414 = vmatprep.mubr.msk.f32.mxu1 %vm172_vm1, %v2650_v21 }
 0x27e   :  { %v2652_v12 = vpop.eup %2651 }
 0x27f   :  { %v2654_v27 = vpop.eup %2653 }
 0x280   :  { %2415 = vmatmul.mubr.msk.f32.gmra.mxu1 %vm172_vm1, %v2654_v27 }
 0x281   :  { %2417 = vmatprep.mubr.msk.f32.mxu1 %vm172_vm1, %v2652_v12 }
 0x282   :  { %v2656_v29 = vpop.eup %2655 }
 0x284   :  { %2418 = vmatmul.mubr.msk.f32.gmra.mxu1 %vm172_vm1, %v2656_v29 }
 0x285   :  { %2504 = vmatprep.mubr.msk.f32.mxu1 %vm172_vm1, %v3037_v20  ;;  %v2721_v20 = vld [vmem:[%s3480_s0] sm:$0xff]  }
 0x288   :  { %2505 = vmatmul.mubr.msk.f32.vlgmr.msra.gmra.mxu1 %vm172_vm1, %v3046_v28  ;;  %v1238_v28 = vunpack.c.l.bf16 %v2721_v20 }
 0x289   :  { %2507 = vmatprep.mubr.msk.f32.mxu1 %vm172_vm1, %v3054_v10 }
 0x28c   :  { %2508 = vmatmul.mubr.msk.f32.gmra.mxu1 %vm172_vm1, %v3063_v25  ;;  %v1239_v25 = vunpack.c.h.bf16 %v2721_v20 }
 0x28d   :  { %2510 = vmatprep.mubr.msk.f32.mxu1 %vm172_vm1, %v3067_v30 }
 0x290   :  { %2511 = vmatmul.mubr.msk.f32.gmra.mxu1 %vm172_vm1, %v3089_v45  ;;  %v2722_v45 = vld [vmem:[%s3480_s0 + $0x8] sm:$0xff]  }
 0x291   :  { %2513 = vmatprep.mubr.msk.f32.mxu1 %vm172_vm1, %v3087_v44 }
 0x294   :  { %2514 = vmatmul.mubr.msk.f32.gmra.mxu1 %vm172_vm1, %v3106_v54  ;;  %v1240_v54 = vunpack.c.l.bf16 %v2722_v45 }
 0x295   :  { %2516 = vmatprep.mubr.msk.f32.mxu1 %vm172_vm1, %v3108_v17 }
 0x298   :  { %2517 = vmatmul.mubr.msk.f32.gmra.mxu1 %vm172_vm1, %v3127_v5  ;;  %v1241_v5 = vunpack.c.h.bf16 %v2722_v45 }
 0x299   :  { %2519 = vmatprep.mubr.msk.f32.mxu1 %vm172_vm1, %v3125_v23 }
 0x29c   :  { %2520 = vmatmul.mubr.msk.f32.gmra.mxu1 %vm172_vm1, %v3140_v18 }
 0x29d   :  { %2522 = vmatprep.mubr.msk.f32.mxu1 %vm172_vm1, %v3138_v16 }
 0x2a0   :  { %2523 = vmatmul.mubr.msk.f32.gmra.mxu1 %vm172_vm1, %v3150_v34 }
 0x2a1   :  { %2525 = vmatprep.mubr.msk.f32.mxu1 %vm172_vm1, %v3148_v33  ;;  %v2723_v33 = vld [vmem:[%s3480_s0 + $0x10] sm:$0xff]  }
 0x2a2   :  { %v1242_v34 = vunpack.c.l.bf16 %v2723_v33  ;;  %v1243_v31 = vunpack.c.h.bf16 %v2723_v33 }
 0x2a4   :  { %2526 = vmatmul.mubr.msk.f32.gmra.mxu1 %vm172_vm1, %v3160_v40 }
 0x2a5   :  { %2528 = vmatprep.mubr.msk.f32.mxu1 %vm172_vm1, %v3158_v39 }
 0x2a8   :  { %2529 = vmatmul.mubr.msk.f32.gmra.mxu1 %vm172_vm1, %v3170_v42  ;;  %v1247_v42 = vunpack.c.h.bf16 %v2725_v13 }
 0x2a9   :  { %2531 = vmatprep.mubr.msk.f32.mxu1 %vm172_vm1, %v3168_v36 }
 0x2ac   :  { %2532 = vmatmul.mubr.msk.f32.gmra.mxu1 %vm172_vm1, %v3180_v58 }
 0x2ad   :  { %2534 = vmatprep.mubr.msk.f32.mxu1 %vm172_vm1, %v3178_v57  ;;  %v1249_v57 = vunpack.c.h.bf16 %v2726_v15 }
 0x2b0   :  { %2535 = vmatmul.mubr.msk.f32.gmra.mxu1 %vm172_vm1, %v2638_v19 }
 0x2b1   :  { %2537 = vmatprep.mubr.msk.f32.mxu1 %vm172_vm1, %v2636_v1 }
 0x2b4   :  { %2538 = vmatmul.mubr.msk.f32.gmra.mxu1 %vm172_vm1, %v2642_v9 }
 0x2b5   :  { %2540 = vmatprep.mubr.msk.f32.mxu1 %vm172_vm1, %v2640_v52  ;;  %v1253_v52 = vunpack.c.h.bf16 %v2728_v2 }
 0x2b8   :  { %2541 = vmatmul.mubr.msk.f32.gmra.mxu1 %vm172_vm1, %v2646_v14 }
 0x2b9   :  { %2543 = vmatprep.mubr.msk.f32.mxu1 %vm172_vm1, %v2644_v7  ;;  %v2729_v7 = vld [vmem:[%s3480_s0 + $0x40] sm:$0xff]  }
 0x2ba   :  { %v1254_v14 = vunpack.c.l.bf16 %v2729_v7 }
 0x2bc   :  { %2544 = vmatmul.mubr.msk.f32.gmra.mxu1 %vm172_vm1, %v2648_v32 }
 0x2bd   :  { %2546 = vmatprep.mubr.msk.f32.mxu1 %vm172_vm1, %v2650_v21 }
 0x2c0   :  { %2547 = vmatmul.mubr.msk.f32.gmra.mxu1 %vm172_vm1, %v2654_v27 }
 0x2c1   :  { %2549 = vmatprep.mubr.msk.f32.mxu1 %vm172_vm1, %v2652_v12  ;;  %v1255_v12 = vunpack.c.h.bf16 %v2729_v7 }
 0x2c4   :  { %2550 = vmatmul.mubr.msk.f32.gmra.mxu1 %vm172_vm1, %v2656_v29 }
 0x307   :  { %v2374_v10 = vpop.f32.mrf.mxu1 }
 0x308   :  { %v1271_v17 = vmul.f32 %v2374_v10, %v1239_v25  ;;  %v1257_v10 = vunpack.c.h.bf16 %v2730_v56 }
 0x309   :  { %v1079_v30 = vpop.f32.mrf.mxu1 }
 0x30a   :  { %v1270_v44 = vmul.f32 %v1238_v28, %v1079_v30 }
 0x30b   :  { %v2377_v23 = vpop.f32.mrf.mxu1 }
 0x30c   :  { %2438 = vmatprep.mubr.msk.f32.mxu0 %vm172_vm1, %v1270_v44  ;;  %v1273_v24 = vmul.f32 %v2377_v23, %v1241_v5  ;;  %v2731_v44 = vld [vmem:[%s3480_s0 + $0x50] sm:$0xff]  }
 0x30d   :  { %v1089_v16 = vpop.f32.mrf.mxu1  ;;  %2439 = vmatmul.mubr.msk.f32.vlgmr.msra.gmra.mxu0 %vm172_vm1, %v1271_v17  ;;  %v1258_v45 = vunpack.c.l.bf16 %v2731_v44  ;;  %v1259_v23 = vunpack.c.h.bf16 %v2731_v44 }
 0x30e   :  { %v1272_v18 = vmul.f32 %v1240_v54, %v1089_v16 }
 0x310   :  { %v2380_v35 = vpop.f32.mrf.mxu1  ;;  %2441 = vmatprep.mubr.msk.f32.mxu0 %vm172_vm1, %v1272_v18  ;;  %v2732_v18 = vld [vmem:[%s3480_s0 + $0x58] sm:$0xff]  }
 0x311   :  { %2442 = vmatmul.mubr.msk.f32.gmra.mxu0 %vm172_vm1, %v1273_v24  ;;  %v1275_v39 = vmul.f32 %v2380_v35, %v1243_v31  ;;  %v1260_v24 = vunpack.c.l.bf16 %v2732_v18  ;;  %v1261_v35 = vunpack.c.h.bf16 %v2732_v18 }
 0x312   :  { %v1099_v37 = vpop.f32.mrf.mxu1 }
 0x313   :  { %v1274_v38 = vmul.f32 %v1242_v34, %v1099_v37 }
 0x314   :  { %v2383_v40 = vpop.f32.mrf.mxu1 }
 0x315   :  { %2444 = vmatprep.mubr.msk.f32.mxu0 %vm172_vm1, %v1274_v38  ;;  %v1277_v59 = vmul.f32 %v2383_v40, %v1245_v43  ;;  %v2733_v38 = vld [vmem:[%s3480_s0 + $0x60] sm:$0xff]  }
 0x316   :  { %v1109_v48 = vpop.f32.mrf.mxu1  ;;  %2445 = vmatmul.mubr.msk.f32.gmra.mxu0 %vm172_vm1, %v1275_v39  ;;  %v1262_v55 = vunpack.c.l.bf16 %v2733_v38  ;;  %v1263_v40 = vunpack.c.h.bf16 %v2733_v38 }
 0x317   :  { %v1276_v49 = vmul.f32 %v1244_v60, %v1109_v48 }
 0x318   :  { %v2386_v36 = vpop.f32.mrf.mxu1 }
 0x319   :  { %2447 = vmatprep.mubr.msk.f32.mxu0 %vm172_vm1, %v1276_v49  ;;  %v1279_v63 = vmul.f32 %v2386_v36, %v1247_v42  ;;  %v2734_v49 = vld [vmem:[%s3480_s0 + $0x68] sm:$0xff]  }
 0x31a   :  { %v1119_v11 = vpop.f32.mrf.mxu1  ;;  %2448 = vmatmul.mubr.msk.f32.gmra.mxu0 %vm172_vm1, %v1277_v59  ;;  %v1264_v13 = vunpack.c.l.bf16 %v2734_v49  ;;  %v1265_v36 = vunpack.c.h.bf16 %v2734_v49 }
 0x31b   :  { %v1278_v50 = vmul.f32 %v1246_v0, %v1119_v11 }
 0x31c   :  { %v2389_v4 = vpop.f32.mrf.mxu1 }
 0x31d   :  { %2450 = vmatprep.mubr.msk.f32.mxu0 %vm172_vm1, %v1278_v50  ;;  %v1281_v62 = vmul.f32 %v2389_v4, %v1249_v57  ;;  %v2735_v50 = vld [vmem:[%s3480_s0 + $0x70] sm:$0xff]  }
 0x31e   :  { %v1129_v58 = vpop.f32.mrf.mxu1  ;;  %2451 = vmatmul.mubr.msk.f32.gmra.mxu0 %vm172_vm1, %v1279_v63  ;;  %v1266_v15 = vunpack.c.l.bf16 %v2735_v50  ;;  %v1267_v4 = vunpack.c.h.bf16 %v2735_v50 }
 0x31f   :  { %v1280_v41 = vmul.f32 %v1248_v53, %v1129_v58 }
 0x320   :  { %v2392_v3 = vpop.f32.mrf.mxu1 }
 0x321   :  { %2453 = vmatprep.mubr.msk.f32.mxu0 %vm172_vm1, %v1280_v41  ;;  %v1283_v6 = vmul.f32 %v2392_v3, %v1251_v8  ;;  %v2736_v41 = vld [vmem:[%s3480_s0 + $0x78] sm:$0xff]  }
 0x322   :  { %v1139_v1 = vpop.f32.mrf.mxu1  ;;  %2454 = vmatmul.mubr.msk.f32.gmra.mxu0 %vm172_vm1, %v1281_v62  ;;  %v1268_v47 = vunpack.c.l.bf16 %v2736_v41  ;;  %v1269_v3 = vunpack.c.h.bf16 %v2736_v41 }
 0x323   :  { %v1282_v19 = vmul.f32 %v1250_v61, %v1139_v1 }
 0x324   :  { %v2395_v46 = vpop.f32.mrf.mxu1 }
 0x325   :  { %2456 = vmatprep.mubr.msk.f32.mxu0 %vm172_vm1, %v1282_v19  ;;  %v1285_v32 = vmul.f32 %v2395_v46, %v1253_v52 }
 0x326   :  { %v1149_v9 = vpop.f32.mrf.mxu1  ;;  %2457 = vmatmul.mubr.msk.f32.gmra.mxu0 %vm172_vm1, %v1283_v6 }
 0x327   :  { %v1284_v26 = vmul.f32 %v1252_v22, %v1149_v9 }
 0x328   :  { %v2398_v21 = vpop.f32.mrf.mxu1 }
 0x329   :  { %2459 = vmatprep.mubr.msk.f32.mxu0 %vm172_vm1, %v1284_v26  ;;  %v1287_v20 = vmul.f32 %v2398_v21, %v1255_v12 }
 0x32a   :  { %v1159_v27 = vpop.f32.mrf.mxu1  ;;  %2460 = vmatmul.mubr.msk.f32.gmra.mxu0 %vm172_vm1, %v1285_v32 }
 0x32b   :  { %v1286_v29 = vmul.f32 %v1254_v14, %v1159_v27 }
 0x32c   :  { %v2401_v28 = vpop.f32.mrf.mxu1 }
 0x32d   :  { %2462 = vmatprep.mubr.msk.f32.mxu0 %vm172_vm1, %v1286_v29  ;;  %v1289_v54 = vmul.f32 %v2401_v28, %v1257_v10 }
 0x32e   :  { %v1169_v25 = vpop.f32.mrf.mxu1  ;;  %2463 = vmatmul.mubr.msk.f32.gmra.mxu0 %vm172_vm1, %v1287_v20 }
 0x32f   :  { %v1288_v30 = vmul.f32 %v1256_v51, %v1169_v25 }
 0x330   :  { %v2404_v17 = vpop.f32.mrf.mxu1 }
 0x331   :  { %2465 = vmatprep.mubr.msk.f32.mxu0 %vm172_vm1, %v1288_v30  ;;  %v1291_v33 = vmul.f32 %v2404_v17, %v1259_v23 }
 0x332   :  { %v1179_v5 = vpop.f32.mrf.mxu1  ;;  %2466 = vmatmul.mubr.msk.f32.gmra.mxu0 %vm172_vm1, %v1289_v54 }
 0x333   :  { %v1290_v16 = vmul.f32 %v1258_v45, %v1179_v5 }
 0x334   :  { %v2407_v34 = vpop.f32.mrf.mxu1 }
 0x335   :  { %2468 = vmatprep.mubr.msk.f32.mxu0 %vm172_vm1, %v1290_v16  ;;  %v1293_v60 = vmul.f32 %v2407_v34, %v1261_v35 }
 0x336   :  { %v1189_v31 = vpop.f32.mrf.mxu1  ;;  %2469 = vmatmul.mubr.msk.f32.gmra.mxu0 %vm172_vm1, %v1291_v33 }
 0x337   :  { %v1292_v37 = vmul.f32 %v1260_v24, %v1189_v31 }
 0x338   :  { %v2410_v39 = vpop.f32.mrf.mxu1 }
 0x339   :  { %2471 = vmatprep.mubr.msk.f32.mxu0 %vm172_vm1, %v1292_v37  ;;  %v1295_v0 = vmul.f32 %v2410_v39, %v1263_v40 }
 0x33a   :  { %v1199_v43 = vpop.f32.mrf.mxu1  ;;  %2472 = vmatmul.mubr.msk.f32.gmra.mxu0 %vm172_vm1, %v1293_v60 }
 0x33b   :  { %v1294_v48 = vmul.f32 %v1262_v55, %v1199_v43 }
 0x33c   :  { %v2413_v59 = vpop.f32.mrf.mxu1 }
 0x33d   :  { %2474 = vmatprep.mubr.msk.f32.mxu0 %vm172_vm1, %v1294_v48  ;;  %v1297_v53 = vmul.f32 %v2413_v59, %v1265_v36 }
 0x33e   :  { %v1209_v42 = vpop.f32.mrf.mxu1  ;;  %2475 = vmatmul.mubr.msk.f32.gmra.mxu0 %vm172_vm1, %v1295_v0 }
 0x33f   :  { %v1296_v11 = vmul.f32 %v1264_v13, %v1209_v42 }
 0x340   :  { %v2416_v63 = vpop.f32.mrf.mxu1 }
 0x341   :  { %2477 = vmatprep.mubr.msk.f32.mxu0 %vm172_vm1, %v1296_v11  ;;  %v1299_v61 = vmul.f32 %v2416_v63, %v1267_v4 }
 0x342   :  { %v1219_v57 = vpop.f32.mrf.mxu1  ;;  %2478 = vmatmul.mubr.msk.f32.gmra.mxu0 %vm172_vm1, %v1297_v53 }
 0x343   :  { %v1298_v58 = vmul.f32 %v1266_v15, %v1219_v57 }
 0x344   :  { %v2419_v62 = vpop.f32.mrf.mxu1 }
 0x345   :  { %2480 = vmatprep.mubr.msk.f32.mxu0 %vm172_vm1, %v1298_v58  ;;  %v1301_v19 = vmul.f32 %v2419_v62, %v1269_v3 }
 0x346   :  { %v1229_v8 = vpop.f32.mrf.mxu1  ;;  %2481 = vmatmul.mubr.msk.f32.gmra.mxu0 %vm172_vm1, %v1299_v61 }
 0x347   :  { %v1300_v1 = vmul.f32 %v1268_v47, %v1229_v8 }
 0x348   :  { %v2506_v2 = vpop.f32.mrf.mxu1 }
 0x349   :  { %2483 = vmatprep.mubr.msk.f32.mxu0 %vm172_vm1, %v1300_v1  ;;  %2657 = vrcp.f32 %v2506_v2 }
 0x34a   :  { %2484 = vmatmul.mubr.msk.f32.gmra.mxu0 %vm172_vm1, %v1301_v19  ;;  %v1707_v22 = vpop.f32.mrf.mxu1  ;;  %vm1930_vm1 = vcmask 64512  }
 0x34b   :  { %2659 = vrcp.f32 %v1707_v22 }
 0x34c   :  { %v2509_v6 = vpop.f32.mrf.mxu1 }
 0x34d   :  { %2661 = vrcp.f32 %v2509_v6 }
 0x34e   :  { %v1717_v46 = vpop.f32.mrf.mxu1 }
 0x34f   :  { %2663 = vrcp.f32 %v1717_v46 }
 0x350   :  { %v2512_v52 = vpop.f32.mrf.mxu1 }
 0x351   :  { %2665 = vrcp.f32 %v2512_v52 }
 0x352   :  { %v1727_v9 = vpop.f32.mrf.mxu1 }
 0x353   :  { %2667 = vrcp.f32 %v1727_v9 }
 0x354   :  { %v2515_v26 = vpop.f32.mrf.mxu1 }
 0x355   :  { %2669 = vrcp.f32 %v2515_v26 }
 0x356   :  { %v1737_v7 = vpop.f32.mrf.mxu1  ;;  %v2658_v30 = vpop.eup %2657 }
 0x357   :  { %2671 = vrcp.f32 %v1737_v7 }
 0x358   :  { %v2518_v14 = vpop.f32.mrf.mxu1  ;;  %v2660_v54 = vpop.eup %2659 }
 0x359   :  { %2673 = vrcp.f32 %v2518_v14 }
 0x35a   :  { %v1747_v32 = vpop.f32.mrf.mxu1  ;;  %v2662_v16 = vpop.eup %2661 }
 0x35b   :  { %2675 = vrcp.f32 %v1747_v32 }
 0x35c   :  { %v2521_v21 = vpop.f32.mrf.mxu1  ;;  %v2664_v33 = vpop.eup %2663 }
 0x35d   :  { %2677 = vrcp.f32 %v2521_v21 }
 0x35e   :  { %v1757_v12 = vpop.f32.mrf.mxu1  ;;  %v2666_v37 = vpop.eup %2665 }
 0x35f   :  { %2679 = vrcp.f32 %v1757_v12 }
 0x360   :  { %v2524_v27 = vpop.f32.mrf.mxu1  ;;  %v2668_v60 = vpop.eup %2667 }
 0x361   :  { %2681 = vrcp.f32 %v2524_v27 }
 0x362   :  { %v1767_v29 = vpop.f32.mrf.mxu1  ;;  %v2670_v48 = vpop.eup %2669 }
 0x363   :  { %2683 = vrcp.f32 %v1767_v29 }
 0x364   :  { %v2527_v56 = vpop.f32.mrf.mxu1  ;;  %v2672_v0 = vpop.eup %2671 }
 0x365   :  { %2685 = vrcp.f32 %v2527_v56 }
 0x366   :  { %v1777_v51 = vpop.f32.mrf.mxu1  ;;  %v2674_v11 = vpop.eup %2673 }
 0x367   :  { %2687 = vrcp.f32 %v1777_v51 }
 0x368   :  { %v2530_v20 = vpop.f32.mrf.mxu1  ;;  %v2676_v53 = vpop.eup %2675 }
 0x369   :  { %2689 = vrcp.f32 %v2530_v20 }
 0x36a   :  { %v3339_v28 = vpop.f32.mrf.mxu1  ;;  %v2678_v58 = vpop.eup %2677 }
 0x36b   :  { %2691 = vrcp.f32 %v3339_v28 }
 0x36c   :  { %v3341_v10 = vpop.f32.mrf.mxu1  ;;  %v2680_v61 = vpop.eup %2679 }
 0x36d   :  { %2693 = vrcp.f32 %v3341_v10 }
 0x36e   :  { %v3343_v25 = vpop.f32.mrf.mxu1  ;;  %v2682_v1 = vpop.eup %2681 }
 0x36f   :  { %2695 = vrcp.f32 %v3343_v25 }
 0x370   :  { %v3345_v23 = vpop.f32.mrf.mxu1  ;;  %v2684_v22 = vpop.eup %2683 }
 0x371   :  { %2697 = vrcp.f32 %v3345_v23 }
 0x372   :  { %v1807_v35 = vpop.f32.mrf.mxu1  ;;  %v2686_v9 = vpop.eup %2685 }
 0x373   :  { %2699 = vrcp.f32 %v1807_v35 }
 0x374   :  { %v2539_v39 = vpop.f32.mrf.mxu1  ;;  %v2688_v14 = vpop.eup %2687 }
 0x375   :  { %2701 = vrcp.f32 %v2539_v39 }
 0x376   :  { %v1817_v59 = vpop.f32.mrf.mxu1  ;;  %v2690_v27 = vpop.eup %2689 }
 0x377   :  { %2703 = vrcp.f32 %v1817_v59 }
 0x378   :  { %v2542_v63 = vpop.f32.mrf.mxu1  ;;  %v2692_v51 = vpop.eup %2691 }
 0x379   :  { %2705 = vrcp.f32 %v2542_v63 }
 0x37a   :  { %v1827_v62 = vpop.f32.mrf.mxu1  ;;  %v2694_v25 = vpop.eup %2693 }
 0x37b   :  { %2707 = vrcp.f32 %v1827_v62 }
 0x37c   :  { %v2545_v6 = vpop.f32.mrf.mxu1 }
 0x37d   :  { %2709 = vrcp.f32 %v2545_v6 }
 0x37e   :  { %v1837_v32 = vpop.f32.mrf.mxu1 }
 0x37f   :  { %2711 = vrcp.f32 %v1837_v32 }
 0x380   :  { %v2548_v20 = vpop.f32.mrf.mxu1 }
 0x381   :  { %2713 = vrcp.f32 %v2548_v20 }
 0x3cd   :  { %v2440_v44 = vpop.f32.mrf.mxu0 }
 0x3ce   :  { %v1899_v45 = vmul.f32 %v2658_v30, %v2440_v44 }
 0x3cf   :  { %v1473_v17 = vpop.f32.mrf.mxu0 }
 0x3d0   :  { %1932 = vst.msk [vmem:[%s3485_s6 + $0x8] sm:$0xff] %vm1930_vm1, %v1899_v45  ;;  %v1898_v5 = vmul.f32 %v2660_v54, %v1473_v17  ;;  %v2696_v45 = vpop.eup %2695  ;;  %v1847_v54 = vpop.f32.mrf.mxu1 }
 0x3d1   :  { %v2443_v18 = vpop.f32.mrf.mxu0  ;;  %2715 = vrcp.f32 %v1847_v54 }
 0x3d2   :  { %1931 = vst.msk [vmem:[%s3485_s6] sm:$0xff] %vm1930_vm1, %v1898_v5  ;;  %v1901_v24 = vmul.f32 %v2662_v16, %v2443_v18  ;;  %v2698_v5 = vpop.eup %2697 }
 0x3d3   :  { %v1483_v34 = vpop.f32.mrf.mxu0 }
 0x3d4   :  { %1934 = vst.msk [vmem:[%s3485_s6 + $0x18] sm:$0xff] %vm1930_vm1, %v1901_v24  ;;  %v1900_v31 = vmul.f32 %v2664_v33, %v1483_v34  ;;  %v2700_v24 = vpop.eup %2699  ;;  %v2551_v33 = vpop.f32.mrf.mxu1 }
 0x3d5   :  { %2717 = vrcp.f32 %v2551_v33 }
 0x3d6   :  { %1933 = vst.msk [vmem:[%s3485_s6 + $0x10] sm:$0xff] %vm1930_vm1, %v1900_v31  ;;  %v2446_v38 = vpop.f32.mrf.mxu0  ;;  %v2702_v31 = vpop.eup %2701 }
 0x3d7   :  { %v1903_v55 = vmul.f32 %v2666_v37, %v2446_v38 }
 0x3d8   :  { %v1493_v40 = vpop.f32.mrf.mxu0 }
 0x3d9   :  { %1936 = vst.msk [vmem:[%s3485_s6 + $0x28] sm:$0xff] %vm1930_vm1, %v1903_v55  ;;  %v1902_v43 = vmul.f32 %v2668_v60, %v1493_v40  ;;  %v2704_v55 = vpop.eup %2703  ;;  %v1857_v60 = vpop.f32.mrf.mxu1 }
 0x3da   :  { %v2449_v49 = vpop.f32.mrf.mxu0  ;;  %2719 = vrcp.f32 %v1857_v60 }
 0x3db   :  { %1935 = vst.msk [vmem:[%s3485_s6 + $0x20] sm:$0xff] %vm1930_vm1, %v1902_v43  ;;  %v1905_v13 = vmul.f32 %v2670_v48, %v2449_v49  ;;  %v2706_v43 = vpop.eup %2705 }
 0x3dc   :  { %v1503_v36 = vpop.f32.mrf.mxu0 }
 0x3dd   :  { %1938 = vst.msk [vmem:[%s3485_s6 + $0x38] sm:$0xff] %vm1930_vm1, %v1905_v13  ;;  %v1904_v42 = vmul.f32 %v2672_v0, %v1503_v36  ;;  %v2708_v13 = vpop.eup %2707 }
 0x3de   :  { %v2452_v50 = vpop.f32.mrf.mxu0  ;;  %v2710_v36 = vpop.eup %2709 }
 0x3df   :  { %1937 = vst.msk [vmem:[%s3485_s6 + $0x30] sm:$0xff] %vm1930_vm1, %v1904_v42  ;;  %v1907_v15 = vmul.f32 %v2674_v11, %v2452_v50  ;;  %v2712_v50 = vpop.eup %2711 }
 0x3e0   :  { %v1513_v4 = vpop.f32.mrf.mxu0  ;;  %v2714_v63 = vpop.eup %2713 }
 0x3e1   :  { %1940 = vst.msk [vmem:[%s3485_s6 + $0x48] sm:$0xff] %vm1930_vm1, %v1907_v15  ;;  %v1906_v57 = vmul.f32 %v2676_v53, %v1513_v4 }
 0x3e2   :  { %v2455_v41 = vpop.f32.mrf.mxu0 }
 0x3e3   :  { %1939 = vst.msk [vmem:[%s3485_s6 + $0x40] sm:$0xff] %vm1930_vm1, %v1906_v57  ;;  %v1909_v47 = vmul.f32 %v2678_v58, %v2455_v41  ;;  %v2716_v58 = vpop.eup %2715 }
 0x3e4   :  { %v1523_v3 = vpop.f32.mrf.mxu0 }
 0x3e5   :  { %1942 = vst.msk [vmem:[%s3485_s6 + $0x58] sm:$0xff] %vm1930_vm1, %v1909_v47  ;;  %v1908_v8 = vmul.f32 %v2680_v61, %v1523_v3  ;;  %v2718_v61 = vpop.eup %2717 }
 0x3e6   :  { %v2458_v19 = vpop.f32.mrf.mxu0 }
 0x3e7   :  { %1941 = vst.msk [vmem:[%s3485_s6 + $0x50] sm:$0xff] %vm1930_vm1, %v1908_v8  ;;  %v1911_v2 = vmul.f32 %v2682_v1, %v2458_v19  ;;  %v2720_v8 = vpop.eup %2719 }
 0x3e8   :  { %v1533_v46 = vpop.f32.mrf.mxu0 }
 0x3e9   :  { %1944 = vst.msk [vmem:[%s3485_s6 + $0x68] sm:$0xff] %vm1930_vm1, %v1911_v2  ;;  %v1910_v52 = vmul.f32 %v2684_v22, %v1533_v46 }
 0x3ea   :  { %v2461_v26 = vpop.f32.mrf.mxu0 }
 0x3eb   :  { %1943 = vst.msk [vmem:[%s3485_s6 + $0x60] sm:$0xff] %vm1930_vm1, %v1910_v52  ;;  %v1913_v7 = vmul.f32 %v2686_v9, %v2461_v26 }
 0x3ec   :  { %v1543_v21 = vpop.f32.mrf.mxu0 }
 0x3ed   :  { %1946 = vst.msk [vmem:[%s3485_s6 + $0x78] sm:$0xff] %vm1930_vm1, %v1913_v7  ;;  %v1912_v12 = vmul.f32 %v2688_v14, %v1543_v21 }
 0x3ee   :  { %v2464_v29 = vpop.f32.mrf.mxu0 }
 0x3ef   :  { %1945 = vst.msk [vmem:[%s3485_s6 + $0x70] sm:$0xff] %vm1930_vm1, %v1912_v12  ;;  %v1915_v56 = vmul.f32 %v2690_v27, %v2464_v29 }
 0x3f0   :  { %v1553_v28 = vpop.f32.mrf.mxu0 }
 0x3f1   :  { %1948 = vst.msk [vmem:[%s3485_s6 + $0x88] sm:$0xff] %vm1930_vm1, %v1915_v56  ;;  %v1914_v10 = vmul.f32 %v2692_v51, %v1553_v28 }
 0x3f2   :  { %v2467_v30 = vpop.f32.mrf.mxu0 }
 0x3f3   :  { %1947 = vst.msk [vmem:[%s3485_s6 + $0x80] sm:$0xff] %vm1930_vm1, %v1914_v10  ;;  %v1917_v44 = vmul.f32 %v2694_v25, %v2467_v30 }
 0x3f4   :  { %v1563_v17 = vpop.f32.mrf.mxu0 }
 0x3f5   :  { %1950 = vst.msk [vmem:[%s3485_s6 + $0x98] sm:$0xff] %vm1930_vm1, %v1917_v44  ;;  %v1916_v23 = vmul.f32 %v2696_v45, %v1563_v17 }
 0x3f6   :  { %v2470_v16 = vpop.f32.mrf.mxu0 }
 0x3f7   :  { %1949 = vst.msk [vmem:[%s3485_s6 + $0x90] sm:$0xff] %vm1930_vm1, %v1916_v23  ;;  %v1919_v18 = vmul.f32 %v2698_v5, %v2470_v16 }
 0x3f8   :  { %v1573_v34 = vpop.f32.mrf.mxu0 }
 0x3f9   :  { %1952 = vst.msk [vmem:[%s3485_s6 + $0xa8] sm:$0xff] %vm1930_vm1, %v1919_v18  ;;  %v1918_v35 = vmul.f32 %v2700_v24, %v1573_v34 }
 0x3fa   :  { %v2473_v37 = vpop.f32.mrf.mxu0 }
 0x3fb   :  { %1951 = vst.msk [vmem:[%s3485_s6 + $0xa0] sm:$0xff] %vm1930_vm1, %v1918_v35  ;;  %v1921_v38 = vmul.f32 %v2702_v31, %v2473_v37 }
 0x3fc   :  { %v1583_v39 = vpop.f32.mrf.mxu0 }
 0x3fd   :  { %1954 = vst.msk [vmem:[%s3485_s6 + $0xb8] sm:$0xff] %vm1930_vm1, %v1921_v38  ;;  %v1920_v40 = vmul.f32 %v2704_v55, %v1583_v39 }
 0x3fe   :  { %v2476_v48 = vpop.f32.mrf.mxu0 }
 0x3ff   :  { %1953 = vst.msk [vmem:[%s3485_s6 + $0xb0] sm:$0xff] %vm1930_vm1, %v1920_v40  ;;  %v1923_v49 = vmul.f32 %v2706_v43, %v2476_v48 }
 0x400   :  { %v1593_v0 = vpop.f32.mrf.mxu0 }
 0x401   :  { %1956 = vst.msk [vmem:[%s3485_s6 + $0xc8] sm:$0xff] %vm1930_vm1, %v1923_v49  ;;  %v1922_v59 = vmul.f32 %v2708_v13, %v1593_v0 }
 0x402   :  { %v2479_v42 = vpop.f32.mrf.mxu0 }
 0x403   :  { %1955 = vst.msk [vmem:[%s3485_s6 + $0xc0] sm:$0xff] %vm1930_vm1, %v1922_v59  ;;  %v1925_v11 = vmul.f32 %v2710_v36, %v2479_v42 }
 0x404   :  { %v1603_v15 = vpop.f32.mrf.mxu0 }
 0x405   :  { %1958 = vst.msk [vmem:[%s3485_s6 + $0xd8] sm:$0xff] %vm1930_vm1, %v1925_v11  ;;  %v1924_v53 = vmul.f32 %v2712_v50, %v1603_v15 }
 0x406   :  { %v2482_v4 = vpop.f32.mrf.mxu0 }
 0x407   :  { %1957 = vst.msk [vmem:[%s3485_s6 + $0xd0] sm:$0xff] %vm1930_vm1, %v1924_v53  ;;  %v1927_v57 = vmul.f32 %v2714_v63, %v2482_v4 }
 0x408   :  { %v1613_v41 = vpop.f32.mrf.mxu0 }
 0x409   :  { %1960 = vst.msk [vmem:[%s3485_s6 + $0xe8] sm:$0xff] %vm1930_vm1, %v1927_v57  ;;  %v1926_v47 = vmul.f32 %v2716_v58, %v1613_v41 }
 0x40a   :  { %v2485_v62 = vpop.f32.mrf.mxu0 }
 0x40b   :  { %1959 = vst.msk [vmem:[%s3485_s6 + $0xe0] sm:$0xff] %vm1930_vm1, %v1926_v47  ;;  %v1929_v3 = vmul.f32 %v2718_v61, %v2485_v62 }
 0x40c   :  { %v1623_v1 = vpop.f32.mrf.mxu0 }
 0x40d   :  { %1962 = vst.msk [vmem:[%s3485_s6 + $0xf8] sm:$0xff] %vm1930_vm1, %v1929_v3  ;;  %v1928_v19 = vmul.f32 %v2720_v8, %v1623_v1 }
 0x40f   :  { %1961 = vst.msk [vmem:[%s3485_s6 + $0xf0] sm:$0xff] %vm1930_vm1, %v1928_v19 }

</bundles_post_ra>
